<compile_context>
chip_gen: v6e
topology: v6e:2x2x1
jax: 0.10.0
libtpu: 0.0.40
codegen_flags: <defaults>
</compile_context>

<pallas_src>
import functools

import jax
import jax.numpy as jnp
from jax.experimental import pallas as pl
from jax.experimental.pallas import tpu as pltpu


def _round_up(v, m):
    return ((v + m - 1) // m) * m


# ----------------------------------------------------------------------------
# Pallas kernel 1: bf16 GEMM (K-tiled) + bias + LeakyReLU (every convolution)
# ----------------------------------------------------------------------------
def _gemm_bias_act_kernel(x_ref, w_ref, b_ref, o_ref, acc_ref, *, slope):
    k = pl.program_id(1)

    @pl.when(k == 0)
    def _():
        acc_ref[...] = jnp.zeros_like(acc_ref)

    # bf16 operands -> MXU, f32 accumulation in VMEM scratch.
    acc_ref[...] += jnp.dot(x_ref[...], w_ref[...],
                            preferred_element_type=jnp.float32)

    @pl.when(k == pl.num_programs(1) - 1)
    def _():
        acc = acc_ref[...] + b_ref[...]          # (1, Npad) broadcasts over rows
        if slope != 1.0:                         # LeakyReLU == max(x, slope*x)
            acc = jnp.maximum(acc, slope * acc)
        o_ref[...] = acc.astype(o_ref.dtype)


def _pick_tm(M):
    """Row tile: >=4 grid steps along M when M allows (>=2 per TC on v7x),
    capped at 512 rows so the f32 accumulator + bf16 blocks stay small."""
    if M >= 32:
        return min(512, _round_up(-(-M // 4), 8))
    return _round_up(max(M, 1), 8)


def _pick_tk(Kpad):
    """Reduction tile: whole K when small; else the largest <=1024 multiple of
    128 dividing Kpad (bounds per-step VMEM, enables deeper pipelining)."""
    if Kpad <= 1024:
        return Kpad
    for tk in (1024, 896, 768, 640, 512, 384, 256, 128):
        if Kpad % tk == 0:
            return tk
    return 128


def matmul_bias_act(x, w, b, *, slope, out_dtype=jnp.bfloat16):
    """x: (M, K), w: (K, N), b: (N,) -> leaky_relu(x @ w + b) as (M, N).

    bf16 MXU inputs, f32 accumulation.  K and N are zero-padded to multiples of
    128 (numerically exact); the output lane dim is stored lane-dense and the
    padding is sliced off afterwards.
    """
    M, K = x.shape
    N = w.shape[1]
    LANE = 128
    Npad = _round_up(N, LANE)
    Kpad = _round_up(K, LANE)
    tm = _pick_tm(M)
    tk = _pick_tk(Kpad)
    Mp = pl.cdiv(M, tm) * tm

    if (Mp, Kpad) != (M, K):
        x = jnp.pad(x, ((0, Mp - M), (0, Kpad - K)))
    if (Kpad, Npad) != (K, N):
        w = jnp.pad(w, ((0, Kpad - K), (0, Npad - N)))
        b = jnp.pad(b, (0, Npad - N))
    b2 = b.reshape(1, Npad).astype(jnp.float32)

    out_itemsize = jnp.dtype(out_dtype).itemsize
    # Double-buffered input/output blocks + resident f32 accumulator, + headroom.
    need = 2 * (tm * tk * 2 + tk * Npad * 2 + Npad * 4 + tm * Npad * out_itemsize)
    need += tm * Npad * 4
    vmem_limit = int(min(max(2 * need, 32 * 1024 * 1024), 64 * 1024 * 1024))

    cost = pl.CostEstimate(
        flops=int(2 * Mp * Kpad * Npad),
        transcendentals=0,
        bytes_accessed=int(Mp * Kpad * 2 + Kpad * Npad * 2 + Npad * 4
                           + Mp * Npad * out_itemsize),
    )

    out = pl.pallas_call(
        functools.partial(_gemm_bias_act_kernel, slope=slope),
        out_shape=jax.ShapeDtypeStruct((Mp, Npad), out_dtype),
        grid=(Mp // tm, Kpad // tk),
        in_specs=[
            pl.BlockSpec((tm, tk), lambda i, k: (i, k)),
            pl.BlockSpec((tk, Npad), lambda i, k: (k, 0)),
            pl.BlockSpec((1, Npad), lambda i, k: (0, 0)),
        ],
        out_specs=pl.BlockSpec((tm, Npad), lambda i, k: (i, 0)),
        scratch_shapes=[pltpu.VMEM((tm, Npad), jnp.float32)],
        compiler_params=pltpu.CompilerParams(
            dimension_semantics=("parallel", "arbitrary"),
            vmem_limit_bytes=vmem_limit),
        cost_estimate=cost,
    )(x.astype(jnp.bfloat16), w.astype(jnp.bfloat16), b2)
    return out[:M, :N]


def conv2d_nhwc(x, w, b, *, stride, pad, slope, out_dtype=jnp.bfloat16):
    """NHWC Conv2d via bf16 im2col (glue) + Pallas K-tiled GEMM kernel.

    x: (B, H, W, Cin) bf16; w: (Cout, Cin, kh, kw) f32; b: (Cout,) f32.
    Returns (B, Ho, Wo, Cout) in `out_dtype` (NHWC - no layout transposes).
    """
    B, H, W, Cin = x.shape
    Cout, _, kh, kw = w.shape
    x = x.astype(jnp.bfloat16)
    xp = jnp.pad(x, ((0, 0), (pad, pad), (pad, pad), (0, 0)))
    Ho = (H + 2 * pad - kh) // stride + 1
    Wo = (W + 2 * pad - kw) // stride + 1
    # TODO(synk): fold this im2col into the GEMM kernel (kh*kw reduction axis,
    #             or allow_input_fusion on the patches operand) to avoid the
    #             ~4x HBM blowup of the materialized patch matrix.
    cols = []
    for i in range(kh):
        for j in range(kw):
            cols.append(xp[:, i:i + stride * Ho:stride, j:j + stride * Wo:stride, :])
    # (B, Ho, Wo, kh*kw, Cin) -> (B*Ho*Wo, kh*kw*Cin): no layout transpose needed.
    patches = jnp.stack(cols, axis=3).reshape(B * Ho * Wo, kh * kw * Cin)
    # Weight matching the (i, j, cin) patch ordering: (kh, kw, Cin, Cout).
    wmat = jnp.transpose(w, (2, 3, 1, 0)).reshape(kh * kw * Cin, Cout)
    out = matmul_bias_act(patches, wmat, b, slope=slope, out_dtype=out_dtype)
    return out.reshape(B, Ho, Wo, Cout)


# ----------------------------------------------------------------------------
# Pallas kernel 2: SAGAN self-attention (per batch element, fused lane-dense QKV)
# ----------------------------------------------------------------------------
def _self_attention_kernel(x_ref, wqkv_ref, bqkv_ref, gamma_ref,
                           out_ref, attn_ref, *, cq, cv, c):
    x = x_ref[0]                                                     # (Np, C) bf16
    # Single fused QKV projection (one MXU push); the zero-padded Q/K/V columns
    # are numerically exact and keep every slice below lane-aligned (x128).
    qkv = jnp.dot(x, wqkv_ref[...],
                  preferred_element_type=jnp.float32) + bqkv_ref[...]
    q = qkv[:, :cq]                                                  # (Np, cq)
    k = qkv[:, cq:2 * cq]                                            # (Np, cq)
    v = qkv[:, 2 * cq:2 * cq + cv]                                   # (Np, cv)
    # energy[i, j] = sum_c q[i, c] * k[j, c]                          -> (Np, Np)
    energy = jax.lax.dot_general(
        q.astype(jnp.bfloat16), k.astype(jnp.bfloat16),
        (((1,), (1,)), ((), ())), preferred_element_type=jnp.float32)
    energy = energy - jnp.max(energy, axis=-1, keepdims=True)
    e = jnp.exp(energy)
    denom = jnp.sum(e, axis=-1, keepdims=True)
    attn = e * pl.reciprocal(denom, approx=True)                     # softmax(dim=-1)
    # o[i, c] = sum_j attn[i, j] * v[j, c]                            -> (Np, cv)
    o = jnp.dot(attn.astype(jnp.bfloat16), v.astype(jnp.bfloat16),
                preferred_element_type=jnp.float32)
    gamma = gamma_ref[0]
    out_ref[0] = (x.astype(jnp.float32) + gamma * o[:, :c]).astype(out_ref.dtype)
    attn_ref[0] = attn
    # TODO(synk): flash-tile over the key axis (online softmax) at large Np so
    #             the (Np, Np) f32 intermediate fits v7x's 64 MiB VMEM.


def _fuse_qkv(attn_params):
    """Concatenate (Wq, Wk, Wv) into one (C, 2*cqp + cvp) matrix with each
    segment zero-padded to a multiple of 128 output lanes (lane-dense stores,
    lane-aligned q/k/v slices; numerically exact)."""
    wq, bq, wk, bk, wv, bv, gamma = attn_params
    C = wv.shape[1]
    cq = wq.shape[0]
    LANE = 128
    cqp = _round_up(cq, LANE)
    cvp = _round_up(C, LANE)

    def _pad(wm, bm, n):
        return (jnp.pad(wm, ((0, n - wm.shape[0]), (0, 0))),
                jnp.pad(bm, (0, n - bm.shape[0])))

    wqp, bqp = _pad(wq, bq, cqp)
    wkp, bkp = _pad(wk, bk, cqp)
    wvp, bvp = _pad(wv, bv, cvp)
    wqkv = jnp.concatenate([wqp, wkp, wvp], axis=0).T         # (C, 2*cqp + cvp)
    bqkv = jnp.concatenate([bqp, bkp, bvp], axis=0).reshape(1, -1)
    return (wqkv.astype(jnp.bfloat16), bqkv.astype(jnp.float32),
            gamma.astype(jnp.float32), cqp, cvp)


def self_attention(x_nhwc, attn_params):
    """x: (B, H, W, C) bf16 -> (out (B, H, W, C) bf16, attention (B, H*W, H*W) f32)."""
    B, H, W, C = x_nhwc.shape
    Np = H * W
    wqkv, bqkv, gamma, cqp, cvp = _fuse_qkv(attn_params)
    Nqkv = wqkv.shape[1]
    xf = x_nhwc.reshape(B, Np, C).astype(jnp.bfloat16)

    cost = pl.CostEstimate(
        flops=int(B * (2 * Np * C * Nqkv + 2 * Np * Np * cqp + 2 * Np * Np * cvp)),
        transcendentals=int(B * Np * Np),
        bytes_accessed=int(B * Np * C * 2 + C * Nqkv * 2 + Nqkv * 4
                           + B * Np * C * 2 + B * Np * Np * 4),
    )

    # grid=(B,) keeps one batch element per step -> feeds v7x's 2 TensorCores.
    # TODO(synk): on single-TC chips (v5e/v6e) fold the batch into one grid step
    #             to amortize the ~0.35 us per-step overhead.
    out, attn = pl.pallas_call(
        functools.partial(_self_attention_kernel, cq=cqp, cv=cvp, c=C),
        out_shape=(jax.ShapeDtypeStruct((B, Np, C), jnp.bfloat16),
                   jax.ShapeDtypeStruct((B, Np, Np), jnp.float32)),
        grid=(B,),
        in_specs=[
            pl.BlockSpec((1, Np, C), lambda b: (b, 0, 0)),
            pl.BlockSpec((C, Nqkv), lambda b: (0, 0)),
            pl.BlockSpec((1, Nqkv), lambda b: (0, 0)),
            pl.BlockSpec(memory_space=pltpu.MemorySpace.SMEM),
        ],
        out_specs=(pl.BlockSpec((1, Np, C), lambda b: (b, 0, 0)),
                   pl.BlockSpec((1, Np, Np), lambda b: (b, 0, 0))),
        compiler_params=pltpu.CompilerParams(dimension_semantics=("parallel",)),
        cost_estimate=cost,
    )(xf, wqkv, bqkv, gamma)
    return out.reshape(B, H, W, C), attn


# ----------------------------------------------------------------------------
# Parameter setup (plain JAX glue; deterministic, parameter-side only)
# ----------------------------------------------------------------------------
def _conv_init(key, cout, cin, kh, kw):
    kw_key, kb_key = jax.random.split(key)
    fan_in = cin * kh * kw
    bound = 1.0 / jnp.sqrt(fan_in)
    w = jax.random.uniform(kw_key, (cout, cin, kh, kw), jnp.float32, -bound, bound)
    b = jax.random.uniform(kb_key, (cout,), jnp.float32, -bound, bound)
    return w, b


def _spectral_normalize(w, key, eps=1e-12):
    """One deterministic power iteration (mirrors nn.utils.spectral_norm;
    the persisted u buffer of PyTorch is approximated with a fresh seed)."""
    cout = w.shape[0]
    wm = w.reshape(cout, -1)
    u = jax.random.normal(key, (cout,), jnp.float32)
    u = u / (jnp.linalg.norm(u) + eps)
    v = wm.T @ u
    v = v / (jnp.linalg.norm(v) + eps)
    u = wm @ v
    u = u / (jnp.linalg.norm(u) + eps)
    sigma = u @ (wm @ v)
    return w / sigma


def _attn_init(key, in_dim):
    kq, kk, kv = jax.random.split(key, 3)
    cq = in_dim // 8
    wq, bq = _conv_init(kq, cq, in_dim, 1, 1)
    wk, bk = _conv_init(kk, cq, in_dim, 1, 1)
    wv, bv = _conv_init(kv, in_dim, in_dim, 1, 1)
    gamma = jnp.zeros((1,), jnp.float32)          # nn.Parameter(torch.zeros(1))
    return (wq.reshape(cq, in_dim), bq,
            wk.reshape(cq, in_dim), bk,
            wv.reshape(in_dim, in_dim), bv,
            gamma)


def init_params(key, image_size):
    keys = jax.random.split(key, 12)
    p = {}
    w1, b1 = _conv_init(keys[0], image_size, 1, 4, 4)
    w2, b2 = _conv_init(keys[1], image_size * 2, image_size, 4, 4)
    w3, b3 = _conv_init(keys[2], image_size * 4, image_size * 2, 4, 4)
    w4, b4 = _conv_init(keys[3], image_size * 8, image_size * 4, 4, 4)
    wl, bl = _conv_init(keys[4], 1, image_size * 8, 4, 4)
    # spectral_norm on layers 1-4 (as in the PyTorch module); last conv is plain.
    p['w1'], p['b1'] = _spectral_normalize(w1, keys[5]), b1
    p['w2'], p['b2'] = _spectral_normalize(w2, keys[6]), b2
    p['w3'], p['b3'] = _spectral_normalize(w3, keys[7]), b3
    p['w4'], p['b4'] = _spectral_normalize(w4, keys[8]), b4
    p['w_last'], p['b_last'] = wl, bl
    p['attn1'] = _attn_init(keys[9], image_size * 4)
    p['attn2'] = _attn_init(keys[10], image_size * 8)
    return p


# ----------------------------------------------------------------------------
# Discriminator forward (NCHW at the boundary, NHWC bf16 internally)
# ----------------------------------------------------------------------------
def discriminator_forward(x_nchw, p):
    x = jnp.transpose(x_nchw, (0, 2, 3, 1)).astype(jnp.bfloat16)      # NCHW -> NHWC once
    out = conv2d_nhwc(x, p['w1'], p['b1'], stride=2, pad=1, slope=0.1)     # layer1
    out = conv2d_nhwc(out, p['w2'], p['b2'], stride=2, pad=1, slope=0.1)   # layer2
    out = conv2d_nhwc(out, p['w3'], p['b3'], stride=2, pad=1, slope=0.1)   # layer3
    out, attn1 = self_attention(out, p['attn1'])                           # self_attntion1
    out = conv2d_nhwc(out, p['w4'], p['b4'], stride=2, pad=1, slope=0.1)   # layer4
    out, attn2 = self_attention(out, p['attn2'])                           # self_attntion2
    # Final 4x4 stride-1 conv: same K-tiled lane-padded GEMM, activation elided.
    out = conv2d_nhwc(out, p['w_last'], p['b_last'], stride=1, pad=0,
                      slope=1.0, out_dtype=jnp.float32)                    # last
    return jnp.transpose(out, (0, 3, 1, 2)), attn1, attn2                  # back to NCHW


if __name__ == "__main__":
    # Small config: channel base (image_size arg) = 8, spatial = 64x64 so the
    # final 4x4 stride-1 conv produces a 1x1 logit map (same as the PyTorch net).
    IMAGE_SIZE = 8
    key = jax.random.PRNGKey(0)
    k_x, k_p = jax.random.split(key)
    x = jax.random.normal(k_x, (2, 1, 64, 64), jnp.float32)   # NCHW, 1 input channel
    params = init_params(k_p, IMAGE_SIZE)

    out, attn1, attn2 = jax.jit(discriminator_forward)(x, params)
    jax.block_until_ready((out, attn1, attn2))

    assert out.shape == (2, 1, 1, 1), out.shape
    assert attn1.shape == (2, 64, 64), attn1.shape      # 8x8 feature map -> 64 positions
    assert attn2.shape == (2, 16, 16), attn2.shape      # 4x4 feature map -> 16 positions
    assert bool(jnp.all(jnp.isfinite(out)))
    assert bool(jnp.all(jnp.isfinite(attn1))) and bool(jnp.all(jnp.isfinite(attn2)))
    print("KERNEL_OK")
</pallas_src>

<mosaic_0001>
module attributes {stable_mosaic.version = 11 : i64} {
  func.func @_gemm_bias_act_kernel(%arg0: i32, %arg1: i32, %arg2: memref<512x128xbf16, #tpu.memory_space<vmem>>, %arg3: memref<128x128xbf16, #tpu.memory_space<vmem>>, %arg4: memref<1x128xf32, #tpu.memory_space<vmem>>, %arg5: memref<512x128xbf16, #tpu.memory_space<vmem>>, %arg6: memref<512x128xf32, #tpu.memory_space<vmem>>) attributes {dimension_semantics = [#tpu.dimension_semantics<parallel>, #tpu.dimension_semantics<arbitrary>], iteration_bounds = array<i64: 4, 1>, scalar_prefetch = 0 : i64, scratch_operands = 1 : i64, tpu.core_type = #tpu.core_type<tc>, window_params = [{transform_indices = @transform_0, window_bounds = array<i64: 512, 128>}, {transform_indices = @transform_1, window_bounds = array<i64: 128, 128>}, {pipeline_mode = #tpu.pipeline_mode<synchronous>, transform_indices = @transform_2, window_bounds = array<i64: 1, 128>}, {transform_indices = @transform_3, window_bounds = array<i64: 512, 128>}]} {
    %c0_i32 = arith.constant 0 : i32
    %0 = arith.cmpi eq, %arg1, %c0_i32 : i32
    %1 = arith.extui %0 : i1 to i32
    %c0_i32_0 = arith.constant 0 : i32
    %2 = arith.cmpi ne, %1, %c0_i32_0 : i32
    scf.if %2 {
      %cst_10 = arith.constant 0.000000e+00 : f32
      %12 = vector.broadcast %cst_10 : f32 to vector<512x128xf32>
      %c0_11 = arith.constant 0 : index
      %c0_12 = arith.constant 0 : index
      %13 = vector.load %arg6[%c0_11, %c0_12] : memref<512x128xf32, #tpu.memory_space<vmem>>, vector<512x128xf32>
      tpu.vector_store %arg6[%c0_11, %c0_12], %12 {strides = array<i32>} : memref<512x128xf32, #tpu.memory_space<vmem>>, vector<512x128xf32>,
    } else {
    }
    %c0 = arith.constant 0 : index
    %c0_1 = arith.constant 0 : index
    %3 = vector.load %arg6[%c0, %c0_1] : memref<512x128xf32, #tpu.memory_space<vmem>>, vector<512x128xf32>
    %c0_2 = arith.constant 0 : index
    %c0_3 = arith.constant 0 : index
    %4 = vector.load %arg2[%c0_2, %c0_3] : memref<512x128xbf16, #tpu.memory_space<vmem>>, vector<512x128xbf16>
    %c0_4 = arith.constant 0 : index
    %c0_5 = arith.constant 0 : index
    %5 = vector.load %arg3[%c0_4, %c0_5] : memref<128x128xbf16, #tpu.memory_space<vmem>>, vector<128x128xbf16>
    %cst = arith.constant dense<0.000000e+00> : vector<512x128xf32>
    %6 = tpu.matmul %4, %5, %cst {dimension_numbers = #tpu.dot_dimension_numbers<[1], [0], [0], [1], [0, 0, 1, 1], [], []>} : vector<512x128xbf16>, vector<128x128xbf16>, vector<512x128xf32> -> vector<512x128xf32>
    %7 = arith.addf %3, %6 : vector<512x128xf32>
    %c0_6 = arith.constant 0 : index
    %c0_7 = arith.constant 0 : index
    %8 = vector.load %arg6[%c0_6, %c0_7] : memref<512x128xf32, #tpu.memory_space<vmem>>, vector<512x128xf32>
    tpu.vector_store %arg6[%c0_6, %c0_7], %7 {strides = array<i32>} : memref<512x128xf32, #tpu.memory_space<vmem>>, vector<512x128xf32>,
    %c0_i32_8 = arith.constant 0 : i32
    %9 = arith.cmpi eq, %arg1, %c0_i32_8 : i32
    %10 = arith.extui %9 : i1 to i32
    %c0_i32_9 = arith.constant 0 : i32
    %11 = arith.cmpi ne, %10, %c0_i32_9 : i32
    scf.if %11 {
      %c0_10 = arith.constant 0 : index
      %c0_11 = arith.constant 0 : index
      %12 = vector.load %arg6[%c0_10, %c0_11] : memref<512x128xf32, #tpu.memory_space<vmem>>, vector<512x128xf32>
      %c0_12 = arith.constant 0 : index
      %c0_13 = arith.constant 0 : index
      %13 = vector.load %arg4[%c0_12, %c0_13] : memref<1x128xf32, #tpu.memory_space<vmem>>, vector<1x128xf32>
      %14 = vector.broadcast %13 : vector<1x128xf32> to vector<512x128xf32>
      %15 = arith.addf %12, %14 : vector<512x128xf32>
      %cst_14 = arith.constant 1.000000e-01 : f32
      %16 = vector.broadcast %cst_14 : f32 to vector<512x128xf32>
      %17 = arith.mulf %16, %15 : vector<512x128xf32>
      %18 = arith.maximumf %15, %17 : vector<512x128xf32>
      %19 = arith.truncf %18 : vector<512x128xf32> to vector<512x128xbf16>
      %c0_15 = arith.constant 0 : index
      %c0_16 = arith.constant 0 : index
      %20 = vector.load %arg5[%c0_15, %c0_16] : memref<512x128xbf16, #tpu.memory_space<vmem>>, vector<512x128xbf16>
      tpu.vector_store %arg5[%c0_15, %c0_16], %19 {strides = array<i32>} : memref<512x128xbf16, #tpu.memory_space<vmem>>, vector<512x128xbf16>,
    } else {
    }
    return
  }
  func.func @transform_0(%arg0: i32, %arg1: i32) -> (i32, i32) {
    %c0_i32 = arith.constant 0 : i32
    return %arg0, %arg1 : i32, i32
  }
  func.func @transform_1(%arg0: i32, %arg1: i32) -> (i32, i32) {
    %c0_i32 = arith.constant 0 : i32
    %c0_i32_0 = arith.constant 0 : i32
    return %arg1, %c0_i32 : i32, i32
  }
  func.func @transform_2(%arg0: i32, %arg1: i32) -> (i32, i32) {
    %c0_i32 = arith.constant 0 : i32
    %c0_i32_0 = arith.constant 0 : i32
    %c0_i32_1 = arith.constant 0 : i32
    return %c0_i32, %c0_i32_0 : i32, i32
  }
  func.func @transform_3(%arg0: i32, %arg1: i32) -> (i32, i32) {
    %c0_i32 = arith.constant 0 : i32
    %c0_i32_0 = arith.constant 0 : i32
    return %arg0, %c0_i32 : i32, i32
  }
}

module attributes {stable_mosaic.version = 11 : i64} {
  func.func @_gemm_bias_act_kernel(%arg0: i32, %arg1: i32, %arg2: memref<128x128xbf16, #tpu.memory_space<vmem>>, %arg3: memref<128x128xbf16, #tpu.memory_space<vmem>>, %arg4: memref<1x128xf32, #tpu.memory_space<vmem>>, %arg5: memref<128x128xbf16, #tpu.memory_space<vmem>>, %arg6: memref<128x128xf32, #tpu.memory_space<vmem>>) attributes {dimension_semantics = [#tpu.dimension_semantics<parallel>, #tpu.dimension_semantics<arbitrary>], iteration_bounds = array<i64: 4, 1>, scalar_prefetch = 0 : i64, scratch_operands = 1 : i64, tpu.core_type = #tpu.core_type<tc>, window_params = [{transform_indices = @transform_0, window_bounds = array<i64: 128, 128>}, {transform_indices = @transform_1, window_bounds = array<i64: 128, 128>}, {pipeline_mode = #tpu.pipeline_mode<synchronous>, transform_indices = @transform_2, window_bounds = array<i64: 1, 128>}, {transform_indices = @transform_3, window_bounds = array<i64: 128, 128>}]} {
    %c0_i32 = arith.constant 0 : i32
    %0 = arith.cmpi eq, %arg1, %c0_i32 : i32
    %1 = arith.extui %0 : i1 to i32
    %c0_i32_0 = arith.constant 0 : i32
    %2 = arith.cmpi ne, %1, %c0_i32_0 : i32
    scf.if %2 {
      %cst_10 = arith.constant 0.000000e+00 : f32
      %12 = vector.broadcast %cst_10 : f32 to vector<128x128xf32>
      %c0_11 = arith.constant 0 : index
      %c0_12 = arith.constant 0 : index
      %13 = vector.load %arg6[%c0_11, %c0_12] : memref<128x128xf32, #tpu.memory_space<vmem>>, vector<128x128xf32>
      tpu.vector_store %arg6[%c0_11, %c0_12], %12 {strides = array<i32>} : memref<128x128xf32, #tpu.memory_space<vmem>>, vector<128x128xf32>,
    } else {
    }
    %c0 = arith.constant 0 : index
    %c0_1 = arith.constant 0 : index
    %3 = vector.load %arg6[%c0, %c0_1] : memref<128x128xf32, #tpu.memory_space<vmem>>, vector<128x128xf32>
    %c0_2 = arith.constant 0 : index
    %c0_3 = arith.constant 0 : index
    %4 = vector.load %arg2[%c0_2, %c0_3] : memref<128x128xbf16, #tpu.memory_space<vmem>>, vector<128x128xbf16>
    %c0_4 = arith.constant 0 : index
    %c0_5 = arith.constant 0 : index
    %5 = vector.load %arg3[%c0_4, %c0_5] : memref<128x128xbf16, #tpu.memory_space<vmem>>, vector<128x128xbf16>
    %cst = arith.constant dense<0.000000e+00> : vector<128x128xf32>
    %6 = tpu.matmul %4, %5, %cst {dimension_numbers = #tpu.dot_dimension_numbers<[1], [0], [0], [1], [0, 0, 1, 1], [], []>} : vector<128x128xbf16>, vector<128x128xbf16>, vector<128x128xf32> -> vector<128x128xf32>
    %7 = arith.addf %3, %6 : vector<128x128xf32>
    %c0_6 = arith.constant 0 : index
    %c0_7 = arith.constant 0 : index
    %8 = vector.load %arg6[%c0_6, %c0_7] : memref<128x128xf32, #tpu.memory_space<vmem>>, vector<128x128xf32>
    tpu.vector_store %arg6[%c0_6, %c0_7], %7 {strides = array<i32>} : memref<128x128xf32, #tpu.memory_space<vmem>>, vector<128x128xf32>,
    %c0_i32_8 = arith.constant 0 : i32
    %9 = arith.cmpi eq, %arg1, %c0_i32_8 : i32
    %10 = arith.extui %9 : i1 to i32
    %c0_i32_9 = arith.constant 0 : i32
    %11 = arith.cmpi ne, %10, %c0_i32_9 : i32
    scf.if %11 {
      %c0_10 = arith.constant 0 : index
      %c0_11 = arith.constant 0 : index
      %12 = vector.load %arg6[%c0_10, %c0_11] : memref<128x128xf32, #tpu.memory_space<vmem>>, vector<128x128xf32>
      %c0_12 = arith.constant 0 : index
      %c0_13 = arith.constant 0 : index
      %13 = vector.load %arg4[%c0_12, %c0_13] : memref<1x128xf32, #tpu.memory_space<vmem>>, vector<1x128xf32>
      %14 = vector.broadcast %13 : vector<1x128xf32> to vector<128x128xf32>
      %15 = arith.addf %12, %14 : vector<128x128xf32>
      %cst_14 = arith.constant 1.000000e-01 : f32
      %16 = vector.broadcast %cst_14 : f32 to vector<128x128xf32>
      %17 = arith.mulf %16, %15 : vector<128x128xf32>
      %18 = arith.maximumf %15, %17 : vector<128x128xf32>
      %19 = arith.truncf %18 : vector<128x128xf32> to vector<128x128xbf16>
      %c0_15 = arith.constant 0 : index
      %c0_16 = arith.constant 0 : index
      %20 = vector.load %arg5[%c0_15, %c0_16] : memref<128x128xbf16, #tpu.memory_space<vmem>>, vector<128x128xbf16>
      tpu.vector_store %arg5[%c0_15, %c0_16], %19 {strides = array<i32>} : memref<128x128xbf16, #tpu.memory_space<vmem>>, vector<128x128xbf16>,
    } else {
    }
    return
  }
  func.func @transform_0(%arg0: i32, %arg1: i32) -> (i32, i32) {
    %c0_i32 = arith.constant 0 : i32
    return %arg0, %arg1 : i32, i32
  }
  func.func @transform_1(%arg0: i32, %arg1: i32) -> (i32, i32) {
    %c0_i32 = arith.constant 0 : i32
    %c0_i32_0 = arith.constant 0 : i32
    return %arg1, %c0_i32 : i32, i32
  }
  func.func @transform_2(%arg0: i32, %arg1: i32) -> (i32, i32) {
    %c0_i32 = arith.constant 0 : i32
    %c0_i32_0 = arith.constant 0 : i32
    %c0_i32_1 = arith.constant 0 : i32
    return %c0_i32, %c0_i32_0 : i32, i32
  }
  func.func @transform_3(%arg0: i32, %arg1: i32) -> (i32, i32) {
    %c0_i32 = arith.constant 0 : i32
    %c0_i32_0 = arith.constant 0 : i32
    return %arg0, %c0_i32 : i32, i32
  }
}

module attributes {stable_mosaic.version = 11 : i64} {
  func.func @_gemm_bias_act_kernel(%arg0: i32, %arg1: i32, %arg2: memref<32x256xbf16, #tpu.memory_space<vmem>>, %arg3: memref<256x128xbf16, #tpu.memory_space<vmem>>, %arg4: memref<1x128xf32, #tpu.memory_space<vmem>>, %arg5: memref<32x128xbf16, #tpu.memory_space<vmem>>, %arg6: memref<32x128xf32, #tpu.memory_space<vmem>>) attributes {dimension_semantics = [#tpu.dimension_semantics<parallel>, #tpu.dimension_semantics<arbitrary>], iteration_bounds = array<i64: 4, 1>, scalar_prefetch = 0 : i64, scratch_operands = 1 : i64, tpu.core_type = #tpu.core_type<tc>, window_params = [{transform_indices = @transform_0, window_bounds = array<i64: 32, 256>}, {transform_indices = @transform_1, window_bounds = array<i64: 256, 128>}, {pipeline_mode = #tpu.pipeline_mode<synchronous>, transform_indices = @transform_2, window_bounds = array<i64: 1, 128>}, {transform_indices = @transform_3, window_bounds = array<i64: 32, 128>}]} {
    %c0_i32 = arith.constant 0 : i32
    %0 = arith.cmpi eq, %arg1, %c0_i32 : i32
    %1 = arith.extui %0 : i1 to i32
    %c0_i32_0 = arith.constant 0 : i32
    %2 = arith.cmpi ne, %1, %c0_i32_0 : i32
    scf.if %2 {
      %cst_10 = arith.constant 0.000000e+00 : f32
      %12 = vector.broadcast %cst_10 : f32 to vector<32x128xf32>
      %c0_11 = arith.constant 0 : index
      %c0_12 = arith.constant 0 : index
      %13 = vector.load %arg6[%c0_11, %c0_12] : memref<32x128xf32, #tpu.memory_space<vmem>>, vector<32x128xf32>
      tpu.vector_store %arg6[%c0_11, %c0_12], %12 {strides = array<i32>} : memref<32x128xf32, #tpu.memory_space<vmem>>, vector<32x128xf32>,
    } else {
    }
    %c0 = arith.constant 0 : index
    %c0_1 = arith.constant 0 : index
    %3 = vector.load %arg6[%c0, %c0_1] : memref<32x128xf32, #tpu.memory_space<vmem>>, vector<32x128xf32>
    %c0_2 = arith.constant 0 : index
    %c0_3 = arith.constant 0 : index
    %4 = vector.load %arg2[%c0_2, %c0_3] : memref<32x256xbf16, #tpu.memory_space<vmem>>, vector<32x256xbf16>
    %c0_4 = arith.constant 0 : index
    %c0_5 = arith.constant 0 : index
    %5 = vector.load %arg3[%c0_4, %c0_5] : memref<256x128xbf16, #tpu.memory_space<vmem>>, vector<256x128xbf16>
    %cst = arith.constant dense<0.000000e+00> : vector<32x128xf32>
    %6 = tpu.matmul %4, %5, %cst {dimension_numbers = #tpu.dot_dimension_numbers<[1], [0], [0], [1], [0, 0, 1, 1], [], []>} : vector<32x256xbf16>, vector<256x128xbf16>, vector<32x128xf32> -> vector<32x128xf32>
    %7 = arith.addf %3, %6 : vector<32x128xf32>
    %c0_6 = arith.constant 0 : index
    %c0_7 = arith.constant 0 : index
    %8 = vector.load %arg6[%c0_6, %c0_7] : memref<32x128xf32, #tpu.memory_space<vmem>>, vector<32x128xf32>
    tpu.vector_store %arg6[%c0_6, %c0_7], %7 {strides = array<i32>} : memref<32x128xf32, #tpu.memory_space<vmem>>, vector<32x128xf32>,
    %c0_i32_8 = arith.constant 0 : i32
    %9 = arith.cmpi eq, %arg1, %c0_i32_8 : i32
    %10 = arith.extui %9 : i1 to i32
    %c0_i32_9 = arith.constant 0 : i32
    %11 = arith.cmpi ne, %10, %c0_i32_9 : i32
    scf.if %11 {
      %c0_10 = arith.constant 0 : index
      %c0_11 = arith.constant 0 : index
      %12 = vector.load %arg6[%c0_10, %c0_11] : memref<32x128xf32, #tpu.memory_space<vmem>>, vector<32x128xf32>
      %c0_12 = arith.constant 0 : index
      %c0_13 = arith.constant 0 : index
      %13 = vector.load %arg4[%c0_12, %c0_13] : memref<1x128xf32, #tpu.memory_space<vmem>>, vector<1x128xf32>
      %14 = vector.broadcast %13 : vector<1x128xf32> to vector<32x128xf32>
      %15 = arith.addf %12, %14 : vector<32x128xf32>
      %cst_14 = arith.constant 1.000000e-01 : f32
      %16 = vector.broadcast %cst_14 : f32 to vector<32x128xf32>
      %17 = arith.mulf %16, %15 : vector<32x128xf32>
      %18 = arith.maximumf %15, %17 : vector<32x128xf32>
      %19 = arith.truncf %18 : vector<32x128xf32> to vector<32x128xbf16>
      %c0_15 = arith.constant 0 : index
      %c0_16 = arith.constant 0 : index
      %20 = vector.load %arg5[%c0_15, %c0_16] : memref<32x128xbf16, #tpu.memory_space<vmem>>, vector<32x128xbf16>
      tpu.vector_store %arg5[%c0_15, %c0_16], %19 {strides = array<i32>} : memref<32x128xbf16, #tpu.memory_space<vmem>>, vector<32x128xbf16>,
    } else {
    }
    return
  }
  func.func @transform_0(%arg0: i32, %arg1: i32) -> (i32, i32) {
    %c0_i32 = arith.constant 0 : i32
    return %arg0, %arg1 : i32, i32
  }
  func.func @transform_1(%arg0: i32, %arg1: i32) -> (i32, i32) {
    %c0_i32 = arith.constant 0 : i32
    %c0_i32_0 = arith.constant 0 : i32
    return %arg1, %c0_i32 : i32, i32
  }
  func.func @transform_2(%arg0: i32, %arg1: i32) -> (i32, i32) {
    %c0_i32 = arith.constant 0 : i32
    %c0_i32_0 = arith.constant 0 : i32
    %c0_i32_1 = arith.constant 0 : i32
    return %c0_i32, %c0_i32_0 : i32, i32
  }
  func.func @transform_3(%arg0: i32, %arg1: i32) -> (i32, i32) {
    %c0_i32 = arith.constant 0 : i32
    %c0_i32_0 = arith.constant 0 : i32
    return %arg0, %c0_i32 : i32, i32
  }
}

module attributes {stable_mosaic.version = 11 : i64} {
  func.func @_self_attention_kernel(%arg0: i32, %arg1: memref<1x64x32xbf16, #tpu.memory_space<vmem>>, %arg2: memref<32x384xbf16, #tpu.memory_space<vmem>>, %arg3: memref<1x384xf32, #tpu.memory_space<vmem>>, %arg4: memref<1xf32, #tpu.memory_space<smem>>, %arg5: memref<1x64x32xbf16, #tpu.memory_space<vmem>>, %arg6: memref<1x64x64xf32, #tpu.memory_space<vmem>>) attributes {dimension_semantics = [#tpu.dimension_semantics<parallel>], iteration_bounds = array<i64: 2>, scalar_prefetch = 0 : i64, scratch_operands = 0 : i64, tpu.core_type = #tpu.core_type<tc>, window_params = [{transform_indices = @transform_0, window_bounds = array<i64: 1, 64, 32>}, {pipeline_mode = #tpu.pipeline_mode<synchronous>, transform_indices = @transform_1, window_bounds = array<i64: 32, 384>}, {pipeline_mode = #tpu.pipeline_mode<synchronous>, transform_indices = @transform_2, window_bounds = array<i64: 1, 384>}, {transform_indices = @transform_3, window_bounds = array<i64: 1>}, {transform_indices = @transform_4, window_bounds = array<i64: 1, 64, 32>}, {transform_indices = @transform_5, window_bounds = array<i64: 1, 64, 64>}]} {
    %c0 = arith.constant 0 : index
    %c0_0 = arith.constant 0 : index
    %c0_1 = arith.constant 0 : index
    %0 = vector.load %arg1[%c0, %c0_0, %c0_1] : memref<1x64x32xbf16, #tpu.memory_space<vmem>>, vector<1x64x32xbf16>
    %1 = vector.shape_cast %0 : vector<1x64x32xbf16> to vector<64x32xbf16>
    %c0_2 = arith.constant 0 : index
    %c0_3 = arith.constant 0 : index
    %2 = vector.load %arg2[%c0_2, %c0_3] : memref<32x384xbf16, #tpu.memory_space<vmem>>, vector<32x384xbf16>
    %cst = arith.constant dense<0.000000e+00> : vector<64x384xf32>
    %3 = tpu.matmul %1, %2, %cst {dimension_numbers = #tpu.dot_dimension_numbers<[1], [0], [0], [1], [0, 0, 1, 1], [], []>} : vector<64x32xbf16>, vector<32x384xbf16>, vector<64x384xf32> -> vector<64x384xf32>
    %c0_4 = arith.constant 0 : index
    %c0_5 = arith.constant 0 : index
    %4 = vector.load %arg3[%c0_4, %c0_5] : memref<1x384xf32, #tpu.memory_space<vmem>>, vector<1x384xf32>
    %5 = vector.broadcast %4 : vector<1x384xf32> to vector<64x384xf32>
    %6 = arith.addf %3, %5 : vector<64x384xf32>
    %7 = vector.extract_strided_slice %6 {offsets = [0, 0], sizes = [64, 128], strides = [1, 1]} : vector<64x384xf32> to vector<64x128xf32>
    %8 = vector.extract_strided_slice %6 {offsets = [0, 128], sizes = [64, 128], strides = [1, 1]} : vector<64x384xf32> to vector<64x128xf32>
    %9 = vector.extract_strided_slice %6 {offsets = [0, 256], sizes = [64, 128], strides = [1, 1]} : vector<64x384xf32> to vector<64x128xf32>
    %10 = arith.truncf %7 : vector<64x128xf32> to vector<64x128xbf16>
    %11 = arith.truncf %8 : vector<64x128xf32> to vector<64x128xbf16>
    %cst_6 = arith.constant dense<0.000000e+00> : vector<64x64xf32>
    %12 = tpu.matmul %10, %11, %cst_6 {dimension_numbers = #tpu.dot_dimension_numbers<[1], [1], [0], [0], [0, 0, 1, 0], [], []>} : vector<64x128xbf16>, vector<64x128xbf16>, vector<64x64xf32> -> vector<64x64xf32>
    %cst_7 = arith.constant dense<0xFF800000> : vector<64xf32>
    %13 = vector.multi_reduction <maximumf>, %12, %cst_7 [1] : vector<64x64xf32> to vector<64xf32>
    %14 = vector.shape_cast %13 : vector<64xf32> to vector<64x1xf32>
    %15 = vector.broadcast %14 : vector<64x1xf32> to vector<64x64xf32>
    %16 = arith.subf %12, %15 : vector<64x64xf32>
    %17 = math.exp %16 : vector<64x64xf32>
    %cst_8 = arith.constant dense<0.000000e+00> : vector<64xf32>
    %18 = vector.multi_reduction <add>, %17, %cst_8 [1] : vector<64x64xf32> to vector<64xf32>
    %19 = vector.shape_cast %18 : vector<64xf32> to vector<64x1xf32>
    %20 = tpu.reciprocal %19 {approx = true} : vector<64x1xf32> -> vector<64x1xf32>
    %21 = vector.broadcast %20 : vector<64x1xf32> to vector<64x64xf32>
    %22 = arith.mulf %17, %21 : vector<64x64xf32>
    %23 = arith.truncf %22 : vector<64x64xf32> to vector<64x64xbf16>
    %24 = arith.truncf %9 : vector<64x128xf32> to vector<64x128xbf16>
    %cst_9 = arith.constant dense<0.000000e+00> : vector<64x128xf32>
    %25 = tpu.matmul %23, %24, %cst_9 {dimension_numbers = #tpu.dot_dimension_numbers<[1], [0], [0], [1], [0, 0, 1, 1], [], []>} : vector<64x64xbf16>, vector<64x128xbf16>, vector<64x128xf32> -> vector<64x128xf32>
    %c0_10 = arith.constant 0 : index
    %26 = memref.load %arg4[%c0_10] : memref<1xf32, #tpu.memory_space<smem>>
    %27 = arith.extf %1 : vector<64x32xbf16> to vector<64x32xf32>
    %28 = vector.extract_strided_slice %25 {offsets = [0, 0], sizes = [64, 32], strides = [1, 1]} : vector<64x128xf32> to vector<64x32xf32>
    %29 = vector.broadcast %26 : f32 to vector<64x32xf32>
    %30 = arith.mulf %29, %28 : vector<64x32xf32>
    %31 = arith.addf %27, %30 : vector<64x32xf32>
    %32 = arith.truncf %31 : vector<64x32xf32> to vector<64x32xbf16>
    %c0_11 = arith.constant 0 : index
    %c0_12 = arith.constant 0 : index
    %c0_13 = arith.constant 0 : index
    %33 = vector.load %arg5[%c0_11, %c0_12, %c0_13] : memref<1x64x32xbf16, #tpu.memory_space<vmem>>, vector<1x64x32xbf16>
    %34 = vector.shape_cast %33 : vector<1x64x32xbf16> to vector<64x32xbf16>
    %35 = vector.shape_cast %32 : vector<64x32xbf16> to vector<1x64x32xbf16>
    tpu.vector_store %arg5[%c0_11, %c0_12, %c0_13], %35 {strides = array<i32>} : memref<1x64x32xbf16, #tpu.memory_space<vmem>>, vector<1x64x32xbf16>,
    %c0_14 = arith.constant 0 : index
    %c0_15 = arith.constant 0 : index
    %c0_16 = arith.constant 0 : index
    %36 = vector.load %arg6[%c0_14, %c0_15, %c0_16] : memref<1x64x64xf32, #tpu.memory_space<vmem>>, vector<1x64x64xf32>
    %37 = vector.shape_cast %36 : vector<1x64x64xf32> to vector<64x64xf32>
    %38 = vector.shape_cast %22 : vector<64x64xf32> to vector<1x64x64xf32>
    tpu.vector_store %arg6[%c0_14, %c0_15, %c0_16], %38 {strides = array<i32>} : memref<1x64x64xf32, #tpu.memory_space<vmem>>, vector<1x64x64xf32>,
    return
  }
  func.func @transform_0(%arg0: i32) -> (i32, i32, i32) {
    %c0_i32 = arith.constant 0 : i32
    %c0_i32_0 = arith.constant 0 : i32
    %c0_i32_1 = arith.constant 0 : i32
    return %arg0, %c0_i32, %c0_i32_0 : i32, i32, i32
  }
  func.func @transform_1(%arg0: i32) -> (i32, i32) {
    %c0_i32 = arith.constant 0 : i32
    %c0_i32_0 = arith.constant 0 : i32
    %c0_i32_1 = arith.constant 0 : i32
    return %c0_i32, %c0_i32_0 : i32, i32
  }
  func.func @transform_2(%arg0: i32) -> (i32, i32) {
    %c0_i32 = arith.constant 0 : i32
    %c0_i32_0 = arith.constant 0 : i32
    %c0_i32_1 = arith.constant 0 : i32
    return %c0_i32, %c0_i32_0 : i32, i32
  }
  func.func @transform_3(%arg0: i32) -> i32 {
    %c0_i32 = arith.constant 0 : i32
    %c0_i32_0 = arith.constant 0 : i32
    return %c0_i32 : i32
  }
  func.func @transform_4(%arg0: i32) -> (i32, i32, i32) {
    %c0_i32 = arith.constant 0 : i32
    %c0_i32_0 = arith.constant 0 : i32
    %c0_i32_1 = arith.constant 0 : i32
    return %arg0, %c0_i32, %c0_i32_0 : i32, i32, i32
  }
  func.func @transform_5(%arg0: i32) -> (i32, i32, i32) {
    %c0_i32 = arith.constant 0 : i32
    %c0_i32_0 = arith.constant 0 : i32
    %c0_i32_1 = arith.constant 0 : i32
    return %arg0, %c0_i32, %c0_i32_0 : i32, i32, i32
  }
}

module attributes {stable_mosaic.version = 11 : i64} {
  func.func @_self_attention_kernel(%arg0: i32, %arg1: memref<1x16x64xbf16, #tpu.memory_space<vmem>>, %arg2: memref<64x384xbf16, #tpu.memory_space<vmem>>, %arg3: memref<1x384xf32, #tpu.memory_space<vmem>>, %arg4: memref<1xf32, #tpu.memory_space<smem>>, %arg5: memref<1x16x64xbf16, #tpu.memory_space<vmem>>, %arg6: memref<1x16x16xf32, #tpu.memory_space<vmem>>) attributes {dimension_semantics = [#tpu.dimension_semantics<parallel>], iteration_bounds = array<i64: 2>, scalar_prefetch = 0 : i64, scratch_operands = 0 : i64, tpu.core_type = #tpu.core_type<tc>, window_params = [{transform_indices = @transform_0, window_bounds = array<i64: 1, 16, 64>}, {pipeline_mode = #tpu.pipeline_mode<synchronous>, transform_indices = @transform_1, window_bounds = array<i64: 64, 384>}, {pipeline_mode = #tpu.pipeline_mode<synchronous>, transform_indices = @transform_2, window_bounds = array<i64: 1, 384>}, {transform_indices = @transform_3, window_bounds = array<i64: 1>}, {transform_indices = @transform_4, window_bounds = array<i64: 1, 16, 64>}, {transform_indices = @transform_5, window_bounds = array<i64: 1, 16, 16>}]} {
    %c0 = arith.constant 0 : index
    %c0_0 = arith.constant 0 : index
    %c0_1 = arith.constant 0 : index
    %0 = vector.load %arg1[%c0, %c0_0, %c0_1] : memref<1x16x64xbf16, #tpu.memory_space<vmem>>, vector<1x16x64xbf16>
    %1 = vector.shape_cast %0 : vector<1x16x64xbf16> to vector<16x64xbf16>
    %c0_2 = arith.constant 0 : index
    %c0_3 = arith.constant 0 : index
    %2 = vector.load %arg2[%c0_2, %c0_3] : memref<64x384xbf16, #tpu.memory_space<vmem>>, vector<64x384xbf16>
    %cst = arith.constant dense<0.000000e+00> : vector<16x384xf32>
    %3 = tpu.matmul %1, %2, %cst {dimension_numbers = #tpu.dot_dimension_numbers<[1], [0], [0], [1], [0, 0, 1, 1], [], []>} : vector<16x64xbf16>, vector<64x384xbf16>, vector<16x384xf32> -> vector<16x384xf32>
    %c0_4 = arith.constant 0 : index
    %c0_5 = arith.constant 0 : index
    %4 = vector.load %arg3[%c0_4, %c0_5] : memref<1x384xf32, #tpu.memory_space<vmem>>, vector<1x384xf32>
    %5 = vector.broadcast %4 : vector<1x384xf32> to vector<16x384xf32>
    %6 = arith.addf %3, %5 : vector<16x384xf32>
    %7 = vector.extract_strided_slice %6 {offsets = [0, 0], sizes = [16, 128], strides = [1, 1]} : vector<16x384xf32> to vector<16x128xf32>
    %8 = vector.extract_strided_slice %6 {offsets = [0, 128], sizes = [16, 128], strides = [1, 1]} : vector<16x384xf32> to vector<16x128xf32>
    %9 = vector.extract_strided_slice %6 {offsets = [0, 256], sizes = [16, 128], strides = [1, 1]} : vector<16x384xf32> to vector<16x128xf32>
    %10 = arith.truncf %7 : vector<16x128xf32> to vector<16x128xbf16>
    %11 = arith.truncf %8 : vector<16x128xf32> to vector<16x128xbf16>
    %cst_6 = arith.constant dense<0.000000e+00> : vector<16x16xf32>
    %12 = tpu.matmul %10, %11, %cst_6 {dimension_numbers = #tpu.dot_dimension_numbers<[1], [1], [0], [0], [0, 0, 1, 0], [], []>} : vector<16x128xbf16>, vector<16x128xbf16>, vector<16x16xf32> -> vector<16x16xf32>
    %cst_7 = arith.constant dense<0xFF800000> : vector<16xf32>
    %13 = vector.multi_reduction <maximumf>, %12, %cst_7 [1] : vector<16x16xf32> to vector<16xf32>
    %14 = vector.shape_cast %13 : vector<16xf32> to vector<16x1xf32>
    %15 = vector.broadcast %14 : vector<16x1xf32> to vector<16x16xf32>
    %16 = arith.subf %12, %15 : vector<16x16xf32>
    %17 = math.exp %16 : vector<16x16xf32>
    %cst_8 = arith.constant dense<0.000000e+00> : vector<16xf32>
    %18 = vector.multi_reduction <add>, %17, %cst_8 [1] : vector<16x16xf32> to vector<16xf32>
    %19 = vector.shape_cast %18 : vector<16xf32> to vector<16x1xf32>
    %20 = tpu.reciprocal %19 {approx = true} : vector<16x1xf32> -> vector<16x1xf32>
    %21 = vector.broadcast %20 : vector<16x1xf32> to vector<16x16xf32>
    %22 = arith.mulf %17, %21 : vector<16x16xf32>
    %23 = arith.truncf %22 : vector<16x16xf32> to vector<16x16xbf16>
    %24 = arith.truncf %9 : vector<16x128xf32> to vector<16x128xbf16>
    %cst_9 = arith.constant dense<0.000000e+00> : vector<16x128xf32>
    %25 = tpu.matmul %23, %24, %cst_9 {dimension_numbers = #tpu.dot_dimension_numbers<[1], [0], [0], [1], [0, 0, 1, 1], [], []>} : vector<16x16xbf16>, vector<16x128xbf16>, vector<16x128xf32> -> vector<16x128xf32>
    %c0_10 = arith.constant 0 : index
    %26 = memref.load %arg4[%c0_10] : memref<1xf32, #tpu.memory_space<smem>>
    %27 = arith.extf %1 : vector<16x64xbf16> to vector<16x64xf32>
    %28 = vector.extract_strided_slice %25 {offsets = [0, 0], sizes = [16, 64], strides = [1, 1]} : vector<16x128xf32> to vector<16x64xf32>
    %29 = vector.broadcast %26 : f32 to vector<16x64xf32>
    %30 = arith.mulf %29, %28 : vector<16x64xf32>
    %31 = arith.addf %27, %30 : vector<16x64xf32>
    %32 = arith.truncf %31 : vector<16x64xf32> to vector<16x64xbf16>
    %c0_11 = arith.constant 0 : index
    %c0_12 = arith.constant 0 : index
    %c0_13 = arith.constant 0 : index
    %33 = vector.load %arg5[%c0_11, %c0_12, %c0_13] : memref<1x16x64xbf16, #tpu.memory_space<vmem>>, vector<1x16x64xbf16>
    %34 = vector.shape_cast %33 : vector<1x16x64xbf16> to vector<16x64xbf16>
    %35 = vector.shape_cast %32 : vector<16x64xbf16> to vector<1x16x64xbf16>
    tpu.vector_store %arg5[%c0_11, %c0_12, %c0_13], %35 {strides = array<i32>} : memref<1x16x64xbf16, #tpu.memory_space<vmem>>, vector<1x16x64xbf16>,
    %c0_14 = arith.constant 0 : index
    %c0_15 = arith.constant 0 : index
    %c0_16 = arith.constant 0 : index
    %36 = vector.load %arg6[%c0_14, %c0_15, %c0_16] : memref<1x16x16xf32, #tpu.memory_space<vmem>>, vector<1x16x16xf32>
    %37 = vector.shape_cast %36 : vector<1x16x16xf32> to vector<16x16xf32>
    %38 = vector.shape_cast %22 : vector<16x16xf32> to vector<1x16x16xf32>
    tpu.vector_store %arg6[%c0_14, %c0_15, %c0_16], %38 {strides = array<i32>} : memref<1x16x16xf32, #tpu.memory_space<vmem>>, vector<1x16x16xf32>,
    return
  }
  func.func @transform_0(%arg0: i32) -> (i32, i32, i32) {
    %c0_i32 = arith.constant 0 : i32
    %c0_i32_0 = arith.constant 0 : i32
    %c0_i32_1 = arith.constant 0 : i32
    return %arg0, %c0_i32, %c0_i32_0 : i32, i32, i32
  }
  func.func @transform_1(%arg0: i32) -> (i32, i32) {
    %c0_i32 = arith.constant 0 : i32
    %c0_i32_0 = arith.constant 0 : i32
    %c0_i32_1 = arith.constant 0 : i32
    return %c0_i32, %c0_i32_0 : i32, i32
  }
  func.func @transform_2(%arg0: i32) -> (i32, i32) {
    %c0_i32 = arith.constant 0 : i32
    %c0_i32_0 = arith.constant 0 : i32
    %c0_i32_1 = arith.constant 0 : i32
    return %c0_i32, %c0_i32_0 : i32, i32
  }
  func.func @transform_3(%arg0: i32) -> i32 {
    %c0_i32 = arith.constant 0 : i32
    %c0_i32_0 = arith.constant 0 : i32
    return %c0_i32 : i32
  }
  func.func @transform_4(%arg0: i32) -> (i32, i32, i32) {
    %c0_i32 = arith.constant 0 : i32
    %c0_i32_0 = arith.constant 0 : i32
    %c0_i32_1 = arith.constant 0 : i32
    return %arg0, %c0_i32, %c0_i32_0 : i32, i32, i32
  }
  func.func @transform_5(%arg0: i32) -> (i32, i32, i32) {
    %c0_i32 = arith.constant 0 : i32
    %c0_i32_0 = arith.constant 0 : i32
    %c0_i32_1 = arith.constant 0 : i32
    return %arg0, %c0_i32, %c0_i32_0 : i32, i32, i32
  }
}

module attributes {stable_mosaic.version = 11 : i64} {
  func.func @_gemm_bias_act_kernel(%arg0: i32, %arg1: i32, %arg2: memref<8x512xbf16, #tpu.memory_space<vmem>>, %arg3: memref<512x128xbf16, #tpu.memory_space<vmem>>, %arg4: memref<1x128xf32, #tpu.memory_space<vmem>>, %arg5: memref<8x128xbf16, #tpu.memory_space<vmem>>, %arg6: memref<8x128xf32, #tpu.memory_space<vmem>>) attributes {dimension_semantics = [#tpu.dimension_semantics<parallel>, #tpu.dimension_semantics<arbitrary>], iteration_bounds = array<i64: 4, 1>, scalar_prefetch = 0 : i64, scratch_operands = 1 : i64, tpu.core_type = #tpu.core_type<tc>, window_params = [{transform_indices = @transform_0, window_bounds = array<i64: 8, 512>}, {transform_indices = @transform_1, window_bounds = array<i64: 512, 128>}, {pipeline_mode = #tpu.pipeline_mode<synchronous>, transform_indices = @transform_2, window_bounds = array<i64: 1, 128>}, {transform_indices = @transform_3, window_bounds = array<i64: 8, 128>}]} {
    %c0_i32 = arith.constant 0 : i32
    %0 = arith.cmpi eq, %arg1, %c0_i32 : i32
    %1 = arith.extui %0 : i1 to i32
    %c0_i32_0 = arith.constant 0 : i32
    %2 = arith.cmpi ne, %1, %c0_i32_0 : i32
    scf.if %2 {
      %cst_10 = arith.constant 0.000000e+00 : f32
      %12 = vector.broadcast %cst_10 : f32 to vector<8x128xf32>
      %c0_11 = arith.constant 0 : index
      %c0_12 = arith.constant 0 : index
      %13 = vector.load %arg6[%c0_11, %c0_12] : memref<8x128xf32, #tpu.memory_space<vmem>>, vector<8x128xf32>
      tpu.vector_store %arg6[%c0_11, %c0_12], %12 {strides = array<i32>} : memref<8x128xf32, #tpu.memory_space<vmem>>, vector<8x128xf32>,
    } else {
    }
    %c0 = arith.constant 0 : index
    %c0_1 = arith.constant 0 : index
    %3 = vector.load %arg6[%c0, %c0_1] : memref<8x128xf32, #tpu.memory_space<vmem>>, vector<8x128xf32>
    %c0_2 = arith.constant 0 : index
    %c0_3 = arith.constant 0 : index
    %4 = vector.load %arg2[%c0_2, %c0_3] : memref<8x512xbf16, #tpu.memory_space<vmem>>, vector<8x512xbf16>
    %c0_4 = arith.constant 0 : index
    %c0_5 = arith.constant 0 : index
    %5 = vector.load %arg3[%c0_4, %c0_5] : memref<512x128xbf16, #tpu.memory_space<vmem>>, vector<512x128xbf16>
    %cst = arith.constant dense<0.000000e+00> : vector<8x128xf32>
    %6 = tpu.matmul %4, %5, %cst {dimension_numbers = #tpu.dot_dimension_numbers<[1], [0], [0], [1], [0, 0, 1, 1], [], []>} : vector<8x512xbf16>, vector<512x128xbf16>, vector<8x128xf32> -> vector<8x128xf32>
    %7 = arith.addf %3, %6 : vector<8x128xf32>
    %c0_6 = arith.constant 0 : index
    %c0_7 = arith.constant 0 : index
    %8 = vector.load %arg6[%c0_6, %c0_7] : memref<8x128xf32, #tpu.memory_space<vmem>>, vector<8x128xf32>
    tpu.vector_store %arg6[%c0_6, %c0_7], %7 {strides = array<i32>} : memref<8x128xf32, #tpu.memory_space<vmem>>, vector<8x128xf32>,
    %c0_i32_8 = arith.constant 0 : i32
    %9 = arith.cmpi eq, %arg1, %c0_i32_8 : i32
    %10 = arith.extui %9 : i1 to i32
    %c0_i32_9 = arith.constant 0 : i32
    %11 = arith.cmpi ne, %10, %c0_i32_9 : i32
    scf.if %11 {
      %c0_10 = arith.constant 0 : index
      %c0_11 = arith.constant 0 : index
      %12 = vector.load %arg6[%c0_10, %c0_11] : memref<8x128xf32, #tpu.memory_space<vmem>>, vector<8x128xf32>
      %c0_12 = arith.constant 0 : index
      %c0_13 = arith.constant 0 : index
      %13 = vector.load %arg4[%c0_12, %c0_13] : memref<1x128xf32, #tpu.memory_space<vmem>>, vector<1x128xf32>
      %14 = vector.broadcast %13 : vector<1x128xf32> to vector<8x128xf32>
      %15 = arith.addf %12, %14 : vector<8x128xf32>
      %cst_14 = arith.constant 1.000000e-01 : f32
      %16 = vector.broadcast %cst_14 : f32 to vector<8x128xf32>
      %17 = arith.mulf %16, %15 : vector<8x128xf32>
      %18 = arith.maximumf %15, %17 : vector<8x128xf32>
      %19 = arith.truncf %18 : vector<8x128xf32> to vector<8x128xbf16>
      %c0_15 = arith.constant 0 : index
      %c0_16 = arith.constant 0 : index
      %20 = vector.load %arg5[%c0_15, %c0_16] : memref<8x128xbf16, #tpu.memory_space<vmem>>, vector<8x128xbf16>
      tpu.vector_store %arg5[%c0_15, %c0_16], %19 {strides = array<i32>} : memref<8x128xbf16, #tpu.memory_space<vmem>>, vector<8x128xbf16>,
    } else {
    }
    return
  }
  func.func @transform_0(%arg0: i32, %arg1: i32) -> (i32, i32) {
    %c0_i32 = arith.constant 0 : i32
    return %arg0, %arg1 : i32, i32
  }
  func.func @transform_1(%arg0: i32, %arg1: i32) -> (i32, i32) {
    %c0_i32 = arith.constant 0 : i32
    %c0_i32_0 = arith.constant 0 : i32
    return %arg1, %c0_i32 : i32, i32
  }
  func.func @transform_2(%arg0: i32, %arg1: i32) -> (i32, i32) {
    %c0_i32 = arith.constant 0 : i32
    %c0_i32_0 = arith.constant 0 : i32
    %c0_i32_1 = arith.constant 0 : i32
    return %c0_i32, %c0_i32_0 : i32, i32
  }
  func.func @transform_3(%arg0: i32, %arg1: i32) -> (i32, i32) {
    %c0_i32 = arith.constant 0 : i32
    %c0_i32_0 = arith.constant 0 : i32
    return %arg0, %c0_i32 : i32, i32
  }
}

module attributes {stable_mosaic.version = 11 : i64} {
  func.func @_gemm_bias_act_kernel(%arg0: i32, %arg1: i32, %arg2: memref<8x1024xbf16, #tpu.memory_space<vmem>>, %arg3: memref<1024x128xbf16, #tpu.memory_space<vmem>>, %arg4: memref<1x128xf32, #tpu.memory_space<vmem>>, %arg5: memref<8x128xf32, #tpu.memory_space<vmem>>, %arg6: memref<8x128xf32, #tpu.memory_space<vmem>>) attributes {dimension_semantics = [#tpu.dimension_semantics<parallel>, #tpu.dimension_semantics<arbitrary>], iteration_bounds = array<i64: 1, 1>, scalar_prefetch = 0 : i64, scratch_operands = 1 : i64, tpu.core_type = #tpu.core_type<tc>, window_params = [{transform_indices = @transform_0, window_bounds = array<i64: 8, 1024>}, {transform_indices = @transform_1, window_bounds = array<i64: 1024, 128>}, {pipeline_mode = #tpu.pipeline_mode<synchronous>, transform_indices = @transform_2, window_bounds = array<i64: 1, 128>}, {transform_indices = @transform_3, window_bounds = array<i64: 8, 128>}]} {
    %c0_i32 = arith.constant 0 : i32
    %0 = arith.cmpi eq, %arg1, %c0_i32 : i32
    %1 = arith.extui %0 : i1 to i32
    %c0_i32_0 = arith.constant 0 : i32
    %2 = arith.cmpi ne, %1, %c0_i32_0 : i32
    scf.if %2 {
      %cst_10 = arith.constant 0.000000e+00 : f32
      %12 = vector.broadcast %cst_10 : f32 to vector<8x128xf32>
      %c0_11 = arith.constant 0 : index
      %c0_12 = arith.constant 0 : index
      %13 = vector.load %arg6[%c0_11, %c0_12] : memref<8x128xf32, #tpu.memory_space<vmem>>, vector<8x128xf32>
      tpu.vector_store %arg6[%c0_11, %c0_12], %12 {strides = array<i32>} : memref<8x128xf32, #tpu.memory_space<vmem>>, vector<8x128xf32>,
    } else {
    }
    %c0 = arith.constant 0 : index
    %c0_1 = arith.constant 0 : index
    %3 = vector.load %arg6[%c0, %c0_1] : memref<8x128xf32, #tpu.memory_space<vmem>>, vector<8x128xf32>
    %c0_2 = arith.constant 0 : index
    %c0_3 = arith.constant 0 : index
    %4 = vector.load %arg2[%c0_2, %c0_3] : memref<8x1024xbf16, #tpu.memory_space<vmem>>, vector<8x1024xbf16>
    %c0_4 = arith.constant 0 : index
    %c0_5 = arith.constant 0 : index
    %5 = vector.load %arg3[%c0_4, %c0_5] : memref<1024x128xbf16, #tpu.memory_space<vmem>>, vector<1024x128xbf16>
    %cst = arith.constant dense<0.000000e+00> : vector<8x128xf32>
    %6 = tpu.matmul %4, %5, %cst {dimension_numbers = #tpu.dot_dimension_numbers<[1], [0], [0], [1], [0, 0, 1, 1], [], []>} : vector<8x1024xbf16>, vector<1024x128xbf16>, vector<8x128xf32> -> vector<8x128xf32>
    %7 = arith.addf %3, %6 : vector<8x128xf32>
    %c0_6 = arith.constant 0 : index
    %c0_7 = arith.constant 0 : index
    %8 = vector.load %arg6[%c0_6, %c0_7] : memref<8x128xf32, #tpu.memory_space<vmem>>, vector<8x128xf32>
    tpu.vector_store %arg6[%c0_6, %c0_7], %7 {strides = array<i32>} : memref<8x128xf32, #tpu.memory_space<vmem>>, vector<8x128xf32>,
    %c0_i32_8 = arith.constant 0 : i32
    %9 = arith.cmpi eq, %arg1, %c0_i32_8 : i32
    %10 = arith.extui %9 : i1 to i32
    %c0_i32_9 = arith.constant 0 : i32
    %11 = arith.cmpi ne, %10, %c0_i32_9 : i32
    scf.if %11 {
      %c0_10 = arith.constant 0 : index
      %c0_11 = arith.constant 0 : index
      %12 = vector.load %arg6[%c0_10, %c0_11] : memref<8x128xf32, #tpu.memory_space<vmem>>, vector<8x128xf32>
      %c0_12 = arith.constant 0 : index
      %c0_13 = arith.constant 0 : index
      %13 = vector.load %arg4[%c0_12, %c0_13] : memref<1x128xf32, #tpu.memory_space<vmem>>, vector<1x128xf32>
      %14 = vector.broadcast %13 : vector<1x128xf32> to vector<8x128xf32>
      %15 = arith.addf %12, %14 : vector<8x128xf32>
      %c0_14 = arith.constant 0 : index
      %c0_15 = arith.constant 0 : index
      %16 = vector.load %arg5[%c0_14, %c0_15] : memref<8x128xf32, #tpu.memory_space<vmem>>, vector<8x128xf32>
      tpu.vector_store %arg5[%c0_14, %c0_15], %15 {strides = array<i32>} : memref<8x128xf32, #tpu.memory_space<vmem>>, vector<8x128xf32>,
    } else {
    }
    return
  }
  func.func @transform_0(%arg0: i32, %arg1: i32) -> (i32, i32) {
    %c0_i32 = arith.constant 0 : i32
    return %arg0, %arg1 : i32, i32
  }
  func.func @transform_1(%arg0: i32, %arg1: i32) -> (i32, i32) {
    %c0_i32 = arith.constant 0 : i32
    %c0_i32_0 = arith.constant 0 : i32
    return %arg1, %c0_i32 : i32, i32
  }
  func.func @transform_2(%arg0: i32, %arg1: i32) -> (i32, i32) {
    %c0_i32 = arith.constant 0 : i32
    %c0_i32_0 = arith.constant 0 : i32
    %c0_i32_1 = arith.constant 0 : i32
    return %c0_i32, %c0_i32_0 : i32, i32
  }
  func.func @transform_3(%arg0: i32, %arg1: i32) -> (i32, i32) {
    %c0_i32 = arith.constant 0 : i32
    %c0_i32_0 = arith.constant 0 : i32
    return %arg0, %c0_i32 : i32, i32
  }
}

</mosaic_0001>

<bundles_post_ra>
// kernel: discriminator_forward.7
= control target key start
LH: loop header
LB: loop body
LE: loop exit
PB: predicated region body
PF: predicated region fallthrough
CT: control target
= control target key end

     0   :  { %s2374_s12 = smov 0   ;;  %s2376_s13 = smov 0   ;;  %s2575_s0 = inlined_call_operand.vmem [shape: bf16[2048,128], index: 0, kind: input, shape index: {}]   ;;  %s2576_s1 = inlined_call_operand.vmem [shape: bf16[128,128], index: 1, kind: input, shape index: {}]   ;;  %s2577_s2 = inlined_call_operand.vmem [shape: f32[1,128], index: 2, kind: input, shape index: {}]   ;;  %s2578_s3 = inlined_call_operand.vmem [shape: bf16[2048,128], index: 3, kind: output, shape index: {}]  }
   0x1   :  { %s2378_s14 = smov 0  }
   0x2 LB: > { %s25_s15 = sadd.s32 1, %s2348_s13  ;;  %p1763_p0 = scmp.ge.s32.totalorder %s2352_s14, 1  ;;  %s2352_s14 = sphi %s2378_s14, %s13_s14   ;;  %s2348_s13 = sphi %s2376_s13, %s2580_s13   ;;  %s2344_s12 = sphi %s2374_s12, %s2579_s12  }
   0x3   : > { %p27_p1 = scmp.ge.s32.totalorder %s25_s15, 4  ;;  %p166_p2 = scmp.lt.s32.totalorder %s2352_s14, 5 }
   0x5   : > { %s2582_s15 = smov (%p27_p1, %s25_s15), 0  ;;  %p167_p3 = pnand %p1763_p0, %p166_p2 }
   0x6   : > { %s1764_s18 = sshll.u32 (!%p167_p3), %s2344_s12, 6 }
   0x7   : > { %170 = sbr.rel (%p167_p3) target bundleno = 309 (0x135), region = 32  ;;  %p199_p4 = scmp.lt.s32.totalorder (!%p167_p3), %s1764_s18, 255 }
   0xc   : > { %v2290_v0 = vld [vmem:[%s2576_s1 + $0x38] sm:$0xff]   ;;  %v2291_v1 = vld [vmem:[%s2576_s1 + $0x30] sm:$0xff]   ;;  %s2584_s18 = smov (!%p199_p4, %s1764_s18), 255  ;;  %v2292_v2 = vld [vmem:[%s2576_s1 + $0x28] sm:$0xff]  }
   0xd   : > { %2170 = vmatprep.subr.bf16.mxu0 %v2290_v0  ;;  %2250 = vmatprep.subr.bf16.mxu1 %v2290_v0  ;;  %s1765_s23 = sshll.u32 %s2584_s18, 2  ;;  %v2293_v3 = vld [vmem:[%s2576_s1 + $0x20] sm:$0xff]   ;;  %v2294_v6 = vld [vmem:[%s2576_s1 + $0x18] sm:$0xff]   ;;  %v2295_v7 = vld [vmem:[%s2576_s1 + $0x10] sm:$0xff]  }
   0xe   : > { %2171 = vmatpush3.bf16.msra.mxu0 %v2290_v0  ;;  %2258 = vmatpush3.bf16.msra.mxu1 %v2290_v0  ;;  %s2409_s26 = scalar_lea.vmem %s2575_s0, %s1765_s23  ;;  %v2296_v8 = vld [vmem:[%s2576_s1 + $0x8] sm:$0xff]   ;;  %v2297_v9 = vld [vmem:[%s2576_s1] sm:$0xff]   ;;  %s2478_s17 = scalar_lea.vmem %s2578_s3, %s1765_s23 }
   0xf   : > { %2172 = vmatprep.subr.bf16.mxu0 %v2291_v1  ;;  %2251 = vmatprep.subr.bf16.mxu1 %v2291_v1  ;;  %v2298_v4 = vld [vmem:[%s2409_s26] sm:$0xff]   ;;  %v2300_v10 = vld [vmem:[%s2409_s26 + $0x8] sm:$0xff]   ;;  %v2302_v12 = vld [vmem:[%s2409_s26 + $0x10] sm:$0xff]  }
  0x10   : > { %v2299_v5 = vld [vmem:[%s2409_s26 + $0x80] sm:$0xff]   ;;  %2186 = vmatprep.mubr.bf16.mxu0 %v2298_v4  ;;  %v2301_v11 = vld [vmem:[%s2409_s26 + $0x88] sm:$0xff]   ;;  %v2303_v13 = vld [vmem:[%s2409_s26 + $0x90] sm:$0xff]  }
  0x11   : > { %2218 = vmatprep.mubr.bf16.mxu1 %v2299_v5  ;;  %v2304_v14 = vld [vmem:[%s2409_s26 + $0x18] sm:$0xff]   ;;  %v2306_v16 = vld [vmem:[%s2409_s26 + $0x20] sm:$0xff]   ;;  %v2308_v18 = vld [vmem:[%s2409_s26 + $0x28] sm:$0xff]  }
  0x12   : > { %2173 = vmatpush3.bf16.msra.mxu0 %v2291_v1  ;;  %2259 = vmatpush3.bf16.msra.mxu1 %v2291_v1  ;;  %v2305_v15 = vld [vmem:[%s2409_s26 + $0x98] sm:$0xff]   ;;  %v2307_v17 = vld [vmem:[%s2409_s26 + $0xa0] sm:$0xff]   ;;  %v2309_v19 = vld [vmem:[%s2409_s26 + $0xa8] sm:$0xff]  }
  0x13   : > { %2174 = vmatprep.subr.bf16.mxu0 %v2292_v2  ;;  %2252 = vmatprep.subr.bf16.mxu1 %v2292_v2  ;;  %v2310_v20 = vld [vmem:[%s2409_s26 + $0x30] sm:$0xff]   ;;  %v2312_v22 = vld [vmem:[%s2409_s26 + $0x38] sm:$0xff]   ;;  %v2314_v24 = vld [vmem:[%s2409_s26 + $0x40] sm:$0xff]  }
  0x14   : > { %v2311_v21 = vld [vmem:[%s2409_s26 + $0xb0] sm:$0xff]   ;;  %v2313_v23 = vld [vmem:[%s2409_s26 + $0xb8] sm:$0xff]   ;;  %v2315_v25 = vld [vmem:[%s2409_s26 + $0xc0] sm:$0xff]  }
  0x15   : > { %v2316_v26 = vld [vmem:[%s2409_s26 + $0x48] sm:$0xff]   ;;  %v2318_v28 = vld [vmem:[%s2409_s26 + $0x50] sm:$0xff]   ;;  %v2320_v30 = vld [vmem:[%s2409_s26 + $0x58] sm:$0xff]  }
  0x16   : > { %2175 = vmatpush3.bf16.msra.mxu0 %v2292_v2  ;;  %2260 = vmatpush3.bf16.msra.mxu1 %v2292_v2  ;;  %v2317_v27 = vld [vmem:[%s2409_s26 + $0xc8] sm:$0xff]   ;;  %v2319_v29 = vld [vmem:[%s2409_s26 + $0xd0] sm:$0xff]   ;;  %v2321_v31 = vld [vmem:[%s2409_s26 + $0xd8] sm:$0xff]  }
  0x17   : > { %2176 = vmatprep.subr.bf16.mxu0 %v2293_v3  ;;  %2253 = vmatprep.subr.bf16.mxu1 %v2293_v3  ;;  %v2322_v32 = vld [vmem:[%s2409_s26 + $0x60] sm:$0xff]   ;;  %v2324_v34 = vld [vmem:[%s2409_s26 + $0x68] sm:$0xff]   ;;  %v2326_v36 = vld [vmem:[%s2409_s26 + $0x70] sm:$0xff]  }
  0x18   : > { %v2323_v33 = vld [vmem:[%s2409_s26 + $0xe0] sm:$0xff]   ;;  %v2325_v35 = vld [vmem:[%s2409_s26 + $0xe8] sm:$0xff]   ;;  %v2327_v37 = vld [vmem:[%s2409_s26 + $0xf0] sm:$0xff]  }
  0x19   : > { %v2328_v38 = vld [vmem:[%s2409_s26 + $0x78] sm:$0xff]   ;;  %v2461_v40 = vld [vmem:[%s2577_s2] ss:$0 sm:$0xff] }
  0x1a   : > { %2177 = vmatpush3.bf16.msra.mxu0 %v2293_v3  ;;  %2261 = vmatpush3.bf16.msra.mxu1 %v2293_v3  ;;  %v2329_v39 = vld [vmem:[%s2409_s26 + $0xf8] sm:$0xff]  }
  0x1b   : > { %2178 = vmatprep.subr.bf16.mxu0 %v2294_v6  ;;  %2254 = vmatprep.subr.bf16.mxu1 %v2294_v6 }
  0x1e   : > { %2179 = vmatpush3.bf16.msra.mxu0 %v2294_v6  ;;  %2262 = vmatpush3.bf16.msra.mxu1 %v2294_v6 }
  0x1f   : > { %2180 = vmatprep.subr.bf16.mxu0 %v2295_v7  ;;  %2255 = vmatprep.subr.bf16.mxu1 %v2295_v7 }
  0x22   : > { %2181 = vmatpush3.bf16.msra.mxu0 %v2295_v7  ;;  %2263 = vmatpush3.bf16.msra.mxu1 %v2295_v7 }
  0x23   : > { %2182 = vmatprep.subr.bf16.mxu0 %v2296_v8  ;;  %2256 = vmatprep.subr.bf16.mxu1 %v2296_v8 }
  0x26   : > { %2183 = vmatpush3.bf16.msra.mxu0 %v2296_v8  ;;  %2264 = vmatpush3.bf16.msra.mxu1 %v2296_v8 }
  0x27   : > { %2184 = vmatprep.subr.bf16.mxu0 %v2297_v9  ;;  %2257 = vmatprep.subr.bf16.mxu1 %v2297_v9 }
  0x2a   : > { %2185 = vmatpush3.bf16.msra.mxu0 %v2297_v9  ;;  %2265 = vmatpush3.bf16.msra.mxu1 %v2297_v9 }
  0x2d   : > { %2187 = vmatmul.mubr.bf16.vlgmr.msra.gmra.mxu0 %v2300_v10  ;;  %2219 = vmatmul.mubr.bf16.vlgmr.msra.gmra.mxu1 %v2301_v11 }
  0x2e   : > { %2190 = vmatprep.mubr.bf16.mxu0 %v2302_v12  ;;  %2222 = vmatprep.mubr.bf16.mxu1 %v2303_v13 }
  0x35   : > { %2191 = vmatmul.mubr.bf16.gmra.mxu0 %v2304_v14  ;;  %2223 = vmatmul.mubr.bf16.gmra.mxu1 %v2305_v15 }
  0x36   : > { %2194 = vmatprep.mubr.bf16.mxu0 %v2306_v16  ;;  %2226 = vmatprep.mubr.bf16.mxu1 %v2307_v17 }
  0x3d   : > { %2195 = vmatmul.mubr.bf16.gmra.mxu0 %v2308_v18  ;;  %2227 = vmatmul.mubr.bf16.gmra.mxu1 %v2309_v19 }
  0x3e   : > { %2198 = vmatprep.mubr.bf16.mxu0 %v2310_v20  ;;  %2230 = vmatprep.mubr.bf16.mxu1 %v2311_v21 }
  0x45   : > { %2199 = vmatmul.mubr.bf16.gmra.mxu0 %v2312_v22  ;;  %2231 = vmatmul.mubr.bf16.gmra.mxu1 %v2313_v23 }
  0x46   : > { %2202 = vmatprep.mubr.bf16.mxu0 %v2314_v24  ;;  %2234 = vmatprep.mubr.bf16.mxu1 %v2315_v25 }
  0x4d   : > { %2203 = vmatmul.mubr.bf16.gmra.mxu0 %v2316_v26  ;;  %2235 = vmatmul.mubr.bf16.gmra.mxu1 %v2317_v27 }
  0x4e   : > { %2206 = vmatprep.mubr.bf16.mxu0 %v2318_v28  ;;  %2238 = vmatprep.mubr.bf16.mxu1 %v2319_v29 }
  0x55   : > { %2207 = vmatmul.mubr.bf16.gmra.mxu0 %v2320_v30  ;;  %2239 = vmatmul.mubr.bf16.gmra.mxu1 %v2321_v31 }
  0x56   : > { %2210 = vmatprep.mubr.bf16.mxu0 %v2322_v32  ;;  %2242 = vmatprep.mubr.bf16.mxu1 %v2323_v33 }
  0x5d   : > { %2211 = vmatmul.mubr.bf16.gmra.mxu0 %v2324_v34  ;;  %2243 = vmatmul.mubr.bf16.gmra.mxu1 %v2325_v35 }
  0x5e   : > { %2214 = vmatprep.mubr.bf16.mxu0 %v2326_v36  ;;  %2246 = vmatprep.mubr.bf16.mxu1 %v2327_v37 }
  0x65   : > { %2215 = vmatmul.mubr.bf16.gmra.mxu0 %v2328_v38  ;;  %2247 = vmatmul.mubr.bf16.gmra.mxu1 %v2329_v39 }
  0xed   : > { %v2188_v41 = vpop.f32.mrf.mxu0  ;;  %v2220_v42 = vpop.f32.mrf.mxu1 }
  0xee   : > { %v1165_v43 = vadd.f32 %v2188_v41, %v2461_v40  ;;  %v1197_v44 = vadd.f32 %v2220_v42, %v2461_v40 }
  0xef   : > { %v706_v45 = vpop.f32.mrf.mxu0  ;;  %v834_v46 = vpop.f32.mrf.mxu1 }
  0xf0   : > { %v1163_v47 = vadd.f32 %v2461_v40, %v706_v45  ;;  %v1195_v48 = vadd.f32 %v2461_v40, %v834_v46  ;;  %v1229_v51 = vmul.f32 0.1, %v1165_v43  ;;  %v1261_v52 = vmul.f32 0.1, %v1197_v44 }
  0xf1   : > { %v2189_v49 = vpop.f32.mrf.mxu0  ;;  %v2221_v50 = vpop.f32.mrf.mxu1 }
  0xf2   : > { %v1166_v53 = vadd.f32 %v2189_v49, %v2461_v40  ;;  %v1198_v54 = vadd.f32 %v2221_v50, %v2461_v40  ;;  %v1227_v57 = vmul.f32 0.1, %v1163_v47  ;;  %v1259_v58 = vmul.f32 0.1, %v1195_v48 }
  0xf3   : > { %v709_v55 = vpop.f32.mrf.mxu0  ;;  %v837_v56 = vpop.f32.mrf.mxu1  ;;  %v1293_v1 = vmax.f32 %v1165_v43, %v1229_v51  ;;  %v1325_v2 = vmax.f32 %v1197_v44, %v1261_v52 }
  0xf4   : > { %v1164_v59 = vadd.f32 %v2461_v40, %v709_v55  ;;  %v1196_v60 = vadd.f32 %v2461_v40, %v837_v56  ;;  %v1230_v61 = vmul.f32 0.1, %v1166_v53  ;;  %v1262_v62 = vmul.f32 0.1, %v1198_v54 }
  0xf5   : > { %v2192_v63 = vpop.f32.mrf.mxu0  ;;  %v2224_v0 = vpop.f32.mrf.mxu1  ;;  %v1291_v11 = vmax.f32 %v1163_v47, %v1227_v57  ;;  %v1323_v12 = vmax.f32 %v1195_v48, %v1259_v58 }
  0xf6   : > { %v1228_v3 = vmul.f32 0.1, %v1164_v59  ;;  %v1260_v4 = vmul.f32 0.1, %v1196_v60  ;;  %v1294_v5 = vmax.f32 %v1166_v53, %v1230_v61  ;;  %v1326_v6 = vmax.f32 %v1198_v54, %v1262_v62 }
  0xf7   : > { %v1169_v7 = vadd.f32 %v2192_v63, %v2461_v40  ;;  %v1201_v8 = vadd.f32 %v2224_v0, %v2461_v40  ;;  %v722_v9 = vpop.f32.mrf.mxu0  ;;  %v850_v10 = vpop.f32.mrf.mxu1 }
  0xf8   : > { %v1292_v13 = vmax.f32 %v1164_v59, %v1228_v3  ;;  %v1324_v14 = vmax.f32 %v1196_v60, %v1260_v4  ;;  %v1947_v15 = vpack.c.bf16 %v1294_v5, %v1293_v1  ;;  %v2027_v16 = vpack.c.bf16 %v1326_v6, %v1325_v2 }
  0xf9   : > { %v1167_v17 = vadd.f32 %v2461_v40, %v722_v9  ;;  %v1199_v18 = vadd.f32 %v2461_v40, %v850_v10  ;;  %v2193_v19 = vpop.f32.mrf.mxu0  ;;  %v2225_v20 = vpop.f32.mrf.mxu1  ;;  %v1233_v23 = vmul.f32 0.1, %v1169_v7  ;;  %v1265_v24 = vmul.f32 0.1, %v1201_v8 }
  0xfa   : > { %v1942_v21 = vpack.c.bf16 %v1292_v13, %v1291_v11  ;;  %v2022_v22 = vpack.c.bf16 %v1324_v14, %v1323_v12  ;;  %2099 = vst [vmem:[%s2478_s17 + $0x8] sm:$0xff] %v1947_v15   ;;  %2115 = vst [vmem:[%s2478_s17 + $0x88] sm:$0xff] %v2027_v16   ;;  %v1170_v25 = vadd.f32 %v2193_v19, %v2461_v40 }
  0xfb   : > { %v1202_v26 = vadd.f32 %v2225_v20, %v2461_v40  ;;  %v725_v27 = vpop.f32.mrf.mxu0  ;;  %v853_v28 = vpop.f32.mrf.mxu1  ;;  %v1231_v29 = vmul.f32 0.1, %v1167_v17  ;;  %v1263_v30 = vmul.f32 0.1, %v1199_v18  ;;  %v1297_v42 = vmax.f32 %v1169_v7, %v1233_v23 }
  0xfc   : > { %1943 = vst [vmem:[%s2478_s17] sm:$0xff] %v1942_v21   ;;  %2114 = vst [vmem:[%s2478_s17 + $0x80] sm:$0xff] %v2022_v22   ;;  %v1168_v31 = vadd.f32 %v2461_v40, %v725_v27  ;;  %v1200_v32 = vadd.f32 %v2461_v40, %v853_v28  ;;  %v1234_v33 = vmul.f32 0.1, %v1170_v25  ;;  %v1329_v43 = vmax.f32 %v1201_v8, %v1265_v24 }
  0xfd   : > { %v1266_v34 = vmul.f32 0.1, %v1202_v26  ;;  %v2196_v35 = vpop.f32.mrf.mxu0  ;;  %v2228_v36 = vpop.f32.mrf.mxu1  ;;  %v1295_v48 = vmax.f32 %v1167_v17, %v1231_v29  ;;  %v1327_v49 = vmax.f32 %v1199_v18, %v1263_v30 }
  0xfe   : > { %v1232_v37 = vmul.f32 0.1, %v1168_v31  ;;  %v1264_v38 = vmul.f32 0.1, %v1200_v32  ;;  %v1173_v39 = vadd.f32 %v2196_v35, %v2461_v40  ;;  %v1205_v41 = vadd.f32 %v2228_v36, %v2461_v40 }
  0xff   : > { %v1298_v44 = vmax.f32 %v1170_v25, %v1234_v33  ;;  %v1330_v45 = vmax.f32 %v1202_v26, %v1266_v34  ;;  %v738_v46 = vpop.f32.mrf.mxu0  ;;  %v866_v47 = vpop.f32.mrf.mxu1 }
 0x100   : > { %v1296_v50 = vmax.f32 %v1168_v31, %v1232_v37  ;;  %v1328_v51 = vmax.f32 %v1200_v32, %v1264_v38  ;;  %v1171_v54 = vadd.f32 %v2461_v40, %v738_v46  ;;  %v1203_v55 = vadd.f32 %v2461_v40, %v866_v47 }
 0x101   : > { %v1957_v52 = vpack.c.bf16 %v1298_v44, %v1297_v42  ;;  %v2037_v53 = vpack.c.bf16 %v1330_v45, %v1329_v43  ;;  %v2197_v56 = vpop.f32.mrf.mxu0  ;;  %v2229_v57 = vpop.f32.mrf.mxu1  ;;  %v1237_v60 = vmul.f32 0.1, %v1173_v39  ;;  %v1269_v61 = vmul.f32 0.1, %v1205_v41 }
 0x102   : > { %v1952_v58 = vpack.c.bf16 %v1296_v50, %v1295_v48  ;;  %v2032_v59 = vpack.c.bf16 %v1328_v51, %v1327_v49  ;;  %v1174_v62 = vadd.f32 %v2197_v56, %v2461_v40  ;;  %v1206_v63 = vadd.f32 %v2229_v57, %v2461_v40 }
 0x103   : > { %2101 = vst [vmem:[%s2478_s17 + $0x18] sm:$0xff] %v1957_v52   ;;  %2117 = vst [vmem:[%s2478_s17 + $0x98] sm:$0xff] %v2037_v53   ;;  %v741_v0 = vpop.f32.mrf.mxu0  ;;  %v869_v1 = vpop.f32.mrf.mxu1  ;;  %v1235_v2 = vmul.f32 0.1, %v1171_v54  ;;  %v1267_v3 = vmul.f32 0.1, %v1203_v55  ;;  %v1301_v10 = vmax.f32 %v1173_v39, %v1237_v60  ;;  %v1333_v11 = vmax.f32 %v1205_v41, %v1269_v61 }
 0x104   : > { %2100 = vst [vmem:[%s2478_s17 + $0x10] sm:$0xff] %v1952_v58   ;;  %2116 = vst [vmem:[%s2478_s17 + $0x90] sm:$0xff] %v2032_v59   ;;  %v1172_v4 = vadd.f32 %v2461_v40, %v741_v0  ;;  %v1204_v5 = vadd.f32 %v2461_v40, %v869_v1  ;;  %v1238_v6 = vmul.f32 0.1, %v1174_v62  ;;  %v1270_v7 = vmul.f32 0.1, %v1206_v63 }
 0x105   : > { %v2200_v8 = vpop.f32.mrf.mxu0  ;;  %v2232_v9 = vpop.f32.mrf.mxu1  ;;  %v1299_v20 = vmax.f32 %v1171_v54, %v1235_v2  ;;  %v1331_v21 = vmax.f32 %v1203_v55, %v1267_v3 }
 0x106   : > { %v1236_v12 = vmul.f32 0.1, %v1172_v4  ;;  %v1268_v13 = vmul.f32 0.1, %v1204_v5  ;;  %v1302_v14 = vmax.f32 %v1174_v62, %v1238_v6  ;;  %v1334_v15 = vmax.f32 %v1206_v63, %v1270_v7 }
 0x107   : > { %v1177_v16 = vadd.f32 %v2200_v8, %v2461_v40  ;;  %v1209_v17 = vadd.f32 %v2232_v9, %v2461_v40  ;;  %v754_v18 = vpop.f32.mrf.mxu0  ;;  %v882_v19 = vpop.f32.mrf.mxu1 }
 0x108   : > { %v1300_v22 = vmax.f32 %v1172_v4, %v1236_v12  ;;  %v1332_v23 = vmax.f32 %v1204_v5, %v1268_v13  ;;  %v1967_v24 = vpack.c.bf16 %v1302_v14, %v1301_v10  ;;  %v2047_v25 = vpack.c.bf16 %v1334_v15, %v1333_v11 }
 0x109   : > { %v1175_v26 = vadd.f32 %v2461_v40, %v754_v18  ;;  %v1207_v27 = vadd.f32 %v2461_v40, %v882_v19  ;;  %v2201_v28 = vpop.f32.mrf.mxu0  ;;  %v2233_v29 = vpop.f32.mrf.mxu1  ;;  %v1241_v32 = vmul.f32 0.1, %v1177_v16  ;;  %v1273_v33 = vmul.f32 0.1, %v1209_v17 }
 0x10a   : > { %v1962_v30 = vpack.c.bf16 %v1300_v22, %v1299_v20  ;;  %v2042_v31 = vpack.c.bf16 %v1332_v23, %v1331_v21  ;;  %2103 = vst [vmem:[%s2478_s17 + $0x28] sm:$0xff] %v1967_v24   ;;  %2119 = vst [vmem:[%s2478_s17 + $0xa8] sm:$0xff] %v2047_v25   ;;  %v1178_v34 = vadd.f32 %v2201_v28, %v2461_v40 }
 0x10b   : > { %v1210_v35 = vadd.f32 %v2233_v29, %v2461_v40  ;;  %v757_v36 = vpop.f32.mrf.mxu0  ;;  %v885_v37 = vpop.f32.mrf.mxu1  ;;  %v1239_v38 = vmul.f32 0.1, %v1175_v26  ;;  %v1271_v39 = vmul.f32 0.1, %v1207_v27  ;;  %v1305_v51 = vmax.f32 %v1177_v16, %v1241_v32 }
 0x10c   : > { %2102 = vst [vmem:[%s2478_s17 + $0x20] sm:$0xff] %v1962_v30   ;;  %2118 = vst [vmem:[%s2478_s17 + $0xa0] sm:$0xff] %v2042_v31   ;;  %v1176_v41 = vadd.f32 %v2461_v40, %v757_v36  ;;  %v1208_v42 = vadd.f32 %v2461_v40, %v885_v37  ;;  %v1242_v43 = vmul.f32 0.1, %v1178_v34  ;;  %v1337_v52 = vmax.f32 %v1209_v17, %v1273_v33 }
 0x10d   : > { %v1274_v44 = vmul.f32 0.1, %v1210_v35  ;;  %v2204_v45 = vpop.f32.mrf.mxu0  ;;  %v2236_v46 = vpop.f32.mrf.mxu1  ;;  %v1303_v57 = vmax.f32 %v1175_v26, %v1239_v38  ;;  %v1335_v58 = vmax.f32 %v1207_v27, %v1271_v39 }
 0x10e   : > { %v1240_v47 = vmul.f32 0.1, %v1176_v41  ;;  %v1272_v48 = vmul.f32 0.1, %v1208_v42  ;;  %v1181_v49 = vadd.f32 %v2204_v45, %v2461_v40  ;;  %v1213_v50 = vadd.f32 %v2236_v46, %v2461_v40 }
 0x10f   : > { %v1306_v53 = vmax.f32 %v1178_v34, %v1242_v43  ;;  %v1338_v54 = vmax.f32 %v1210_v35, %v1274_v44  ;;  %v770_v55 = vpop.f32.mrf.mxu0  ;;  %v898_v56 = vpop.f32.mrf.mxu1 }
 0x110   : > { %v1304_v59 = vmax.f32 %v1176_v41, %v1240_v47  ;;  %v1336_v60 = vmax.f32 %v1208_v42, %v1272_v48  ;;  %v1179_v63 = vadd.f32 %v2461_v40, %v770_v55  ;;  %v1211_v0 = vadd.f32 %v2461_v40, %v898_v56 }
 0x111   : > { %v1977_v61 = vpack.c.bf16 %v1306_v53, %v1305_v51  ;;  %v2057_v62 = vpack.c.bf16 %v1338_v54, %v1337_v52  ;;  %v2205_v1 = vpop.f32.mrf.mxu0  ;;  %v2237_v2 = vpop.f32.mrf.mxu1  ;;  %v1245_v5 = vmul.f32 0.1, %v1181_v49  ;;  %v1277_v6 = vmul.f32 0.1, %v1213_v50 }
 0x112   : > { %v1972_v3 = vpack.c.bf16 %v1304_v59, %v1303_v57  ;;  %v2052_v4 = vpack.c.bf16 %v1336_v60, %v1335_v58  ;;  %v1182_v7 = vadd.f32 %v2205_v1, %v2461_v40  ;;  %v1214_v8 = vadd.f32 %v2237_v2, %v2461_v40 }
 0x113   : > { %2105 = vst [vmem:[%s2478_s17 + $0x38] sm:$0xff] %v1977_v61   ;;  %2121 = vst [vmem:[%s2478_s17 + $0xb8] sm:$0xff] %v2057_v62   ;;  %v773_v9 = vpop.f32.mrf.mxu0  ;;  %v901_v10 = vpop.f32.mrf.mxu1  ;;  %v1243_v11 = vmul.f32 0.1, %v1179_v63  ;;  %v1275_v12 = vmul.f32 0.1, %v1211_v0  ;;  %v1309_v19 = vmax.f32 %v1181_v49, %v1245_v5  ;;  %v1341_v20 = vmax.f32 %v1213_v50, %v1277_v6 }
 0x114   : > { %2104 = vst [vmem:[%s2478_s17 + $0x30] sm:$0xff] %v1972_v3   ;;  %2120 = vst [vmem:[%s2478_s17 + $0xb0] sm:$0xff] %v2052_v4   ;;  %v1180_v13 = vadd.f32 %v2461_v40, %v773_v9  ;;  %v1212_v14 = vadd.f32 %v2461_v40, %v901_v10  ;;  %v1246_v15 = vmul.f32 0.1, %v1182_v7  ;;  %v1278_v16 = vmul.f32 0.1, %v1214_v8 }
 0x115   : > { %v2208_v17 = vpop.f32.mrf.mxu0  ;;  %v2240_v18 = vpop.f32.mrf.mxu1  ;;  %v1307_v29 = vmax.f32 %v1179_v63, %v1243_v11  ;;  %v1339_v30 = vmax.f32 %v1211_v0, %v1275_v12 }
 0x116   : > { %v1244_v21 = vmul.f32 0.1, %v1180_v13  ;;  %v1276_v22 = vmul.f32 0.1, %v1212_v14  ;;  %v1310_v23 = vmax.f32 %v1182_v7, %v1246_v15  ;;  %v1342_v24 = vmax.f32 %v1214_v8, %v1278_v16 }
 0x117   : > { %v1185_v25 = vadd.f32 %v2208_v17, %v2461_v40  ;;  %v1217_v26 = vadd.f32 %v2240_v18, %v2461_v40  ;;  %v786_v27 = vpop.f32.mrf.mxu0  ;;  %v914_v28 = vpop.f32.mrf.mxu1 }
 0x118   : > { %v1308_v31 = vmax.f32 %v1180_v13, %v1244_v21  ;;  %v1340_v32 = vmax.f32 %v1212_v14, %v1276_v22  ;;  %v1987_v33 = vpack.c.bf16 %v1310_v23, %v1309_v19  ;;  %v2067_v34 = vpack.c.bf16 %v1342_v24, %v1341_v20 }
 0x119   : > { %v1183_v35 = vadd.f32 %v2461_v40, %v786_v27  ;;  %v1215_v36 = vadd.f32 %v2461_v40, %v914_v28  ;;  %v2209_v37 = vpop.f32.mrf.mxu0  ;;  %v2241_v38 = vpop.f32.mrf.mxu1  ;;  %v1249_v42 = vmul.f32 0.1, %v1185_v25  ;;  %v1281_v43 = vmul.f32 0.1, %v1217_v26 }
 0x11a   : > { %v1982_v39 = vpack.c.bf16 %v1308_v31, %v1307_v29  ;;  %v2062_v41 = vpack.c.bf16 %v1340_v32, %v1339_v30  ;;  %2107 = vst [vmem:[%s2478_s17 + $0x48] sm:$0xff] %v1987_v33   ;;  %2123 = vst [vmem:[%s2478_s17 + $0xc8] sm:$0xff] %v2067_v34   ;;  %v1186_v44 = vadd.f32 %v2209_v37, %v2461_v40 }
 0x11b   : > { %v1218_v45 = vadd.f32 %v2241_v38, %v2461_v40  ;;  %v789_v46 = vpop.f32.mrf.mxu0  ;;  %v917_v47 = vpop.f32.mrf.mxu1  ;;  %v1247_v48 = vmul.f32 0.1, %v1183_v35  ;;  %v1279_v49 = vmul.f32 0.1, %v1215_v36  ;;  %v1313_v60 = vmax.f32 %v1185_v25, %v1249_v42 }
 0x11c   : > { %2106 = vst [vmem:[%s2478_s17 + $0x40] sm:$0xff] %v1982_v39   ;;  %2122 = vst [vmem:[%s2478_s17 + $0xc0] sm:$0xff] %v2062_v41   ;;  %v1184_v50 = vadd.f32 %v2461_v40, %v789_v46  ;;  %v1216_v51 = vadd.f32 %v2461_v40, %v917_v47  ;;  %v1250_v52 = vmul.f32 0.1, %v1186_v44  ;;  %v1345_v61 = vmax.f32 %v1217_v26, %v1281_v43 }
 0x11d   : > { %v1282_v53 = vmul.f32 0.1, %v1218_v45  ;;  %v2212_v54 = vpop.f32.mrf.mxu0  ;;  %v2244_v55 = vpop.f32.mrf.mxu1  ;;  %v1311_v2 = vmax.f32 %v1183_v35, %v1247_v48  ;;  %v1343_v3 = vmax.f32 %v1215_v36, %v1279_v49 }
 0x11e   : > { %v1248_v56 = vmul.f32 0.1, %v1184_v50  ;;  %v1280_v57 = vmul.f32 0.1, %v1216_v51  ;;  %v1189_v58 = vadd.f32 %v2212_v54, %v2461_v40  ;;  %v1221_v59 = vadd.f32 %v2244_v55, %v2461_v40 }
 0x11f   : > { %v1314_v62 = vmax.f32 %v1186_v44, %v1250_v52  ;;  %v1346_v63 = vmax.f32 %v1218_v45, %v1282_v53  ;;  %v802_v0 = vpop.f32.mrf.mxu0  ;;  %v930_v1 = vpop.f32.mrf.mxu1 }
 0x120   : > { %v1312_v4 = vmax.f32 %v1184_v50, %v1248_v56  ;;  %v1344_v5 = vmax.f32 %v1216_v51, %v1280_v57  ;;  %v1187_v8 = vadd.f32 %v2461_v40, %v802_v0  ;;  %v1219_v9 = vadd.f32 %v2461_v40, %v930_v1 }
 0x121   : > { %v1997_v6 = vpack.c.bf16 %v1314_v62, %v1313_v60  ;;  %v2077_v7 = vpack.c.bf16 %v1346_v63, %v1345_v61  ;;  %v2213_v10 = vpop.f32.mrf.mxu0  ;;  %v2245_v11 = vpop.f32.mrf.mxu1  ;;  %v1253_v14 = vmul.f32 0.1, %v1189_v58  ;;  %v1285_v15 = vmul.f32 0.1, %v1221_v59 }
 0x122   : > { %v1992_v12 = vpack.c.bf16 %v1312_v4, %v1311_v2  ;;  %v2072_v13 = vpack.c.bf16 %v1344_v5, %v1343_v3  ;;  %v1190_v16 = vadd.f32 %v2213_v10, %v2461_v40  ;;  %v1222_v17 = vadd.f32 %v2245_v11, %v2461_v40 }
 0x123   : > { %2109 = vst [vmem:[%s2478_s17 + $0x58] sm:$0xff] %v1997_v6   ;;  %2125 = vst [vmem:[%s2478_s17 + $0xd8] sm:$0xff] %v2077_v7   ;;  %v805_v18 = vpop.f32.mrf.mxu0  ;;  %v933_v19 = vpop.f32.mrf.mxu1  ;;  %v1251_v20 = vmul.f32 0.1, %v1187_v8  ;;  %v1283_v21 = vmul.f32 0.1, %v1219_v9  ;;  %v1317_v28 = vmax.f32 %v1189_v58, %v1253_v14  ;;  %v1349_v29 = vmax.f32 %v1221_v59, %v1285_v15 }
 0x124   : > { %2108 = vst [vmem:[%s2478_s17 + $0x50] sm:$0xff] %v1992_v12   ;;  %2124 = vst [vmem:[%s2478_s17 + $0xd0] sm:$0xff] %v2072_v13   ;;  %v1188_v22 = vadd.f32 %v2461_v40, %v805_v18  ;;  %v1220_v23 = vadd.f32 %v2461_v40, %v933_v19  ;;  %v1254_v24 = vmul.f32 0.1, %v1190_v16  ;;  %v1286_v25 = vmul.f32 0.1, %v1222_v17 }
 0x125   : > { %v2216_v26 = vpop.f32.mrf.mxu0  ;;  %v2248_v27 = vpop.f32.mrf.mxu1  ;;  %v1315_v38 = vmax.f32 %v1187_v8, %v1251_v20  ;;  %v1347_v39 = vmax.f32 %v1219_v9, %v1283_v21 }
 0x126   : > { %v1252_v30 = vmul.f32 0.1, %v1188_v22  ;;  %v1284_v31 = vmul.f32 0.1, %v1220_v23  ;;  %v1318_v32 = vmax.f32 %v1190_v16, %v1254_v24  ;;  %v1350_v33 = vmax.f32 %v1222_v17, %v1286_v25 }
 0x127   : > { %v1193_v34 = vadd.f32 %v2216_v26, %v2461_v40  ;;  %v1225_v35 = vadd.f32 %v2248_v27, %v2461_v40  ;;  %v818_v36 = vpop.f32.mrf.mxu0  ;;  %v946_v37 = vpop.f32.mrf.mxu1 }
 0x128   : > { %v1316_v41 = vmax.f32 %v1188_v22, %v1252_v30  ;;  %v1348_v42 = vmax.f32 %v1220_v23, %v1284_v31  ;;  %v2007_v43 = vpack.c.bf16 %v1318_v32, %v1317_v28  ;;  %v2087_v44 = vpack.c.bf16 %v1350_v33, %v1349_v29 }
 0x129   : > { %v1191_v45 = vadd.f32 %v2461_v40, %v818_v36  ;;  %v1223_v46 = vadd.f32 %v2461_v40, %v946_v37  ;;  %v2217_v47 = vpop.f32.mrf.mxu0  ;;  %v2249_v48 = vpop.f32.mrf.mxu1  ;;  %v1257_v51 = vmul.f32 0.1, %v1193_v34  ;;  %v1289_v52 = vmul.f32 0.1, %v1225_v35 }
 0x12a   : > { %v2002_v49 = vpack.c.bf16 %v1316_v41, %v1315_v38  ;;  %v2082_v50 = vpack.c.bf16 %v1348_v42, %v1347_v39  ;;  %2111 = vst [vmem:[%s2478_s17 + $0x68] sm:$0xff] %v2007_v43   ;;  %2127 = vst [vmem:[%s2478_s17 + $0xe8] sm:$0xff] %v2087_v44   ;;  %v1194_v53 = vadd.f32 %v2217_v47, %v2461_v40 }
 0x12b   : > { %v1226_v54 = vadd.f32 %v2249_v48, %v2461_v40  ;;  %v821_v55 = vpop.f32.mrf.mxu0  ;;  %v949_v56 = vpop.f32.mrf.mxu1  ;;  %v1255_v57 = vmul.f32 0.1, %v1191_v45  ;;  %v1287_v58 = vmul.f32 0.1, %v1223_v46  ;;  %v1321_v1 = vmax.f32 %v1193_v34, %v1257_v51 }
 0x12c   : > { %2110 = vst [vmem:[%s2478_s17 + $0x60] sm:$0xff] %v2002_v49   ;;  %2126 = vst [vmem:[%s2478_s17 + $0xe0] sm:$0xff] %v2082_v50   ;;  %v1192_v59 = vadd.f32 %v2461_v40, %v821_v55  ;;  %v1224_v60 = vadd.f32 %v2461_v40, %v949_v56  ;;  %v1258_v61 = vmul.f32 0.1, %v1194_v53  ;;  %v1353_v2 = vmax.f32 %v1225_v35, %v1289_v52 }
 0x12d   : > { %v1290_v62 = vmul.f32 0.1, %v1226_v54  ;;  %v1319_v5 = vmax.f32 %v1191_v45, %v1255_v57  ;;  %v1351_v6 = vmax.f32 %v1223_v46, %v1287_v58 }
 0x12e   : > { %v1256_v63 = vmul.f32 0.1, %v1192_v59  ;;  %v1288_v0 = vmul.f32 0.1, %v1224_v60  ;;  %v1322_v3 = vmax.f32 %v1194_v53, %v1258_v61 }
 0x12f   : > { %v1354_v4 = vmax.f32 %v1226_v54, %v1290_v62 }
 0x130   : > { %v1320_v7 = vmax.f32 %v1192_v59, %v1256_v63  ;;  %v1352_v8 = vmax.f32 %v1224_v60, %v1288_v0  ;;  %v2017_v9 = vpack.c.bf16 %v1322_v3, %v1321_v1 }
 0x131   : > { %v2097_v10 = vpack.c.bf16 %v1354_v4, %v1353_v2 }
 0x132   : > { %v2012_v11 = vpack.c.bf16 %v1320_v7, %v1319_v5  ;;  %v2092_v40 = vpack.c.bf16 %v1352_v8, %v1351_v6  ;;  %2113 = vst [vmem:[%s2478_s17 + $0x78] sm:$0xff] %v2017_v9  }
 0x133   : > { %2129 = vst [vmem:[%s2478_s17 + $0xf8] sm:$0xff] %v2097_v10  }
 0x134   : > { %2112 = vst [vmem:[%s2478_s17 + $0x70] sm:$0xff] %v2012_v11   ;;  %2128 = vst [vmem:[%s2478_s17 + $0xf0] sm:$0xff] %v2092_v40  }
 0x135 PF: > { %s13_s14 = sadd.s32 1, %s2352_s14   ;;  %s2579_s12 = smov %s2348_s13 }
 0x136   : > { %p10_p5 = scmp.ge.s32.totalorder %s13_s14, 6   ;;  %s2580_s13 = smov %s2582_s15 }
 0x138   :  { %12 = sbr.rel (!%p10_p5) target bundleno = 2 (0x2), region = 73 }

// kernel: discriminator_forward.8
= control target key start
LH: loop header
LB: loop body
LE: loop exit
PB: predicated region body
PF: predicated region fallthrough
CT: control target
= control target key end

     0   :  { %s1006_s12 = smov 0   ;;  %s1008_s13 = smov 0   ;;  %s1093_s0 = inlined_call_operand.vmem [shape: bf16[512,128], index: 0, kind: input, shape index: {}]   ;;  %s1094_s1 = inlined_call_operand.vmem [shape: bf16[128,128], index: 1, kind: input, shape index: {}]   ;;  %s1095_s2 = inlined_call_operand.vmem [shape: f32[1,128], index: 2, kind: input, shape index: {}]   ;;  %s1096_s3 = inlined_call_operand.vmem [shape: bf16[512,128], index: 3, kind: output, shape index: {}]  }
   0x1   :  { %s1010_s14 = smov 0  }
   0x2 LB: > { %s25_s15 = sadd.s32 1, %s980_s13  ;;  %p755_p0 = scmp.ge.s32.totalorder %s984_s14, 1  ;;  %s984_s14 = sphi %s1010_s14, %s13_s14   ;;  %s980_s13 = sphi %s1008_s13, %s1098_s13   ;;  %s976_s12 = sphi %s1006_s12, %s1097_s12  }
   0x3   : > { %p27_p1 = scmp.ge.s32.totalorder %s25_s15, 4  ;;  %p166_p2 = scmp.lt.s32.totalorder %s984_s14, 5 }
   0x5   : > { %s1100_s15 = smov (%p27_p1, %s25_s15), 0  ;;  %p167_p3 = pnand %p755_p0, %p166_p2 }
   0x6   : > { %s756_s18 = sshll.u32 (!%p167_p3), %s976_s12, 4 }
   0x7   : > { %170 = sbr.rel (%p167_p3) target bundleno = 261 (0x105), region = 32  ;;  %p199_p4 = scmp.lt.s32.totalorder (!%p167_p3), %s756_s18, 63 }
   0xc   : > { %v946_v0 = vld [vmem:[%s1094_s1 + $0x38] sm:$0xff]   ;;  %v947_v1 = vld [vmem:[%s1094_s1 + $0x30] sm:$0xff]   ;;  %s1102_s18 = smov (!%p199_p4, %s756_s18), 63  ;;  %v948_v2 = vld [vmem:[%s1094_s1 + $0x28] sm:$0xff]  }
   0xd   : > { %874 = vmatprep.subr.bf16.mxu0 %v946_v0  ;;  %906 = vmatprep.subr.bf16.mxu1 %v946_v0  ;;  %s757_s23 = sshll.u32 %s1102_s18, 2  ;;  %v949_v3 = vld [vmem:[%s1094_s1 + $0x20] sm:$0xff]   ;;  %v950_v6 = vld [vmem:[%s1094_s1 + $0x18] sm:$0xff]   ;;  %v951_v7 = vld [vmem:[%s1094_s1 + $0x10] sm:$0xff]  }
   0xe   : > { %875 = vmatpush3.bf16.msra.mxu0 %v946_v0  ;;  %914 = vmatpush3.bf16.msra.mxu1 %v946_v0  ;;  %s1041_s26 = scalar_lea.vmem %s1093_s0, %s757_s23  ;;  %v952_v8 = vld [vmem:[%s1094_s1 + $0x8] sm:$0xff]   ;;  %v953_v9 = vld [vmem:[%s1094_s1] sm:$0xff]   ;;  %s1074_s17 = scalar_lea.vmem %s1096_s3, %s757_s23 }
   0xf   : > { %876 = vmatprep.subr.bf16.mxu0 %v947_v1  ;;  %907 = vmatprep.subr.bf16.mxu1 %v947_v1  ;;  %v954_v4 = vld [vmem:[%s1041_s26] sm:$0xff]   ;;  %v956_v10 = vld [vmem:[%s1041_s26 + $0x8] sm:$0xff]   ;;  %v958_v12 = vld [vmem:[%s1041_s26 + $0x10] sm:$0xff]  }
  0x10   : > { %v955_v5 = vld [vmem:[%s1041_s26 + $0x20] sm:$0xff]   ;;  %890 = vmatprep.mubr.bf16.mxu0 %v954_v4  ;;  %v957_v11 = vld [vmem:[%s1041_s26 + $0x28] sm:$0xff]   ;;  %v959_v13 = vld [vmem:[%s1041_s26 + $0x30] sm:$0xff]  }
  0x11   : > { %898 = vmatprep.mubr.bf16.mxu1 %v955_v5  ;;  %v960_v14 = vld [vmem:[%s1041_s26 + $0x18] sm:$0xff]   ;;  %v776_v16 = vld [vmem:[%s1095_s2] ss:$0 sm:$0xff] }
  0x12   : > { %877 = vmatpush3.bf16.msra.mxu0 %v947_v1  ;;  %915 = vmatpush3.bf16.msra.mxu1 %v947_v1  ;;  %v961_v15 = vld [vmem:[%s1041_s26 + $0x38] sm:$0xff]  }
  0x13   : > { %878 = vmatprep.subr.bf16.mxu0 %v948_v2  ;;  %908 = vmatprep.subr.bf16.mxu1 %v948_v2 }
  0x16   : > { %879 = vmatpush3.bf16.msra.mxu0 %v948_v2  ;;  %916 = vmatpush3.bf16.msra.mxu1 %v948_v2 }
  0x17   : > { %880 = vmatprep.subr.bf16.mxu0 %v949_v3  ;;  %909 = vmatprep.subr.bf16.mxu1 %v949_v3 }
  0x1a   : > { %881 = vmatpush3.bf16.msra.mxu0 %v949_v3  ;;  %917 = vmatpush3.bf16.msra.mxu1 %v949_v3 }
  0x1b   : > { %882 = vmatprep.subr.bf16.mxu0 %v950_v6  ;;  %910 = vmatprep.subr.bf16.mxu1 %v950_v6 }
  0x1e   : > { %883 = vmatpush3.bf16.msra.mxu0 %v950_v6  ;;  %918 = vmatpush3.bf16.msra.mxu1 %v950_v6 }
  0x1f   : > { %884 = vmatprep.subr.bf16.mxu0 %v951_v7  ;;  %911 = vmatprep.subr.bf16.mxu1 %v951_v7 }
  0x22   : > { %885 = vmatpush3.bf16.msra.mxu0 %v951_v7  ;;  %919 = vmatpush3.bf16.msra.mxu1 %v951_v7 }
  0x23   : > { %886 = vmatprep.subr.bf16.mxu0 %v952_v8  ;;  %912 = vmatprep.subr.bf16.mxu1 %v952_v8 }
  0x26   : > { %887 = vmatpush3.bf16.msra.mxu0 %v952_v8  ;;  %920 = vmatpush3.bf16.msra.mxu1 %v952_v8 }
  0x27   : > { %888 = vmatprep.subr.bf16.mxu0 %v953_v9  ;;  %913 = vmatprep.subr.bf16.mxu1 %v953_v9 }
  0x2a   : > { %889 = vmatpush3.bf16.msra.mxu0 %v953_v9  ;;  %921 = vmatpush3.bf16.msra.mxu1 %v953_v9 }
  0x2d   : > { %891 = vmatmul.mubr.bf16.vlgmr.msra.gmra.mxu0 %v956_v10  ;;  %899 = vmatmul.mubr.bf16.vlgmr.msra.gmra.mxu1 %v957_v11 }
  0x2e   : > { %894 = vmatprep.mubr.bf16.mxu0 %v958_v12  ;;  %902 = vmatprep.mubr.bf16.mxu1 %v959_v13 }
  0x35   : > { %895 = vmatmul.mubr.bf16.gmra.mxu0 %v960_v14  ;;  %903 = vmatmul.mubr.bf16.gmra.mxu1 %v961_v15 }
  0xed   : > { %v892_v17 = vpop.f32.mrf.mxu0  ;;  %v900_v18 = vpop.f32.mrf.mxu1 }
  0xee   : > { %v541_v19 = vadd.f32 %v892_v17, %v776_v16  ;;  %v549_v20 = vadd.f32 %v900_v18, %v776_v16 }
  0xef   : > { %v418_v21 = vpop.f32.mrf.mxu0  ;;  %v450_v22 = vpop.f32.mrf.mxu1 }
  0xf0   : > { %v539_v23 = vadd.f32 %v776_v16, %v418_v21  ;;  %v547_v24 = vadd.f32 %v776_v16, %v450_v22  ;;  %v557_v27 = vmul.f32 0.1, %v541_v19  ;;  %v565_v28 = vmul.f32 0.1, %v549_v20 }
  0xf1   : > { %v893_v25 = vpop.f32.mrf.mxu0  ;;  %v901_v26 = vpop.f32.mrf.mxu1 }
  0xf2   : > { %v542_v29 = vadd.f32 %v893_v25, %v776_v16  ;;  %v550_v30 = vadd.f32 %v901_v26, %v776_v16  ;;  %v555_v33 = vmul.f32 0.1, %v539_v23  ;;  %v563_v34 = vmul.f32 0.1, %v547_v24 }
  0xf3   : > { %v421_v31 = vpop.f32.mrf.mxu0  ;;  %v453_v32 = vpop.f32.mrf.mxu1  ;;  %v573_v41 = vmax.f32 %v541_v19, %v557_v27  ;;  %v581_v42 = vmax.f32 %v549_v20, %v565_v28 }
  0xf4   : > { %v540_v35 = vadd.f32 %v776_v16, %v421_v31  ;;  %v548_v36 = vadd.f32 %v776_v16, %v453_v32  ;;  %v558_v37 = vmul.f32 0.1, %v542_v29  ;;  %v566_v38 = vmul.f32 0.1, %v550_v30 }
  0xf5   : > { %v896_v39 = vpop.f32.mrf.mxu0  ;;  %v904_v40 = vpop.f32.mrf.mxu1  ;;  %v571_v51 = vmax.f32 %v539_v23, %v555_v33  ;;  %v579_v52 = vmax.f32 %v547_v24, %v563_v34 }
  0xf6   : > { %v556_v43 = vmul.f32 0.1, %v540_v35  ;;  %v564_v44 = vmul.f32 0.1, %v548_v36  ;;  %v574_v45 = vmax.f32 %v542_v29, %v558_v37  ;;  %v582_v46 = vmax.f32 %v550_v30, %v566_v38 }
  0xf7   : > { %v545_v47 = vadd.f32 %v896_v39, %v776_v16  ;;  %v553_v48 = vadd.f32 %v904_v40, %v776_v16  ;;  %v434_v49 = vpop.f32.mrf.mxu0  ;;  %v466_v50 = vpop.f32.mrf.mxu1 }
  0xf8   : > { %v572_v53 = vmax.f32 %v540_v35, %v556_v43  ;;  %v580_v54 = vmax.f32 %v548_v36, %v564_v44  ;;  %v819_v55 = vpack.c.bf16 %v574_v45, %v573_v41  ;;  %v839_v56 = vpack.c.bf16 %v582_v46, %v581_v42 }
  0xf9   : > { %v543_v57 = vadd.f32 %v776_v16, %v434_v49  ;;  %v551_v58 = vadd.f32 %v776_v16, %v466_v50  ;;  %v897_v59 = vpop.f32.mrf.mxu0  ;;  %v905_v60 = vpop.f32.mrf.mxu1  ;;  %v561_v63 = vmul.f32 0.1, %v545_v47  ;;  %v569_v0 = vmul.f32 0.1, %v553_v48 }
  0xfa   : > { %v814_v61 = vpack.c.bf16 %v572_v53, %v571_v51  ;;  %v834_v62 = vpack.c.bf16 %v580_v54, %v579_v52  ;;  %851 = vst [vmem:[%s1074_s17 + $0x8] sm:$0xff] %v819_v55   ;;  %855 = vst [vmem:[%s1074_s17 + $0x28] sm:$0xff] %v839_v56   ;;  %v546_v1 = vadd.f32 %v897_v59, %v776_v16 }
  0xfb   : > { %v554_v2 = vadd.f32 %v905_v60, %v776_v16  ;;  %v437_v3 = vpop.f32.mrf.mxu0  ;;  %v469_v4 = vpop.f32.mrf.mxu1  ;;  %v559_v5 = vmul.f32 0.1, %v543_v57  ;;  %v567_v6 = vmul.f32 0.1, %v551_v58  ;;  %v577_v13 = vmax.f32 %v545_v47, %v561_v63 }
  0xfc   : > { %815 = vst [vmem:[%s1074_s17] sm:$0xff] %v814_v61   ;;  %854 = vst [vmem:[%s1074_s17 + $0x20] sm:$0xff] %v834_v62   ;;  %v544_v7 = vadd.f32 %v776_v16, %v437_v3  ;;  %v552_v8 = vadd.f32 %v776_v16, %v469_v4  ;;  %v562_v9 = vmul.f32 0.1, %v546_v1  ;;  %v585_v14 = vmax.f32 %v553_v48, %v569_v0 }
  0xfd   : > { %v570_v10 = vmul.f32 0.1, %v554_v2  ;;  %v575_v18 = vmax.f32 %v543_v57, %v559_v5  ;;  %v583_v19 = vmax.f32 %v551_v58, %v567_v6 }
  0xfe   : > { %v560_v11 = vmul.f32 0.1, %v544_v7  ;;  %v568_v12 = vmul.f32 0.1, %v552_v8  ;;  %v578_v15 = vmax.f32 %v546_v1, %v562_v9 }
  0xff   : > { %v586_v17 = vmax.f32 %v554_v2, %v570_v10 }
 0x100   : > { %v576_v20 = vmax.f32 %v544_v7, %v560_v11  ;;  %v584_v21 = vmax.f32 %v552_v8, %v568_v12  ;;  %v829_v22 = vpack.c.bf16 %v578_v15, %v577_v13 }
 0x101   : > { %v849_v23 = vpack.c.bf16 %v586_v17, %v585_v14 }
 0x102   : > { %v824_v24 = vpack.c.bf16 %v576_v20, %v575_v18  ;;  %v844_v16 = vpack.c.bf16 %v584_v21, %v583_v19  ;;  %853 = vst [vmem:[%s1074_s17 + $0x18] sm:$0xff] %v829_v22  }
 0x103   : > { %857 = vst [vmem:[%s1074_s17 + $0x38] sm:$0xff] %v849_v23  }
 0x104   : > { %852 = vst [vmem:[%s1074_s17 + $0x10] sm:$0xff] %v824_v24   ;;  %856 = vst [vmem:[%s1074_s17 + $0x30] sm:$0xff] %v844_v16  }
 0x105 PF: > { %s13_s14 = sadd.s32 1, %s984_s14   ;;  %s1097_s12 = smov %s980_s13 }
 0x106   : > { %p10_p5 = scmp.ge.s32.totalorder %s13_s14, 6   ;;  %s1098_s13 = smov %s1100_s15 }
 0x108   :  { %12 = sbr.rel (!%p10_p5) target bundleno = 2 (0x2), region = 73 }

// kernel: discriminator_forward.9
= control target key start
LH: loop header
LB: loop body
LE: loop exit
PB: predicated region body
PF: predicated region fallthrough
CT: control target
= control target key end

     0   :  { %s769_s12 = smov 0   ;;  %s771_s13 = smov 0   ;;  %s857_s0 = inlined_call_operand.vmem [shape: bf16[128,256], index: 0, kind: input, shape index: {}]   ;;  %s858_s1 = inlined_call_operand.vmem [shape: bf16[256,128], index: 1, kind: input, shape index: {}]   ;;  %s859_s2 = inlined_call_operand.vmem [shape: f32[1,128], index: 2, kind: input, shape index: {}]   ;;  %s860_s3 = inlined_call_operand.vmem [shape: bf16[128,128], index: 3, kind: output, shape index: {}]  }
   0x1   :  { %s773_s14 = smov 0  }
   0x2 LB: > { %s25_s15 = sadd.s32 1, %s743_s13  ;;  %p586_p0 = scmp.ge.s32.totalorder %s747_s14, 1  ;;  %s747_s14 = sphi %s773_s14, %s13_s14   ;;  %s743_s13 = sphi %s771_s13, %s862_s13   ;;  %s739_s12 = sphi %s769_s12, %s861_s12  }
   0x3   : > { %p27_p1 = scmp.ge.s32.totalorder %s25_s15, 4  ;;  %p169_p2 = scmp.lt.s32.totalorder %s747_s14, 5 }
   0x5   : > { %s864_s15 = smov (%p27_p1, %s25_s15), 0  ;;  %p170_p3 = pnand %p586_p0, %p169_p2 }
   0x6   : > { %s587_s18 = sshll.u32 (!%p170_p3), %s739_s12, 2 }
   0x7   : > { %173 = sbr.rel (%p170_p3) target bundleno = 255 (0xff), region = 32  ;;  %p205_p4 = scmp.lt.s32.totalorder (!%p170_p3), %s587_s18, 15 }
   0xc   : > { %v703_v0 = vld [vmem:[%s858_s1 + $0x78] sm:$0xff]   ;;  %v705_v2 = vld [vmem:[%s858_s1 + $0x70] sm:$0xff]   ;;  %v707_v4 = vld [vmem:[%s858_s1 + $0x68] sm:$0xff]   ;;  %s866_s18 = smov (!%p205_p4, %s587_s18), 15 }
   0xd   : > { %v704_v1 = vld [vmem:[%s858_s1 + $0x38] sm:$0xff]   ;;  %635 = vmatprep.subr.bf16.mxu0 %v703_v0  ;;  %663 = vmatprep.subr.bf16.mxu1 %v703_v0  ;;  %v706_v3 = vld [vmem:[%s858_s1 + $0x30] sm:$0xff]   ;;  %v708_v5 = vld [vmem:[%s858_s1 + $0x28] sm:$0xff]   ;;  %s619_s6 = sshll.u32 %s866_s18, 3  ;;  %s591_s5 = sshll.u32 %s866_s18, 2 }
   0xe   : > { %636 = vmatpush3.bf16.msra.mxu0 %v704_v1  ;;  %671 = vmatpush3.bf16.msra.mxu1 %v704_v1  ;;  %v709_v6 = vld [vmem:[%s858_s1 + $0x60] sm:$0xff]   ;;  %v711_v8 = vld [vmem:[%s858_s1 + $0x58] sm:$0xff]   ;;  %s212_s11 = scalar_lea.vmem %s857_s0, %s619_s6  ;;  %v713_v10 = vld [vmem:[%s858_s1 + $0x50] sm:$0xff]   ;;  %s225_s8 = scalar_lea.vmem %s860_s3, %s591_s5 }
   0xf   : > { %637 = vmatprep.subr.bf16.mxu0 %v705_v2  ;;  %664 = vmatprep.subr.bf16.mxu1 %v705_v2  ;;  %v710_v7 = vld [vmem:[%s858_s1 + $0x20] sm:$0xff]   ;;  %v712_v9 = vld [vmem:[%s858_s1 + $0x18] sm:$0xff]   ;;  %v714_v13 = vld [vmem:[%s858_s1 + $0x10] sm:$0xff]  }
  0x10   : > { %v721_v11 = vld [vmem:[%s212_s11 + $0x4] ss:$8 sps:$4 sm:$0xff]   ;;  %v724_v12 = vld [vmem:[%s212_s11 + $0x14] ss:$8 sps:$4 sm:$0xff]   ;;  %v719_v18 = vld [vmem:[%s212_s11] ss:$8 sps:$4 sm:$0xff]  }
  0x11   : > { %v715_v14 = vld [vmem:[%s858_s1 + $0x48] sm:$0xff]   ;;  %424 = vmatprep.mubr.bf16.mxu0 %v721_v11  ;;  %432 = vmatprep.mubr.bf16.mxu1 %v724_v12  ;;  %v717_v16 = vld [vmem:[%s858_s1 + $0x40] sm:$0xff]   ;;  %v722_v19 = vld [vmem:[%s212_s11 + $0x10] ss:$8 sps:$4 sm:$0xff]  }
  0x12   : > { %638 = vmatpush3.bf16.msra.mxu0 %v706_v3  ;;  %672 = vmatpush3.bf16.msra.mxu1 %v706_v3  ;;  %v716_v15 = vld [vmem:[%s858_s1 + $0x8] sm:$0xff]   ;;  %v718_v17 = vld [vmem:[%s858_s1] sm:$0xff]  }
  0x13   : > { %639 = vmatprep.subr.bf16.mxu0 %v707_v4  ;;  %665 = vmatprep.subr.bf16.mxu1 %v707_v4  ;;  %v612_v23 = vld [vmem:[%s859_s2] ss:$0 sm:$0xff] }
  0x16   : > { %640 = vmatpush3.bf16.msra.mxu0 %v708_v5  ;;  %673 = vmatpush3.bf16.msra.mxu1 %v708_v5 }
  0x17   : > { %641 = vmatprep.subr.bf16.mxu0 %v709_v6  ;;  %666 = vmatprep.subr.bf16.mxu1 %v709_v6 }
  0x1a   : > { %642 = vmatpush3.bf16.msra.mxu0 %v710_v7  ;;  %674 = vmatpush3.bf16.msra.mxu1 %v710_v7 }
  0x1b   : > { %643 = vmatprep.subr.bf16.mxu0 %v711_v8  ;;  %667 = vmatprep.subr.bf16.mxu1 %v711_v8 }
  0x1e   : > { %644 = vmatpush3.bf16.msra.mxu0 %v712_v9  ;;  %675 = vmatpush3.bf16.msra.mxu1 %v712_v9 }
  0x1f   : > { %645 = vmatprep.subr.bf16.mxu0 %v713_v10  ;;  %668 = vmatprep.subr.bf16.mxu1 %v713_v10 }
  0x22   : > { %646 = vmatpush3.bf16.msra.mxu0 %v714_v13  ;;  %676 = vmatpush3.bf16.msra.mxu1 %v714_v13 }
  0x23   : > { %647 = vmatprep.subr.bf16.mxu0 %v715_v14  ;;  %669 = vmatprep.subr.bf16.mxu1 %v715_v14 }
  0x26   : > { %648 = vmatpush3.bf16.msra.mxu0 %v716_v15  ;;  %677 = vmatpush3.bf16.msra.mxu1 %v716_v15 }
  0x27   : > { %649 = vmatprep.subr.bf16.mxu0 %v717_v16  ;;  %670 = vmatprep.subr.bf16.mxu1 %v717_v16 }
  0x2a   : > { %650 = vmatpush3.bf16.msra.mxu0 %v718_v17  ;;  %678 = vmatpush3.bf16.msra.mxu1 %v718_v17 }
  0x2d   : > { %425 = vmatmul.mubr.bf16.vlgmr.msra.gmra.mxu0 %v719_v18  ;;  %433 = vmatmul.mubr.bf16.vlgmr.msra.gmra.mxu1 %v722_v19 }
  0xed   : > { %v651_v20 = vpop.f32.mrf.mxu0  ;;  %v657_v21 = vpop.f32.mrf.mxu1 }
  0xef   : > { %v652_v22 = vpop.f32.mrf.mxu0  ;;  %v658_v24 = vpop.f32.mrf.mxu1 }
  0xf0   : > { %v653_v25 = vadd.f32 %v652_v22, %v651_v20  ;;  %v659_v26 = vadd.f32 %v658_v24, %v657_v21 }
  0xf1   : > { %v654_v27 = vpop.f32.mrf.mxu0  ;;  %v660_v28 = vpop.f32.mrf.mxu1 }
  0xf2   : > { %v463_v29 = vadd.f32 %v653_v25, %v612_v23  ;;  %v465_v30 = vadd.f32 %v659_v26, %v612_v23 }
  0xf3   : > { %v655_v31 = vpop.f32.mrf.mxu0  ;;  %v661_v32 = vpop.f32.mrf.mxu1 }
  0xf4   : > { %v656_v33 = vadd.f32 %v655_v31, %v654_v27  ;;  %v662_v34 = vadd.f32 %v661_v32, %v660_v28  ;;  %v467_v35 = vmul.f32 0.1, %v463_v29  ;;  %v469_v36 = vmul.f32 0.1, %v465_v30 }
  0xf6   : > { %v464_v37 = vadd.f32 %v656_v33, %v612_v23  ;;  %v466_v38 = vadd.f32 %v662_v34, %v612_v23  ;;  %v471_v41 = vmax.f32 %v463_v29, %v467_v35  ;;  %v473_v42 = vmax.f32 %v465_v30, %v469_v36 }
  0xf8   : > { %v468_v39 = vmul.f32 0.1, %v464_v37  ;;  %v470_v40 = vmul.f32 0.1, %v466_v38 }
  0xfa   : > { %v472_v43 = vmax.f32 %v464_v37, %v468_v39  ;;  %v474_v44 = vmax.f32 %v466_v38, %v470_v40 }
  0xfc   : > { %v627_v45 = vpack.c.bf16 %v472_v43, %v471_v41  ;;  %v632_v46 = vpack.c.bf16 %v474_v44, %v473_v42 }
  0xfe   : > { %628 = vst [vmem:[%s225_s8] sm:$0xff] %v627_v45   ;;  %634 = vst [vmem:[%s225_s8 + $0x8] sm:$0xff] %v632_v46  }
  0xff PF: > { %s13_s14 = sadd.s32 1, %s747_s14   ;;  %s861_s12 = smov %s743_s13 }
 0x100   : > { %p10_p5 = scmp.ge.s32.totalorder %s13_s14, 6   ;;  %s862_s13 = smov %s864_s15 }
 0x102   :  { %12 = sbr.rel (!%p10_p5) target bundleno = 2 (0x2), region = 73 }

// kernel: discriminator_forward.10
= control target key start
LH: loop header
LB: loop body
LE: loop exit
PB: predicated region body
PF: predicated region fallthrough
CT: control target
= control target key end

     0   :  { %s1459_s0 = inlined_call_operand.vmem [shape: bf16[2,64,32], index: 0, kind: input, shape index: {}]   ;;  %s1460_s1 = inlined_call_operand.vmem [shape: bf16[32,384], index: 1, kind: input, shape index: {}]   ;;  %s1461_s2 = inlined_call_operand.vmem [shape: f32[1,384], index: 2, kind: input, shape index: {}]   ;;  %s1462_s3 = inlined_call_operand.<no memory space> [shape: f32[1], index: 3, kind: input, shape index: {}]   ;;  %s1463_s4 = inlined_call_operand.vmem [shape: bf16[2,64,32], index: 4, kind: output, shape index: {0}]   ;;  %s1464_s5 = inlined_call_operand.hbm [shape: f32[2,64,64], index: 5, kind: output, shape index: {1}]  }
   0x1   :  { %11 = sst [smem:[#allocation2]] %s1462_s3 }
   0x2   :  { %12 = vsyncpa [#allocation4], 0 }
   0x3   :  { %14 = vsyncpa [#allocation4 + $0x1], 0  ;;  %s1215_s20 = smov 0   ;;  %s1217_s21 = smov 0  }
   0x4   :  { %s1219_s22 = smov 0   ;;  %s1221_s23 = smov 0  }
   0x5 LB: > { %s1236_s3 = sadd.s32 4294967295, %s1176_s23   ;;  %s905_s24 = sadd.s32 4294967294, %s1176_s23   ;;  %s1176_s23 = sphi %s1221_s23, %s1470_s23   ;;  %s1172_s22 = sphi %s1219_s22, %s1469_s22   ;;  %s1168_s21 = sphi %s1217_s21, %s1468_s21   ;;  %s1164_s20 = sphi %s1215_s20, %s1467_s20  }
   0x6   : > { %s1240_s25 = sadd.s32 1, %s1176_s23   ;;  %s142_s26 = sadd.s32 1, %s1172_s22 }
   0x7   : > { %s139_s27 = ssub.s32 %s1176_s23, %s1240_s25  ;;  %p152_p0 = scmp.ne.s32.totalorder %s1172_s22, %s1168_s21 }
   0x8   : > { %p140_p1 = scmp.eq.s32.totalorder %s139_s27, 0  ;;  %p153_p2 = scmp.eq.s32.totalorder %s1236_s3, 1 }
   0x9   : > { %p158_p3 = scmp.ne.s32.totalorder %s1168_s21, %s1164_s20  ;;  %p159_p4 = scmp.eq.s32.totalorder %s905_s24, 1 }
   0xa   : > { %s1251_s28 = scalar_select %p140_p1, %s1172_s22, %s142_s26  }
   0xb   : > { %p1253_p5 = por %p153_p2, %p152_p0  ;;  %p1257_p6 = por %p159_p4, %p158_p3 }
   0xc   : > { %p908_p7 = scmp.ge.s32.totalorder %s1176_s23, 1  ;;  %p194_p8 = scmp.lt.s32.totalorder %s1176_s23, 3 }
   0xe   : > { %p195_p9 = pnand %p908_p7, %p194_p8 }
   0xf   : > { %p227_p10 = scmp.lt.s32.totalorder (!%p195_p9), %s1236_s3, 1  ;;  %s224_s8 = sand.u32 (!%p195_p9), 1, %s1168_s21  }
  0x10   : > { %198 = sbr.rel (%p195_p9) target bundleno = 1021 (0x3fd), region = 36  ;;  %s909_s9 = sshll.u32 (!%p195_p9), %s224_s8, 6 }
  0x11   : > { %s1355_s10 = scalar_lea.vmem (!%p195_p9), [#allocation3], %s909_s9  ;;  %s959_s11 = sshll.u32 (!%p195_p9), %s1236_s3, 10 }
  0x12   : > { %s818_s13 = sshll.u32 (!%p195_p9), %s1355_s10, 4  ;;  %s1382_s17 = scalar_lea.hbm (!%p195_p9), %s1464_s5, %s959_s11  ;;  %s1384_s13 = int_to_ptr.vmem [resolvable:$true] %s818_s13 }
  0x13   : > { %s1116_s19 = scalar_lea.vmem (!%p195_p9), %s1384_s13, 1024 }
  0x14   : > { %p1117_p11 = scmp.ne.s32.totalorder (!%p195_p9), %s1384_s13, %s1116_s19 }
  0x15   : > { %v1068_v0 = vld [vmem:[%s1460_s1 + $0x1c] ss:$12 sps:$4 sm:$0xff]   ;;  %v1070_v1 = vld [vmem:[%s1460_s1 + $0x18] ss:$12 sps:$4 sm:$0xff]   ;;  %v1178_v2 = vmov 0   ;;  %s1274_s12 = scalar_select %p227_p10, %s1236_s3, 1  ;;  %v256_v9 = vlaneseq }
  0x16   : > { %368 = vmatprep.mubr.bf16.mxu0 %v1178_v2  ;;  %348 = vmatprep.subr.bf16.mxu0 %v1068_v0  ;;  %v1071_v3 = vld [vmem:[%s1460_s1 + $0x4] ss:$12 sps:$4 sm:$0xff]   ;;  %v1073_v4 = vld [vmem:[%s1460_s1] ss:$12 sps:$4 sm:$0xff]   ;;  %vm323_vm0 = vcmask 261120   ;;  %vm547_vm1 = vcmask 523264   ;;  %p1118_p12 = pnand %p1117_p11, %p1253_p5 }
  0x17   : > { %349 = vmatpush1.bf16.msra.mxu0 %v1070_v1  ;;  %s949_s15 = sshll.u32 %s1274_s12, 5  ;;  %v1303_v10 = vshrl.u32 %v256_v9, 7  ;;  %v1309_v12 = vld [vmem:[%s1461_s2] sm:$0x7]  ;;  %v1079_v57 = vld [vmem:[%s1460_s1 + $0x8] ss:$12 sps:$4 sm:$0xff]  }
  0x18   : > { %350 = vmatprep.subr.bf16.mxu0 %v1071_v3  ;;  %s231_s18 = scalar_lea.vmem %s1459_s0, %s949_s15  ;;  %v1078_v56 = vld [vmem:[%s1460_s1 + $0x20] ss:$12 sps:$4 sm:$0xff]   ;;  %p1119_p13 = pneg %p1118_p12 }
  0x19   : > { %v1285_v5 = vld [vmem:[%s231_s18] sm:$0xff]   ;;  %v1291_v6 = vld [vmem:[%s231_s18 + $0x8] sm:$0xff]   ;;  %v1295_v7 = vld [vmem:[%s231_s18 + $0x10] sm:$0xff]   ;;  %v258_v11 = vsub.s32 0, %v1303_v10  ;;  %v262_v30 = vsub.s32 1, %v1303_v10  ;;  %982 = vmatprep.subr.bf16.mxu1 %v1078_v56  ;;  %s1179_s3 = smov [#allocation3]  }
  0x1a   : > { %986 = vmatprep.mubr.msk.bf16.mxu1 %vm323_vm0, %v1285_v5  ;;  %v1299_v8 = vld [vmem:[%s231_s18 + $0x18] sm:$0xff]   ;;  %983 = vmatpush3.bf16.msra.mxu1 %v1078_v56  ;;  %s1388_s18 = scalar_lea.sflag [#allocation4], %s224_s8  ;;  %s1120_s24 = sshll.u32 %s1179_s3, 4  ;;  %s1121_s24 = int_to_ptr.vmem [resolvable:$false] %s1120_s24 }
  0x1b   : > { %351 = vmatpush1.bf16.msra.mxu0 %v1073_v4  ;;  %v259_v14 = vrot.slane %v1309_v12, %v258_v11  ;;  %v263_v33 = vrot.slane %v1309_v12, %v262_v30  ;;  %984 = vmatprep.subr.bf16.mxu1 %v1079_v57  ;;  %s1122_s26 = scalar_lea.vmem %s1121_s24, 2048  ;;  %p1123_p0 = scmp.lt.s32.totalorder %s1384_s13, %s1121_s24 }
  0x1c   : > { %p1124_p1 = scmp.lt.s32.totalorder %s1122_s26, %s1116_s19 }
  0x1e   : > { %924 = vmatmul.mubr.msk.bf16.vlgmr.msra.gmra.mxu0 %vm323_vm0, %v1285_v5  ;;  %985 = vmatpush3.bf16.msra.mxu1 %v1079_v57  ;;  %p1125_p2 = por %p1124_p1, %p1123_p0 }
  0x1f   : > { %378 = vmatprep.mubr.bf16.mxu0 %v1178_v2 }
  0x20   : > { %p1126_p3 = pnand %p1125_p2, %p1119_p13 }
  0x21   : > { %987 = vmatmul.mubr.msk.bf16.vlgmr.msra.gmra.mxu1 %vm323_vm0, %v1291_v6 }
  0x22   : > { %990 = vmatprep.mubr.msk.bf16.mxu1 %vm323_vm0, %v1295_v7 }
  0x26   : > { %925 = vmatmul.mubr.msk.bf16.gmra.mxu0 %vm323_vm0, %v1291_v6 }
  0x27   : > { %388 = vmatprep.mubr.bf16.mxu0 %v1178_v2 }
  0x29   : > { %991 = vmatmul.mubr.msk.bf16.gmra.mxu1 %vm323_vm0, %v1299_v8 }
  0x2e   : > { %926 = vmatmul.mubr.msk.bf16.gmra.mxu0 %vm323_vm0, %v1295_v7 }
  0x2f   : > { %398 = vmatprep.mubr.bf16.mxu0 %v1178_v2 }
  0x36   : > { %927 = vmatmul.mubr.msk.bf16.gmra.mxu0 %vm323_vm0, %v1299_v8 }
  0xde   : > { %v370_v13 = vpop.f32.mrf.mxu0 }
  0xdf   : > { %v371_v17 = vadd.f32 %v370_v13, %v259_v14 }
  0xe0   : > { %v372_v15 = vpop.f32.mrf.mxu0 }
  0xe1   : > { %v373_v45 = vadd.f32 %v372_v15, %v263_v33 }
  0xe2   : > { %v374_v16 = vpop.f32.mrf.mxu0 }
  0xe3   : > { %v375_v18 = vadd.f32 %v374_v16, %v259_v14  ;;  %v988_v16 = vpop.f32.mrf.mxu1 }
  0xe4   : > { %v376_v19 = vpop.f32.mrf.mxu0 }
  0xe5   : > { %v474_v20 = vpack.c.bf16 %v375_v18, %v371_v17  ;;  %v377_v44 = vadd.f32 %v376_v19, %v263_v33  ;;  %v443_v17 = vpop.f32.mrf.mxu1  ;;  %v266_v18 = vsub.s32 2, %v1303_v10 }
  0xe6   : > { %v380_v21 = vpop.f32.mrf.mxu0 }
  0xe7   : > { %1002 = vmatprep.mubr.bf16.mxu0 %v474_v20  ;;  %v478_v46 = vpack.c.bf16 %v377_v44, %v373_v45  ;;  %v381_v49 = vadd.f32 %v380_v21, %v259_v14  ;;  %v989_v19 = vpop.f32.mrf.mxu1  ;;  %v267_v21 = vrot.slane %v1309_v12, %v266_v18 }
  0xe8   : > { %v382_v22 = vpop.f32.mrf.mxu0 }
  0xe9   : > { %v383_v42 = vadd.f32 %v382_v22, %v263_v33  ;;  %v446_v20 = vpop.f32.mrf.mxu1  ;;  %v455_v30 = vadd.f32 %v989_v19, %v267_v21 }
  0xea   : > { %v384_v23 = vpop.f32.mrf.mxu0 }
  0xeb   : > { %v385_v47 = vadd.f32 %v384_v23, %v259_v14  ;;  %v992_v22 = vpop.f32.mrf.mxu1 }
  0xec   : > { %v386_v24 = vpop.f32.mrf.mxu0 }
  0xed   : > { %v387_v41 = vadd.f32 %v386_v24, %v263_v33  ;;  %v475_v51 = vpack.c.bf16 %v385_v47, %v381_v49  ;;  %v459_v23 = vpop.f32.mrf.mxu1  ;;  %v468_v24 = vadd.f32 %v992_v22, %v267_v21 }
  0xee   : > { %v390_v25 = vpop.f32.mrf.mxu0 }
  0xef   : > { %v479_v43 = vpack.c.bf16 %v387_v41, %v383_v42  ;;  %v391_v50 = vadd.f32 %v390_v25, %v259_v14  ;;  %v993_v25 = vpop.f32.mrf.mxu1 }
  0xf0   : > { %v392_v26 = vpop.f32.mrf.mxu0 }
  0xf1   : > { %v393_v38 = vadd.f32 %v392_v26, %v263_v33  ;;  %v460_v26 = vadd.f32 %v459_v23, %v267_v21 }
  0xf2   : > { %v394_v27 = vpop.f32.mrf.mxu0 }
  0xf3   : > { %v395_v48 = vadd.f32 %v394_v27, %v259_v14  ;;  %v471_v27 = vadd.f32 %v993_v25, %v267_v21 }
  0xf4   : > { %v396_v28 = vpop.f32.mrf.mxu0 }
  0xf5   : > { %v397_v35 = vadd.f32 %v396_v28, %v263_v33  ;;  %v476_v52 = vpack.c.bf16 %v395_v48, %v391_v50  ;;  %v462_v28 = vpop.f32.mrf.mxu1 }
  0xf6   : > { %v400_v29 = vpop.f32.mrf.mxu0 }
  0xf7   : > { %v480_v40 = vpack.c.bf16 %v397_v35, %v393_v38  ;;  %v401_v54 = vadd.f32 %v400_v29, %v259_v14  ;;  %v452_v29 = vadd.f32 %v988_v16, %v267_v21  ;;  %v447_v35 = vadd.f32 %v446_v20, %v267_v21 }
  0xf8   : > { %v402_v31 = vpop.f32.mrf.mxu0 }
  0xf9   : > { %v403_v36 = vadd.f32 %v402_v31, %v263_v33  ;;  %v643_v31 = vpack.c.bf16 %v471_v27, %v468_v24  ;;  %v641_v10 = vpack.c.bf16 %v455_v30, %v452_v29 }
  0xfa   : > { %v404_v32 = vpop.f32.mrf.mxu0 }
  0xfb   : > { %v405_v53 = vadd.f32 %v404_v32, %v259_v14  ;;  %v463_v32 = vadd.f32 %v462_v28, %v267_v21  ;;  %1010 = vmatprep.subr.bf16.mxu1 %v643_v31 }
  0xfc   : > { %v406_v34 = vpop.f32.mrf.mxu0  ;;  %1011 = vmatpush3.bf16.msra.mxu1 %v643_v31 }
  0xfd   : > { %v407_v37 = vadd.f32 %v406_v34, %v263_v33  ;;  %v477_v55 = vpack.c.bf16 %v405_v53, %v401_v54  ;;  %v642_v33 = vpack.c.bf16 %v463_v32, %v460_v26  ;;  %v444_v34 = vadd.f32 %v443_v17, %v267_v21 }
  0xff   : > { %v481_v39 = vpack.c.bf16 %v407_v37, %v403_v36  ;;  %1012 = vmatprep.subr.bf16.mxu1 %v642_v33  ;;  %v640_v12 = vpack.c.bf16 %v447_v35, %v444_v34 }
 0x100   : > { %1013 = vmatpush3.bf16.msra.mxu1 %v642_v33 }
 0x101   : > { %994 = vmatprep.subr.bf16.mxu0 %v481_v39  ;;  %1014 = vmatprep.subr.bf16.mxu1 %v641_v10 }
 0x102   : > { %995 = vmatpush3.bf16.xpose.msra.mxu0 %v481_v39 }
 0x103   : > { %996 = vmatprep.subr.bf16.mxu0 %v480_v40 }
 0x104   : > { %1015 = vmatpush3.bf16.msra.mxu1 %v641_v10 }
 0x105   : > { %1016 = vmatprep.subr.bf16.mxu1 %v640_v12 }
 0x108   : > { %1017 = vmatpush3.bf16.msra.mxu1 %v640_v12 }
 0x10a   : > { %997 = vmatpush3.bf16.xpose.msra.mxu0 %v480_v40 }
 0x10b   : > { %998 = vmatprep.subr.bf16.mxu0 %v479_v43 }
 0x112   : > { %999 = vmatpush3.bf16.xpose.msra.mxu0 %v479_v43 }
 0x113   : > { %1000 = vmatprep.subr.bf16.mxu0 %v478_v46 }
 0x11a   : > { %1001 = vmatpush3.bf16.xpose.msra.mxu0 %v478_v46 }
 0x121   : > { %1003 = vmatmul.mubr.bf16.vlgmr.msra.gmra.mxu0 %v475_v51 }
 0x122   : > { %1006 = vmatprep.mubr.bf16.mxu0 %v476_v52 }
 0x129   : > { %1007 = vmatmul.mubr.bf16.gmra.mxu0 %v477_v55 }
 0x1e1   : > { %v1004_v58 = vpop.f32.mrf.mxu0 }
 0x1e2   : > { %v554_v59 = vsel %vm547_vm1, %v1004_v58, -inf }
 0x1e3   : > { %555 = vmax.xlane.f32.xlu1 %v554_v59  ;;  %v516_v60 = vpop.f32.mrf.mxu0 }
 0x1e4   : > { %v548_v61 = vsel %vm547_vm1, %v516_v60, -inf }
 0x1e5   : > { %549 = vmax.xlane.f32.xlu0 %v548_v61  ;;  %v1005_v62 = vpop.f32.mrf.mxu0 }
 0x1e6   : > { %v557_v63 = vsel %vm547_vm1, %v1005_v62, -inf }
 0x1e7   : > { %558 = vmax.xlane.f32.xlu1 %v557_v63  ;;  %v519_v0 = vpop.f32.mrf.mxu0 }
 0x1e8   : > { %v551_v1 = vsel %vm547_vm1, %v519_v0, -inf }
 0x1e9   : > { %552 = vmax.xlane.f32.xlu0 %v551_v1  ;;  %v1330_v2 = vpop.f32.mrf.mxu0 }
 0x1ea   : > { %v566_v13 = vsel %vm547_vm1, %v1330_v2, -inf }
 0x1eb   : > { %v532_v3 = vpop.f32.mrf.mxu0 }
 0x1ec   : > { %v560_v4 = vsel %vm547_vm1, %v532_v3, -inf }
 0x1ed   : > { %561 = vmax.xlane.f32.xlu0 %v560_v4  ;;  %v1333_v9 = vpop.f32.mrf.mxu0 }
 0x1ee   : > { %v569_v15 = vsel %vm547_vm1, %v1333_v9, -inf }
 0x1ef   : > { %v535_v11 = vpop.f32.mrf.mxu0 }
 0x1f0   : > { %v563_v14 = vsel %vm547_vm1, %v535_v11, -inf }
 0x1f1   : > { %567 = vmax.xlane.f32.xlu0 %v566_v13  ;;  %564 = vmax.xlane.f32.xlu1 %v563_v14 }
 0x1f5   : > { %570 = vmax.xlane.f32.xlu1 %v569_v15 }
 0x26c   : > { %v556_v36 = vpop.xlane.xlu1 %555 }
 0x26d   : > { %v574_v37 = vsub.f32 %v1004_v58, %v556_v36 }
 0x26e   : > { %v550_v38 = vpop.xlane.xlu0 %549 }
 0x26f   : > { %v572_v39 = vsub.f32 %v516_v60, %v550_v38  ;;  %v584_v41 = vmul.f32 1.442695, %v574_v37 }
 0x270   : > { %v559_v40 = vpop.xlane.xlu1 %558 }
 0x271   : > { %v580_v42 = vmul.f32 1.442695, %v572_v39  ;;  %v575_v43 = vsub.f32 %v1005_v62, %v559_v40 }
 0x272   : > { %v553_v44 = vpop.xlane.xlu0 %552 }
 0x273   : > { %1084 = vpow2.f32 %v580_v42  ;;  %v573_v45 = vsub.f32 %v519_v0, %v553_v44  ;;  %v586_v46 = vmul.f32 1.442695, %v575_v43 }
 0x274   : > { %1086 = vpow2.f32 %v584_v41 }
 0x275   : > { %v582_v47 = vmul.f32 1.442695, %v573_v45 }
 0x276   : > { %v562_v48 = vpop.xlane.xlu0 %561 }
 0x277   : > { %1088 = vpow2.f32 %v582_v47  ;;  %v576_v49 = vsub.f32 %v532_v3, %v562_v48 }
 0x278   : > { %1090 = vpow2.f32 %v586_v46 }
 0x279   : > { %v588_v50 = vmul.f32 1.442695, %v576_v49 }
 0x27a   : > { %v568_v51 = vpop.xlane.xlu0 %567  ;;  %v565_v52 = vpop.xlane.xlu1 %564 }
 0x27b   : > { %1092 = vpow2.f32 %v588_v50  ;;  %v578_v53 = vsub.f32 %v1330_v2, %v568_v51  ;;  %v577_v54 = vsub.f32 %v535_v11, %v565_v52 }
 0x27d   : > { %v592_v55 = vmul.f32 1.442695, %v578_v53  ;;  %v590_v56 = vmul.f32 1.442695, %v577_v54 }
 0x27e   : > { %v571_v57 = vpop.xlane.xlu1 %570 }
 0x27f   : > { %1094 = vpow2.f32 %v592_v55  ;;  %v579_v58 = vsub.f32 %v1333_v9, %v571_v57 }
 0x280   : > { %v1085_v59 = vpop.eup %1084  ;;  %1096 = vpow2.f32 %v590_v56 }
 0x281   : > { %v594_v60 = vmul.f32 1.442695, %v579_v58  ;;  %v596_v61 = vsel %vm547_vm1, %v1085_v59, 0.0  ;;  %v1087_v62 = vpop.eup %1086 }
 0x282   : > { %597 = vadd.xlane.f32.xlu0 %v596_v61  ;;  %v602_v0 = vsel %vm547_vm1, %v1087_v62, 0.0 }
 0x283   : > { %1098 = vpow2.f32 %v594_v60 }
 0x284   : > { %v1089_v63 = vpop.eup %1088 }
 0x285   : > { %v599_v1 = vsel %vm547_vm1, %v1089_v63, 0.0  ;;  %v1091_v2 = vpop.eup %1090 }
 0x286   : > { %603 = vadd.xlane.f32.xlu0 %v602_v0  ;;  %600 = vadd.xlane.f32.xlu1 %v599_v1  ;;  %v605_v9 = vsel %vm547_vm1, %v1091_v2, 0.0 }
 0x288   : > { %v1093_v3 = vpop.eup %1092 }
 0x289   : > { %v608_v4 = vsel %vm547_vm1, %v1093_v3, 0.0 }
 0x28a   : > { %609 = vadd.xlane.f32.xlu0 %v608_v4  ;;  %606 = vadd.xlane.f32.xlu1 %v605_v9 }
 0x28c   : > { %v1095_v11 = vpop.eup %1094 }
 0x28d   : > { %v1097_v13 = vpop.eup %1096  ;;  %v614_v14 = vsel %vm547_vm1, %v1095_v11, 0.0 }
 0x28e   : > { %615 = vadd.xlane.f32.xlu0 %v614_v14  ;;  %v611_v15 = vsel %vm547_vm1, %v1097_v13, 0.0 }
 0x28f   : > { %612 = vadd.xlane.f32.xlu1 %v611_v15 }
 0x290   : > { %v1099_v16 = vpop.eup %1098 }
 0x291   : > { %v617_v17 = vsel %vm547_vm1, %v1099_v16, 0.0 }
 0x293   : > { %618 = vadd.xlane.f32.xlu1 %v617_v17 }
 0x30b   : > { %v598_v18 = vpop.xlane.xlu0 %597 }
 0x30c   : > { %1100 = vrcp.f32 %v598_v18 }
 0x30f   : > { %v604_v19 = vpop.xlane.xlu0 %603  ;;  %v601_v20 = vpop.xlane.xlu1 %600 }
 0x310   : > { %1102 = vrcp.f32 %v604_v19 }
 0x311   : > { %1104 = vrcp.f32 %v601_v20 }
 0x313   : > { %v610_v21 = vpop.xlane.xlu0 %609  ;;  %v607_v22 = vpop.xlane.xlu1 %606 }
 0x314   : > { %1106 = vrcp.f32 %v610_v21 }
 0x315   : > { %1108 = vrcp.f32 %v607_v22 }
 0x317   : > { %v616_v23 = vpop.xlane.xlu0 %615 }
 0x318   : > { %1110 = vrcp.f32 %v616_v23  ;;  %v613_v24 = vpop.xlane.xlu1 %612 }
 0x319   : > { %v1101_v25 = vpop.eup %1100  ;;  %1112 = vrcp.f32 %v613_v24 }
 0x31a   : > { %v628_v26 = vmul.f32 %v1101_v25, %v1085_v59 }
 0x31c   : > { %v619_v27 = vpop.xlane.xlu1 %618  ;;  %788 = vst.msk [vmem:[%s1355_s10] sm:$0xff] %vm547_vm1, %v628_v26 }
 0x31d   : > { %v1103_v28 = vpop.eup %1102  ;;  %1114 = vrcp.f32 %v619_v27 }
 0x31e   : > { %v1105_v29 = vpop.eup %1104  ;;  %v630_v30 = vmul.f32 %v1103_v28, %v1087_v62 }
 0x31f   : > { %v629_v31 = vmul.f32 %v1105_v29, %v1089_v63 }
 0x320   : > { %790 = vst.msk [vmem:[%s1355_s10 + $0x10] sm:$0xff] %vm547_vm1, %v630_v30 }
 0x321   : > { %v1107_v32 = vpop.eup %1106  ;;  %v636_v33 = vpack.c.bf16 %v629_v31, %v628_v26  ;;  %789 = vst.msk [vmem:[%s1355_s10 + $0x8] sm:$0xff] %vm547_vm1, %v629_v31 }
 0x322   : > { %v1109_v34 = vpop.eup %1108  ;;  %v632_v10 = vmul.f32 %v1107_v32, %v1093_v3 }
 0x323   : > { %v631_v35 = vmul.f32 %v1109_v34, %v1091_v2  ;;  %1018 = vmatprep.mubr.msk.bf16.mxu1 %vm547_vm1, %v636_v33 }
 0x324   : > { %792 = vst.msk [vmem:[%s1355_s10 + $0x20] sm:$0xff] %vm547_vm1, %v632_v10 }
 0x325   : > { %v1111_v12 = vpop.eup %1110  ;;  %v637_v36 = vpack.c.bf16 %v631_v35, %v630_v30  ;;  %791 = vst.msk [vmem:[%s1355_s10 + $0x18] sm:$0xff] %vm547_vm1, %v631_v35 }
 0x326   : > { %v1113_v37 = vpop.eup %1112  ;;  %v634_v38 = vmul.f32 %v1111_v12, %v1095_v11 }
 0x327   : > { %1019 = vmatmul.mubr.msk.bf16.vlgmr.msra.gmra.mxu1 %vm547_vm1, %v637_v36  ;;  %v633_v39 = vmul.f32 %v1113_v37, %v1097_v13 }
 0x328   : > { %794 = vst.msk [vmem:[%s1355_s10 + $0x30] sm:$0xff] %vm547_vm1, %v634_v38 }
 0x329   : > { %v638_v40 = vpack.c.bf16 %v633_v39, %v632_v10  ;;  %793 = vst.msk [vmem:[%s1355_s10 + $0x28] sm:$0xff] %vm547_vm1, %v633_v39 }
 0x32a   : > { %v1115_v41 = vpop.eup %1114 }
 0x32b   : > { %1022 = vmatprep.mubr.msk.bf16.mxu1 %vm547_vm1, %v638_v40  ;;  %v635_v42 = vmul.f32 %v1115_v41, %v1099_v16 }
 0x32d   : > { %v639_v43 = vpack.c.bf16 %v635_v42, %v634_v38  ;;  %795 = vst.msk [vmem:[%s1355_s10 + $0x38] sm:$0xff] %vm547_vm1, %v635_v42 }
 0x32f   : > { %1023 = vmatmul.mubr.msk.bf16.gmra.mxu1 %vm547_vm1, %v639_v43 }
 0x330   : > { %1129 = shalt.err (!%p1126_p3)
}
 0x331   : > { %s1130_s27 = scalar_lea.hbm %s1382_s17, 1024  ;;  %s1134_s8 = scalar_lea.hbm %s1464_s5, 2048 }
 0x332   : > { %p1131_p4 = scmp.ne.s32.totalorder %s1382_s17, %s1130_s27  ;;  %p1135_p9 = scmp.lt.s32.totalorder %s1382_s17, %s1464_s5 }
 0x333   : > { %p1136_p10 = scmp.lt.s32.totalorder %s1134_s8, %s1130_s27 }
 0x334   : > { %p1132_p7 = pnand %p1131_p4, %p1253_p5 }
 0x335   : > { %p1137_p11 = por %p1136_p10, %p1135_p9 }
 0x336   : > { %p1133_p8 = pneg %p1132_p7 }
 0x338   : > { %p1138_p12 = pnand %p1137_p11, %p1133_p8 }
 0x33a   : > { %1141 = shalt.err (!%p1138_p12)
}
 0x33b   : > { %s1180_s11 = smov 128   ;;  %s1181_s14 = smov 8   ;;  %v724_v45 = vunpack.c.l.bf16 %v1291_v6  ;;  %v722_v48 = vunpack.c.l.bf16 %v1285_v5  ;;  %v725_v52 = vunpack.c.h.bf16 %v1291_v6  ;;  %vm779_vm2 = vcmask 257024  }
 0x33c   : > { %1026 = dma.vmem_to_hbm [thread:$0]  (%p1253_p5), %s1384_s13, 1024, %s1382_s17, %s1388_s18, %s1180_s11, %s1180_s11, %s1181_s14   ;;  %v723_v57 = vunpack.c.h.bf16 %v1285_v5  ;;  %v728_v61 = vunpack.c.l.bf16 %v1299_v8  ;;  %v726_v2 = vunpack.c.l.bf16 %v1295_v7  ;;  %v729_v11 = vunpack.c.h.bf16 %v1299_v8 }
 0x33d   : > { %s721_s16 = sld [smem:[#allocation2]]  ;;  %s1419_s24 = scalar_lea.vmem %s1463_s4, %s949_s15  ;;  %v727_v17 = vunpack.c.h.bf16 %v1295_v7 }
 0x343   : > { %v730_v44 = vstv %s721_s16 }
 0x3e7   : > { %v1020_v46 = vpop.f32.mrf.mxu1 }
 0x3e8   : > { %v733_v47 = vmul.f32 %v1020_v46, %v730_v44 }
 0x3e9   : > { %v690_v49 = vpop.f32.mrf.mxu1 }
 0x3ea   : > { %v741_v50 = vadd.f32 %v733_v47, %v724_v45  ;;  %v731_v51 = vmul.f32 %v730_v44, %v690_v49 }
 0x3eb   : > { %v1021_v53 = vpop.f32.mrf.mxu1 }
 0x3ec   : > { %v953_v54 = vpack.c.bf16 %v741_v50, %v741_v50  ;;  %v739_v55 = vadd.f32 %v731_v51, %v722_v48  ;;  %v734_v56 = vmul.f32 %v1021_v53, %v730_v44 }
 0x3ed   : > { %v693_v58 = vpop.f32.mrf.mxu1 }
 0x3ee   : > { %782 = vst.msk [vmem:[%s1419_s24 + $0x8] sm:$0xf] %vm779_vm2, %v953_v54  ;;  %v951_v6 = vpack.c.bf16 %v739_v55, %v739_v55  ;;  %v742_v59 = vadd.f32 %v734_v56, %v725_v52  ;;  %v732_v60 = vmul.f32 %v730_v44, %v693_v58 }
 0x3ef   : > { %v1024_v62 = vpop.f32.mrf.mxu1 }
 0x3f0   : > { %780 = vst.msk [vmem:[%s1419_s24] sm:$0xf] %vm779_vm2, %v951_v6  ;;  %v954_v63 = vpack.c.bf16 %v742_v59, %v742_v59  ;;  %v740_v0 = vadd.f32 %v732_v60, %v723_v57  ;;  %v737_v1 = vmul.f32 %v1024_v62, %v730_v44 }
 0x3f1   : > { %v706_v3 = vpop.f32.mrf.mxu1 }
 0x3f2   : > { %783 = vst.msk [vmem:[%s1419_s24 + $0xc] sm:$0xf] %vm779_vm2, %v954_v63  ;;  %v952_v5 = vpack.c.bf16 %v740_v0, %v740_v0  ;;  %v745_v4 = vadd.f32 %v737_v1, %v728_v61  ;;  %v735_v9 = vmul.f32 %v730_v44, %v706_v3 }
 0x3f3   : > { %v1025_v13 = vpop.f32.mrf.mxu1 }
 0x3f4   : > { %781 = vst.msk [vmem:[%s1419_s24 + $0x4] sm:$0xf] %vm779_vm2, %v952_v5  ;;  %v957_v14 = vpack.c.bf16 %v745_v4, %v745_v4  ;;  %v743_v15 = vadd.f32 %v735_v9, %v726_v2  ;;  %v738_v16 = vmul.f32 %v1025_v13, %v730_v44 }
 0x3f5   : > { %v709_v18 = vpop.f32.mrf.mxu1 }
 0x3f6   : > { %786 = vst.msk [vmem:[%s1419_s24 + $0x18] sm:$0xf] %vm779_vm2, %v957_v14  ;;  %v955_v19 = vpack.c.bf16 %v743_v15, %v743_v15  ;;  %v746_v20 = vadd.f32 %v738_v16, %v729_v11  ;;  %v736_v21 = vmul.f32 %v730_v44, %v709_v18 }
 0x3f8   : > { %784 = vst.msk [vmem:[%s1419_s24 + $0x10] sm:$0xf] %vm779_vm2, %v955_v19  ;;  %v958_v22 = vpack.c.bf16 %v746_v20, %v746_v20  ;;  %v744_v23 = vadd.f32 %v736_v21, %v727_v17 }
 0x3fa   : > { %787 = vst.msk [vmem:[%s1419_s24 + $0x1c] sm:$0xf] %vm779_vm2, %v958_v22  ;;  %v956_v8 = vpack.c.bf16 %v744_v23, %v744_v23 }
 0x3fc   : > { %785 = vst.msk [vmem:[%s1419_s24 + $0x14] sm:$0xf] %vm779_vm2, %v956_v8 }
 0x3fd PF: > { %p1032_p5 = scmp.ge.s32.totalorder %s1176_s23, 2  ;;  %s841_s29 = sand.u32 1, %s1164_s20  }
 0x3fe   : > { %s842_s12 = scalar_lea.sflag [#allocation4], %s841_s29 }
 0x3ff   : > { %p1029_p13 = pnand %p1032_p5, %p1257_p6 }
 0x401   : > { %p1030_p0 = pneg %p1029_p13 }
 0x403   : > { %1159 = dma.done.wait (%p1030_p0), %s842_s12, 1024  }
 0x404   : > { %1161 = vsyncadd (%p1030_p0), %s842_s12, 4294966272  ;;  %p17_p1 = scmp.ge.s32.totalorder %s1240_s25, 4   ;;  %s1467_s20 = smov %s1168_s21 }
 0x405   : > { %s1468_s21 = smov %s1172_s22  ;;  %s1469_s22 = smov %s1251_s28 }
 0x406   : > { %s1470_s23 = smov %s1240_s25  ;;  %19 = sbr.rel (!%p17_p1) target bundleno = 5 (0x5), region = 83 }
 0x40b   :  { %847 = vsyncpa [#allocation4], 1 }
 0x40c   :  { %849 = vsyncpa [#allocation4 + $0x1], 1 }

// kernel: discriminator_forward.12
= control target key start
LH: loop header
LB: loop body
LE: loop exit
PB: predicated region body
PF: predicated region fallthrough
CT: control target
= control target key end

     0   :  { %s1082_s0 = inlined_call_operand.vmem [shape: bf16[2,16,64], index: 0, kind: input, shape index: {}]   ;;  %s1083_s1 = inlined_call_operand.vmem [shape: bf16[64,384], index: 1, kind: input, shape index: {}]   ;;  %s1084_s2 = inlined_call_operand.vmem [shape: f32[1,384], index: 2, kind: input, shape index: {}]   ;;  %s1085_s3 = inlined_call_operand.<no memory space> [shape: f32[1], index: 3, kind: input, shape index: {}]   ;;  %s1086_s4 = inlined_call_operand.vmem [shape: bf16[2,16,64], index: 4, kind: output, shape index: {0}]   ;;  %s1087_s5 = inlined_call_operand.hbm [shape: f32[2,16,16], index: 5, kind: output, shape index: {1}]  }
   0x1   :  { %11 = sst [smem:[#allocation2]] %s1085_s3 }
   0x2   :  { %12 = vsyncpa [#allocation4], 0 }
   0x3   :  { %14 = vsyncpa [#allocation4 + $0x1], 0  ;;  %s913_s20 = smov 0   ;;  %s915_s21 = smov 0  }
   0x4   :  { %s917_s22 = smov 0   ;;  %s919_s23 = smov 0  }
   0x5 LB: > { %s934_s3 = sadd.s32 4294967295, %s872_s23   ;;  %s672_s24 = sadd.s32 4294967294, %s872_s23   ;;  %s872_s23 = sphi %s919_s23, %s1093_s23   ;;  %s868_s22 = sphi %s917_s22, %s1092_s22   ;;  %s864_s21 = sphi %s915_s21, %s1091_s21   ;;  %s860_s20 = sphi %s913_s20, %s1090_s20  }
   0x6   : > { %s938_s25 = sadd.s32 1, %s872_s23   ;;  %s142_s26 = sadd.s32 1, %s868_s22 }
   0x7   : > { %s139_s27 = ssub.s32 %s872_s23, %s938_s25  ;;  %p152_p0 = scmp.ne.s32.totalorder %s868_s22, %s864_s21 }
   0x8   : > { %p140_p1 = scmp.eq.s32.totalorder %s139_s27, 0  ;;  %p153_p2 = scmp.eq.s32.totalorder %s934_s3, 1 }
   0x9   : > { %p158_p3 = scmp.ne.s32.totalorder %s864_s21, %s860_s20  ;;  %p159_p4 = scmp.eq.s32.totalorder %s672_s24, 1 }
   0xa   : > { %s949_s28 = scalar_select %p140_p1, %s868_s22, %s142_s26  }
   0xb   : > { %p951_p5 = por %p153_p2, %p152_p0  ;;  %p955_p6 = por %p159_p4, %p158_p3 }
   0xc   : > { %p675_p7 = scmp.ge.s32.totalorder %s872_s23, 1  ;;  %p194_p8 = scmp.lt.s32.totalorder %s872_s23, 3 }
   0xe   : > { %p195_p9 = pnand %p675_p7, %p194_p8 }
   0xf   : > { %p227_p10 = scmp.lt.s32.totalorder (!%p195_p9), %s934_s3, 1  ;;  %s224_s27 = sand.u32 (!%p195_p9), 1, %s864_s21  }
  0x10   : > { %198 = sbr.rel (%p195_p9) target bundleno = 963 (0x3c3), region = 36  ;;  %s676_s6 = sshll.u32 (!%p195_p9), %s224_s27, 4 }
  0x11   : > { %s708_s8 = sshll.u32 (!%p195_p9), %s934_s3, 8  ;;  %s1035_s14 = scalar_lea.sflag (!%p195_p9), [#allocation4], %s224_s27 }
  0x12   : > { %s1031_s13 = scalar_lea.hbm (!%p195_p9), %s1087_s5, %s708_s8  ;;  %s877_s16 = smov (!%p195_p9), [#allocation3]  }
  0x15   : > { %v786_v0 = vld [vmem:[%s1083_s1 + $0x4c] ss:$12 sps:$4 sm:$0xff]   ;;  %v788_v1 = vld [vmem:[%s1083_s1 + $0x48] ss:$12 sps:$4 sm:$0xff]   ;;  %v874_v2 = vmov 0   ;;  %s972_s12 = scalar_select %p227_p10, %s934_s3, 1  ;;  %v258_v11 = vlaneseq }
  0x16   : > { %378 = vmatprep.mubr.bf16.mxu0 %v874_v2  ;;  %354 = vmatprep.subr.bf16.mxu0 %v786_v0  ;;  %v789_v3 = vld [vmem:[%s1083_s1 + $0x34] ss:$12 sps:$4 sm:$0xff]   ;;  %v791_v4 = vld [vmem:[%s1083_s1 + $0x30] ss:$12 sps:$4 sm:$0xff]   ;;  %v794_v6 = vld [vmem:[%s1083_s1 + $0x18] ss:$12 sps:$4 sm:$0xff]  }
  0x17   : > { %355 = vmatpush1.bf16.msra.mxu0 %v788_v1  ;;  %v792_v5 = vld [vmem:[%s1083_s1 + $0x1c] ss:$12 sps:$4 sm:$0xff]   ;;  %s704_s19 = sshll.u32 %s972_s12, 3  ;;  %v795_v7 = vld [vmem:[%s1083_s1 + $0x4] ss:$12 sps:$4 sm:$0xff]   ;;  %vm342_vm0 = vcmask 523264  }
  0x18   : > { %356 = vmatprep.subr.bf16.mxu0 %v789_v3  ;;  %s231_s7 = scalar_lea.vmem %s1082_s0, %s704_s19  ;;  %v797_v8 = vld [vmem:[%s1083_s1] ss:$12 sps:$4 sm:$0xff]   ;;  %v875_v10 = vmov 0.0   ;;  %vm876_vm1 = vmmov 0   ;;  %v259_v12 = vshrl.u32 %v258_v11, 7  ;;  %vm473_vm2 = vcmask 130048  }
  0x19   : > { %v995_v9 = vld [vmem:[%s231_s7] sm:$0xff]   ;;  %718 = vmatprep.subr.bf16.mxu1 %v875_v10  ;;  %726 = vmatprep.mubr.msk.bf16.mxu1 %vm876_vm1, %v875_v10  ;;  %v799_v28 = vld [vmem:[%s1083_s1 + $0x50] ss:$12 sps:$4 sm:$0xff]   ;;  %v802_v31 = vld [vmem:[%s1083_s1 + $0x8] ss:$12 sps:$4 sm:$0xff]   ;;  %s226_s7 = scalar_lea.vmem [#allocation3], %s676_s6 }
  0x1a   : > { %v264_v13 = vsub.s32 1, %v259_v12  ;;  %v256_v15 = vld [vmem:[%s1084_s2] sm:$0x7]  ;;  %v260_v19 = vsub.s32 0, %v259_v12  ;;  %719 = vmatpush3.bf16.msra.mxu1 %v799_v28  ;;  %v800_v29 = vld [vmem:[%s1083_s1 + $0x38] ss:$12 sps:$4 sm:$0xff]  }
  0x1b   : > { %357 = vmatpush1.bf16.msra.mxu0 %v791_v4  ;;  %720 = vmatprep.subr.bf16.mxu1 %v875_v10  ;;  %v801_v30 = vld [vmem:[%s1083_s1 + $0x20] ss:$12 sps:$4 sm:$0xff]   ;;  %v268_v49 = vsub.s32 2, %v259_v12  ;;  %s585_s9 = sshll.u32 %s226_s7, 4  ;;  %s816_s3 = sshll.u32 %s877_s16, 4  ;;  %s1033_s9 = int_to_ptr.vmem [resolvable:$true] %s585_s9  ;;  %s817_s3 = int_to_ptr.vmem [resolvable:$false] %s816_s3 }
  0x1c   : > { %358 = vmatprep.subr.bf16.mxu0 %v792_v5  ;;  %v265_v17 = vrot.slane %v256_v15, %v264_v13  ;;  %v261_v24 = vrot.slane %v256_v15, %v260_v19  ;;  %s812_s15 = scalar_lea.vmem %s1033_s9, 256  ;;  %s818_s17 = scalar_lea.vmem %s817_s3, 512 }
  0x1d   : > { %v269_v51 = vrot.slane %v256_v15, %v268_v49  ;;  %p813_p11 = scmp.ne.s32.totalorder %s1033_s9, %s812_s15  ;;  %p819_p0 = scmp.lt.s32.totalorder %s1033_s9, %s817_s3 }
  0x1e   : > { %721 = vmatpush3.bf16.msra.mxu1 %v800_v29  ;;  %p820_p1 = scmp.lt.s32.totalorder %s818_s17, %s812_s15 }
  0x1f   : > { %359 = vmatpush1.bf16.msra.mxu0 %v794_v6  ;;  %722 = vmatprep.subr.bf16.mxu1 %v875_v10  ;;  %p814_p12 = pnand %p813_p11, %p951_p5 }
  0x20   : > { %360 = vmatprep.subr.bf16.mxu0 %v795_v7  ;;  %p821_p2 = por %p820_p1, %p819_p0 }
  0x21   : > { %p815_p13 = pneg %p814_p12 }
  0x22   : > { %723 = vmatpush3.bf16.msra.mxu1 %v801_v30 }
  0x23   : > { %361 = vmatpush1.bf16.msra.mxu0 %v797_v8  ;;  %724 = vmatprep.subr.bf16.mxu1 %v875_v10  ;;  %p822_p3 = pnand %p821_p2, %p815_p13 }
  0x24   : > { %730 = vmatprep.subr.bf16.mxu0 %v875_v10 }
  0x26   : > { %694 = vmatmul.mubr.msk.bf16.vlgmr.msra.gmra.mxu0 %vm342_vm0, %v995_v9  ;;  %725 = vmatpush3.bf16.msra.mxu1 %v802_v31 }
  0x27   : > { %732 = vmatprep.mubr.msk.bf16.mxu0 %vm876_vm1, %v875_v10  ;;  %736 = vmatprep.subr.bf16.mxu1 %v875_v10 }
  0x29   : > { %727 = vmatmul.mubr.msk.bf16.vlgmr.msra.gmra.mxu1 %vm342_vm0, %v995_v9 }
  0x2a   : > { %738 = vmatprep.mubr.msk.bf16.mxu1 %vm876_vm1, %v875_v10 }
  0xe6   : > { %v380_v14 = vpop.f32.mrf.mxu0 }
  0xe7   : > { %v381_v26 = vadd.f32 %v380_v14, %v261_v24 }
  0xe8   : > { %v382_v16 = vpop.f32.mrf.mxu0 }
  0xe9   : > { %v383_v21 = vadd.f32 %v382_v16, %v265_v17  ;;  %v423_v48 = vpop.f32.mrf.mxu1 }
  0xea   : > { %v384_v18 = vpop.f32.mrf.mxu0  ;;  %v424_v53 = vadd.f32 %v423_v48, %v269_v51 }
  0xeb   : > { %v385_v25 = vadd.f32 %v384_v18, %v261_v24  ;;  %v728_v50 = vpop.f32.mrf.mxu1 }
  0xec   : > { %v386_v20 = vpop.f32.mrf.mxu0 }
  0xed   : > { %v387_v22 = vadd.f32 %v386_v20, %v265_v17  ;;  %v430_v27 = vpack.c.bf16 %v385_v25, %v381_v26  ;;  %v426_v52 = vpop.f32.mrf.mxu1 }
  0xee   : > { %v427_v55 = vadd.f32 %v426_v52, %v269_v51 }
  0xef   : > { %v431_v23 = vpack.c.bf16 %v387_v22, %v383_v21  ;;  %v729_v54 = vpop.f32.mrf.mxu1 }
  0xf0   : > { %v497_v56 = vpack.c.bf16 %v427_v55, %v424_v53 }
  0xf1   : > { %731 = vmatpush3.bf16.xpose.msra.mxu0 %v431_v23 }
  0xf2   : > { %737 = vmatpush3.bf16.msra.mxu1 %v497_v56 }
  0xf8   : > { %733 = vmatmul.mubr.bf16.vlgmr.msra.gmra.mxu0 %v430_v27 }
 0x1b8   : > { %v466_v32 = vpop.f32.mrf.mxu0 }
 0x1b9   : > { %v474_v33 = vsel %vm473_vm2, %v466_v32, -inf }
 0x1ba   : > { %475 = vmax.xlane.f32.xlu0 %v474_v33  ;;  %v734_v34 = vpop.f32.mrf.mxu0 }
 0x1bc   : > { %v469_v35 = vpop.f32.mrf.mxu0 }
 0x1bd   : > { %v477_v36 = vsel %vm473_vm2, %v469_v35, -inf }
 0x1be   : > { %478 = vmax.xlane.f32.xlu0 %v477_v36  ;;  %v735_v37 = vpop.f32.mrf.mxu0 }
 0x243   : > { %v476_v38 = vpop.xlane.xlu0 %475 }
 0x244   : > { %v480_v39 = vsub.f32 %v466_v32, %v476_v38 }
 0x246   : > { %v482_v40 = vmul.f32 1.442695, %v480_v39 }
 0x247   : > { %v479_v41 = vpop.xlane.xlu0 %478 }
 0x248   : > { %804 = vpow2.f32 %v482_v40  ;;  %v481_v42 = vsub.f32 %v469_v35, %v479_v41 }
 0x24a   : > { %v484_v43 = vmul.f32 1.442695, %v481_v42 }
 0x24c   : > { %806 = vpow2.f32 %v484_v43 }
 0x255   : > { %v805_v44 = vpop.eup %804 }
 0x256   : > { %v486_v45 = vsel %vm473_vm2, %v805_v44, 0.0 }
 0x257   : > { %487 = vadd.xlane.f32.xlu1 %v486_v45 }
 0x259   : > { %v807_v46 = vpop.eup %806 }
 0x25a   : > { %v489_v47 = vsel %vm473_vm2, %v807_v46, 0.0 }
 0x25b   : > { %490 = vadd.xlane.f32.xlu1 %v489_v47 }
 0x2e0   : > { %v488_v57 = vpop.xlane.xlu1 %487 }
 0x2e1   : > { %808 = vrcp.f32 %v488_v57 }
 0x2e4   : > { %v491_v58 = vpop.xlane.xlu1 %490 }
 0x2e5   : > { %810 = vrcp.f32 %v491_v58 }
 0x2ee   : > { %v809_v59 = vpop.eup %808 }
 0x2ef   : > { %v494_v60 = vmul.f32 %v809_v59, %v805_v44 }
 0x2f1   : > { %561 = vst.msk [vmem:[%s226_s7] sm:$0xff] %vm473_vm2, %v494_v60 }
 0x2f2   : > { %v811_v61 = vpop.eup %810 }
 0x2f3   : > { %v495_v62 = vmul.f32 %v811_v61, %v807_v46 }
 0x2f5   : > { %v496_v63 = vpack.c.bf16 %v495_v62, %v494_v60  ;;  %562 = vst.msk [vmem:[%s226_s7 + $0x8] sm:$0xff] %vm473_vm2, %v495_v62 }
 0x2f7   : > { %739 = vmatmul.mubr.msk.bf16.vlgmr.msra.gmra.mxu1 %vm473_vm2, %v496_v63 }
 0x2f8   : > { %825 = shalt.err (!%p822_p3)
}
 0x2f9   : > { %s826_s18 = scalar_lea.hbm %s1031_s13, 256  ;;  %s830_s27 = scalar_lea.hbm %s1087_s5, 512 }
 0x2fa   : > { %p827_p4 = scmp.ne.s32.totalorder %s1031_s13, %s826_s18  ;;  %p831_p9 = scmp.lt.s32.totalorder %s1031_s13, %s1087_s5 }
 0x2fb   : > { %p832_p10 = scmp.lt.s32.totalorder %s830_s27, %s826_s18 }
 0x2fc   : > { %p828_p7 = pnand %p827_p4, %p951_p5 }
 0x2fd   : > { %p833_p11 = por %p832_p10, %p831_p9 }
 0x2fe   : > { %p829_p8 = pneg %p828_p7 }
 0x300   : > { %p834_p12 = pnand %p833_p11, %p829_p8 }
 0x302   : > { %837 = shalt.err (!%p834_p12)
}
 0x303   : > { %s878_s8 = smov 128   ;;  %s879_s10 = smov 8   ;;  %v543_v1 = vunpack.c.l.bf16 %v995_v9  ;;  %v544_v6 = vunpack.c.h.bf16 %v995_v9  ;;  %vm558_vm3 = vcmask 519168  }
 0x304   : > { %742 = dma.vmem_to_hbm [thread:$0]  (%p951_p5), %s1033_s9, 256, %s1031_s13, %s1035_s14, %s878_s8, %s878_s8, %s879_s10  }
 0x305   : > { %s542_s11 = sld [smem:[#allocation2]]  ;;  %s236_s3 = scalar_lea.vmem %s1086_s4, %s704_s19 }
 0x30b   : > { %v545_v0 = vstv %s542_s11 }
 0x3b7   : > { %v535_v2 = vpop.f32.mrf.mxu1 }
 0x3b8   : > { %v546_v3 = vmul.f32 %v545_v0, %v535_v2 }
 0x3b9   : > { %v740_v4 = vpop.f32.mrf.mxu1 }
 0x3ba   : > { %v548_v5 = vadd.f32 %v546_v3, %v543_v1 }
 0x3bb   : > { %v538_v7 = vpop.f32.mrf.mxu1 }
 0x3bc   : > { %v706_v8 = vpack.c.bf16 %v548_v5, %v548_v5  ;;  %v547_v10 = vmul.f32 %v545_v0, %v538_v7 }
 0x3bd   : > { %v741_v11 = vpop.f32.mrf.mxu1 }
 0x3be   : > { %559 = vst.msk [vmem:[%s236_s3] sm:$0xf] %vm558_vm3, %v706_v8  ;;  %v549_v12 = vadd.f32 %v547_v10, %v544_v6 }
 0x3c0   : > { %v707_v13 = vpack.c.bf16 %v549_v12, %v549_v12 }
 0x3c2   : > { %560 = vst.msk [vmem:[%s236_s3 + $0x4] sm:$0xf] %vm558_vm3, %v707_v13 }
 0x3c3 PF: > { %p748_p5 = scmp.ge.s32.totalorder %s872_s23, 2  ;;  %s608_s29 = sand.u32 1, %s860_s20  }
 0x3c4   : > { %s609_s12 = scalar_lea.sflag [#allocation4], %s608_s29 }
 0x3c5   : > { %p745_p13 = pnand %p748_p5, %p955_p6 }
 0x3c7   : > { %p746_p0 = pneg %p745_p13 }
 0x3c9   : > { %855 = dma.done.wait (%p746_p0), %s609_s12, 256  }
 0x3ca   : > { %857 = vsyncadd (%p746_p0), %s609_s12, 4294967040  ;;  %p17_p1 = scmp.ge.s32.totalorder %s938_s25, 4   ;;  %s1090_s20 = smov %s864_s21 }
 0x3cb   : > { %s1091_s21 = smov %s868_s22  ;;  %s1092_s22 = smov %s949_s28 }
 0x3cc   : > { %s1093_s23 = smov %s938_s25  ;;  %19 = sbr.rel (!%p17_p1) target bundleno = 5 (0x5), region = 83 }
 0x3d1   :  { %614 = vsyncpa [#allocation4], 1 }
 0x3d2   :  { %616 = vsyncpa [#allocation4 + $0x1], 1 }

// kernel: discriminator_forward.11
= control target key start
LH: loop header
LB: loop body
LE: loop exit
PB: predicated region body
PF: predicated region fallthrough
CT: control target
= control target key end

     0   :  { %s876_s12 = smov 0   ;;  %s878_s13 = smov 0   ;;  %s1016_s0 = inlined_call_operand.vmem [shape: bf16[32,512], index: 0, kind: input, shape index: {}]   ;;  %s1017_s1 = inlined_call_operand.vmem [shape: bf16[512,128], index: 1, kind: input, shape index: {}]   ;;  %s1018_s2 = inlined_call_operand.vmem [shape: f32[1,128], index: 2, kind: input, shape index: {}]   ;;  %s1019_s3 = inlined_call_operand.vmem [shape: bf16[32,128], index: 3, kind: output, shape index: {}]  }
   0x1   :  { %s880_s14 = smov 0  }
   0x2 LB: > { %s25_s15 = sadd.s32 1, %s850_s13  ;;  %p684_p0 = scmp.ge.s32.totalorder %s854_s14, 1  ;;  %s854_s14 = sphi %s880_s14, %s13_s14   ;;  %s850_s13 = sphi %s878_s13, %s1021_s13   ;;  %s846_s12 = sphi %s876_s12, %s1020_s12  }
   0x3   : > { %p27_p1 = scmp.ge.s32.totalorder %s25_s15, 4  ;;  %p167_p2 = scmp.lt.s32.totalorder %s854_s14, 5 }
   0x5   : > { %s1023_s15 = smov (%p27_p1, %s25_s15), 0  ;;  %p168_p3 = pnand %p684_p0, %p167_p2 }
   0x6   : > { %p200_p4 = scmp.lt.s32.totalorder (!%p168_p3), %s846_s12, 3 }
   0x7   : > { %171 = sbr.rel (%p168_p3) target bundleno = 255 (0xff), region = 32 }
   0xc   : > { %v796_v0 = vld [vmem:[%s1017_s1 + $0x78] sm:$0xff]   ;;  %v800_v4 = vld [vmem:[%s1017_s1 + $0x70] sm:$0xff]   ;;  %v804_v8 = vld [vmem:[%s1017_s1 + $0x68] sm:$0xff]   ;;  %s1025_s12 = smov (!%p200_p4, %s846_s12), 3 }
   0xd   : > { %v797_v1 = vld [vmem:[%s1017_s1 + $0xf8] sm:$0xff]   ;;  %728 = vmatprep.subr.bf16.mxu0 %v796_v0  ;;  %v801_v5 = vld [vmem:[%s1017_s1 + $0xf0] sm:$0xff]   ;;  %v805_v9 = vld [vmem:[%s1017_s1 + $0xe8] sm:$0xff]   ;;  %s727_s24 = sshll.u32 %s1025_s12, 4  ;;  %s687_s17 = sshll.u32 %s1025_s12, 2 }
   0xe   : > { %v798_v2 = vld [vmem:[%s1017_s1 + $0x38] sm:$0xff]   ;;  %750 = vmatprep.subr.bf16.mxu1 %v797_v1  ;;  %v802_v6 = vld [vmem:[%s1017_s1 + $0x30] sm:$0xff]   ;;  %v806_v10 = vld [vmem:[%s1017_s1 + $0x28] sm:$0xff]   ;;  %s207_s6 = scalar_lea.vmem %s1016_s0, %s727_s24  ;;  %s218_s20 = scalar_lea.vmem %s1019_s3, %s687_s17 }
   0xf   : > { %v799_v3 = vld [vmem:[%s1017_s1 + $0xb8] sm:$0xff]   ;;  %729 = vmatpush3.bf16.msra.mxu0 %v798_v2  ;;  %v803_v7 = vld [vmem:[%s1017_s1 + $0xb0] sm:$0xff]   ;;  %v807_v11 = vld [vmem:[%s1017_s1 + $0xa8] sm:$0xff]  }
  0x10   : > { %751 = vmatpush3.bf16.msra.mxu1 %v799_v3  ;;  %730 = vmatprep.subr.bf16.mxu0 %v800_v4  ;;  %v808_v12 = vld [vmem:[%s1017_s1 + $0x60] sm:$0xff]   ;;  %v812_v16 = vld [vmem:[%s1017_s1 + $0x58] sm:$0xff]   ;;  %v816_v20 = vld [vmem:[%s1017_s1 + $0x50] sm:$0xff]  }
  0x11   : > { %752 = vmatprep.subr.bf16.mxu1 %v801_v5  ;;  %v809_v13 = vld [vmem:[%s1017_s1 + $0xe0] sm:$0xff]   ;;  %v813_v17 = vld [vmem:[%s1017_s1 + $0xd8] sm:$0xff]   ;;  %v817_v21 = vld [vmem:[%s1017_s1 + $0xd0] sm:$0xff]  }
  0x12   : > { %v810_v14 = vld [vmem:[%s1017_s1 + $0x20] sm:$0xff]   ;;  %v814_v18 = vld [vmem:[%s1017_s1 + $0x18] sm:$0xff]   ;;  %v818_v22 = vld [vmem:[%s1017_s1 + $0x10] sm:$0xff]  }
  0x13   : > { %731 = vmatpush3.bf16.msra.mxu0 %v802_v6  ;;  %v811_v15 = vld [vmem:[%s1017_s1 + $0xa0] sm:$0xff]   ;;  %v815_v19 = vld [vmem:[%s1017_s1 + $0x98] sm:$0xff]   ;;  %v819_v23 = vld [vmem:[%s1017_s1 + $0x90] sm:$0xff]  }
  0x14   : > { %753 = vmatpush3.bf16.msra.mxu1 %v803_v7  ;;  %732 = vmatprep.subr.bf16.mxu0 %v804_v8  ;;  %v820_v24 = vld [vmem:[%s1017_s1 + $0x48] sm:$0xff]   ;;  %v824_v28 = vld [vmem:[%s1017_s1 + $0x40] sm:$0xff]  }
  0x15   : > { %754 = vmatprep.subr.bf16.mxu1 %v805_v9  ;;  %v821_v25 = vld [vmem:[%s1017_s1 + $0xc8] sm:$0xff]   ;;  %v825_v29 = vld [vmem:[%s1017_s1 + $0xc0] sm:$0xff]  }
  0x16   : > { %v822_v26 = vld [vmem:[%s1017_s1 + $0x8] sm:$0xff]   ;;  %v826_v30 = vld [vmem:[%s1017_s1] sm:$0xff]  }
  0x17   : > { %733 = vmatpush3.bf16.msra.mxu0 %v806_v10  ;;  %v823_v27 = vld [vmem:[%s1017_s1 + $0x88] sm:$0xff]   ;;  %v827_v31 = vld [vmem:[%s1017_s1 + $0x80] sm:$0xff]  }
  0x18   : > { %755 = vmatpush3.bf16.msra.mxu1 %v807_v11  ;;  %734 = vmatprep.subr.bf16.mxu0 %v808_v12  ;;  %v226_v32 = vld [vmem:[%s207_s6] sm:$0xff]  ;;  %v227_v33 = vld [vmem:[%s207_s6 + $0x8] sm:$0xff] }
  0x19   : > { %756 = vmatprep.subr.bf16.mxu1 %v809_v13  ;;  %v688_v34 = vcombine.low %v226_v32, %v226_v32  ;;  %v689_v35 = vcombine.high %v226_v32, %v226_v32  ;;  %v690_v36 = vcombine.low %v227_v33, %v227_v33  ;;  %v691_v37 = vcombine.high %v227_v33, %v227_v33  ;;  %v724_v44 = vld [vmem:[%s1018_s2] ss:$0 sm:$0xff] }
  0x1b   : > { %735 = vmatpush3.bf16.msra.mxu0 %v810_v14  ;;  %530 = vmatprep.mubr.bf16.mxu0 %v689_v35 }
  0x1c   : > { %757 = vmatpush3.bf16.msra.mxu1 %v811_v15  ;;  %736 = vmatprep.subr.bf16.mxu0 %v812_v16 }
  0x1d   : > { %758 = vmatprep.subr.bf16.mxu1 %v813_v17  ;;  %570 = vmatprep.mubr.bf16.mxu1 %v691_v37 }
  0x1f   : > { %737 = vmatpush3.bf16.msra.mxu0 %v814_v18 }
  0x20   : > { %759 = vmatpush3.bf16.msra.mxu1 %v815_v19  ;;  %738 = vmatprep.subr.bf16.mxu0 %v816_v20 }
  0x21   : > { %760 = vmatprep.subr.bf16.mxu1 %v817_v21 }
  0x23   : > { %739 = vmatpush3.bf16.msra.mxu0 %v818_v22 }
  0x24   : > { %761 = vmatpush3.bf16.msra.mxu1 %v819_v23  ;;  %740 = vmatprep.subr.bf16.mxu0 %v820_v24 }
  0x25   : > { %762 = vmatprep.subr.bf16.mxu1 %v821_v25 }
  0x27   : > { %741 = vmatpush3.bf16.msra.mxu0 %v822_v26 }
  0x28   : > { %763 = vmatpush3.bf16.msra.mxu1 %v823_v27  ;;  %742 = vmatprep.subr.bf16.mxu0 %v824_v28 }
  0x29   : > { %764 = vmatprep.subr.bf16.mxu1 %v825_v29 }
  0x2b   : > { %743 = vmatpush3.bf16.msra.mxu0 %v826_v30 }
  0x2c   : > { %765 = vmatpush3.bf16.msra.mxu1 %v827_v31 }
  0x2e   : > { %531 = vmatmul.mubr.bf16.vlgmr.msra.gmra.mxu0 %v688_v34 }
  0x2f   : > { %571 = vmatmul.mubr.bf16.vlgmr.msra.gmra.mxu1 %v690_v36 }
  0xee   : > { %v744_v38 = vpop.f32.mrf.mxu0 }
  0xef   : > { %v766_v39 = vpop.f32.mrf.mxu1 }
  0xf0   : > { %v745_v40 = vpop.f32.mrf.mxu0 }
  0xf1   : > { %v767_v41 = vpop.f32.mrf.mxu1  ;;  %v746_v42 = vadd.f32 %v745_v40, %v744_v38 }
  0xf2   : > { %v768_v43 = vadd.f32 %v767_v41, %v766_v39  ;;  %v747_v45 = vpop.f32.mrf.mxu0 }
  0xf3   : > { %v769_v46 = vpop.f32.mrf.mxu1 }
  0xf4   : > { %v573_v47 = vadd.f32 %v768_v43, %v746_v42  ;;  %v748_v48 = vpop.f32.mrf.mxu0 }
  0xf5   : > { %v770_v49 = vpop.f32.mrf.mxu1 }
  0xf6   : > { %v591_v50 = vadd.f32 %v724_v44, %v573_v47 }
  0xf8   : > { %v592_v51 = vmul.f32 0.1, %v591_v50 }
  0xfa   : > { %v593_v52 = vmax.f32 %v591_v50, %v592_v51 }
  0xfc   : > { %v594_v53 = vpack.c.bf16 %v593_v52, %v593_v52 }
  0xfe   : > { %595 = vst [vmem:[%s218_s20] sm:$0xf] %v594_v53 }
  0xff PF: > { %s13_s14 = sadd.s32 1, %s854_s14   ;;  %s1020_s12 = smov %s850_s13 }
 0x100   : > { %p10_p5 = scmp.ge.s32.totalorder %s13_s14, 6   ;;  %s1021_s13 = smov %s1023_s15 }
 0x102   :  { %12 = sbr.rel (!%p10_p5) target bundleno = 2 (0x2), region = 73 }

// kernel: discriminator_forward.13
= control target key start
LH: loop header
LB: loop body
LE: loop exit
PB: predicated region body
PF: predicated region fallthrough
CT: control target
= control target key end

     0   :  { %s1207_s1 = inlined_call_operand.vmem [shape: bf16[1024,128], index: 1, kind: input, shape index: {}]   ;;  %s1208_s0 = inlined_call_operand.vmem [shape: bf16[8,1024], index: 0, kind: input, shape index: {}]   ;;  %s1209_s2 = inlined_call_operand.vmem [shape: f32[1,128], index: 2, kind: input, shape index: {}]   ;;  %s1210_s3 = inlined_call_operand.vmem [shape: f32[8,128], index: 3, kind: output, shape index: {}]  }
   0x1   :  { %v905_v0 = vld [vmem:[%s1207_s1 + $0x78] sm:$0xff]   ;;  %v909_v4 = vld [vmem:[%s1207_s1 + $0x70] sm:$0xff]   ;;  %v913_v8 = vld [vmem:[%s1207_s1 + $0x68] sm:$0xff]  }
   0x2   :  { %v906_v1 = vld [vmem:[%s1207_s1 + $0xf8] sm:$0xff]   ;;  %817 = vmatprep.subr.bf16.mxu0 %v905_v0  ;;  %v910_v5 = vld [vmem:[%s1207_s1 + $0xf0] sm:$0xff]   ;;  %v914_v9 = vld [vmem:[%s1207_s1 + $0xe8] sm:$0xff]  }
   0x3   :  { %v907_v2 = vld [vmem:[%s1207_s1 + $0x38] sm:$0xff]   ;;  %839 = vmatprep.subr.bf16.mxu1 %v906_v1  ;;  %v911_v6 = vld [vmem:[%s1207_s1 + $0x30] sm:$0xff]   ;;  %v915_v10 = vld [vmem:[%s1207_s1 + $0x28] sm:$0xff]  }
   0x4   :  { %v908_v3 = vld [vmem:[%s1207_s1 + $0xb8] sm:$0xff]   ;;  %818 = vmatpush3.bf16.msra.mxu0 %v907_v2  ;;  %v912_v7 = vld [vmem:[%s1207_s1 + $0xb0] sm:$0xff]   ;;  %v916_v11 = vld [vmem:[%s1207_s1 + $0xa8] sm:$0xff]  }
   0x5   :  { %840 = vmatpush3.bf16.msra.mxu1 %v908_v3  ;;  %819 = vmatprep.subr.bf16.mxu0 %v909_v4  ;;  %v917_v12 = vld [vmem:[%s1207_s1 + $0x60] sm:$0xff]   ;;  %v921_v16 = vld [vmem:[%s1207_s1 + $0x58] sm:$0xff]   ;;  %v925_v20 = vld [vmem:[%s1207_s1 + $0x50] sm:$0xff]  }
   0x6   :  { %841 = vmatprep.subr.bf16.mxu1 %v910_v5  ;;  %v918_v13 = vld [vmem:[%s1207_s1 + $0xe0] sm:$0xff]   ;;  %v922_v17 = vld [vmem:[%s1207_s1 + $0xd8] sm:$0xff]   ;;  %v926_v21 = vld [vmem:[%s1207_s1 + $0xd0] sm:$0xff]  }
   0x7   :  { %v919_v14 = vld [vmem:[%s1207_s1 + $0x20] sm:$0xff]   ;;  %v923_v18 = vld [vmem:[%s1207_s1 + $0x18] sm:$0xff]   ;;  %v927_v22 = vld [vmem:[%s1207_s1 + $0x10] sm:$0xff]  }
   0x8   :  { %820 = vmatpush3.bf16.msra.mxu0 %v911_v6  ;;  %v920_v15 = vld [vmem:[%s1207_s1 + $0xa0] sm:$0xff]   ;;  %v924_v19 = vld [vmem:[%s1207_s1 + $0x98] sm:$0xff]   ;;  %v928_v23 = vld [vmem:[%s1207_s1 + $0x90] sm:$0xff]  }
   0x9   :  { %842 = vmatpush3.bf16.msra.mxu1 %v912_v7  ;;  %821 = vmatprep.subr.bf16.mxu0 %v913_v8  ;;  %v929_v24 = vld [vmem:[%s1207_s1 + $0x48] sm:$0xff]   ;;  %v933_v28 = vld [vmem:[%s1207_s1 + $0x40] sm:$0xff]   ;;  %v941_v38 = vld [vmem:[%s1207_s1 + $0x178] sm:$0xff]  }
   0xa   :  { %843 = vmatprep.subr.bf16.mxu1 %v914_v9  ;;  %v930_v25 = vld [vmem:[%s1207_s1 + $0xc8] sm:$0xff]   ;;  %v934_v29 = vld [vmem:[%s1207_s1 + $0xc0] sm:$0xff]   ;;  %v942_v39 = vld [vmem:[%s1207_s1 + $0x1f8] sm:$0xff]  }
   0xb   :  { %v931_v26 = vld [vmem:[%s1207_s1 + $0x8] sm:$0xff]   ;;  %v935_v30 = vld [vmem:[%s1207_s1] sm:$0xff]   ;;  %v943_v40 = vld [vmem:[%s1207_s1 + $0x138] sm:$0xff]  }
   0xc   :  { %822 = vmatpush3.bf16.msra.mxu0 %v915_v10  ;;  %v932_v27 = vld [vmem:[%s1207_s1 + $0x88] sm:$0xff]   ;;  %v936_v31 = vld [vmem:[%s1207_s1 + $0x80] sm:$0xff]   ;;  %v944_v41 = vld [vmem:[%s1207_s1 + $0x1b8] sm:$0xff]  }
   0xd   :  { %844 = vmatpush3.bf16.msra.mxu1 %v916_v11  ;;  %823 = vmatprep.subr.bf16.mxu0 %v917_v12  ;;  %v21_v32 = vld [vmem:[%s1208_s0] sm:$0xff]  ;;  %v22_v33 = vld [vmem:[%s1208_s0 + $0x8] sm:$0xff]  ;;  %v945_v42 = vld [vmem:[%s1207_s1 + $0x170] sm:$0xff]  }
   0xe   :  { %845 = vmatprep.subr.bf16.mxu1 %v918_v13  ;;  %v744_v34 = vcombine.low %v21_v32, %v21_v32  ;;  %v745_v35 = vcombine.high %v21_v32, %v21_v32  ;;  %v746_v36 = vcombine.low %v22_v33, %v22_v33  ;;  %v747_v37 = vcombine.high %v22_v33, %v22_v33  ;;  %v946_v43 = vld [vmem:[%s1207_s1 + $0x1f0] sm:$0xff]   ;;  %v949_v46 = vld [vmem:[%s1207_s1 + $0x168] sm:$0xff]   ;;  %v953_v50 = vld [vmem:[%s1207_s1 + $0x160] sm:$0xff]  }
   0xf   :  { %v947_v44 = vld [vmem:[%s1207_s1 + $0x130] sm:$0xff]   ;;  %v950_v47 = vld [vmem:[%s1207_s1 + $0x1e8] sm:$0xff]   ;;  %v954_v51 = vld [vmem:[%s1207_s1 + $0x1e0] sm:$0xff]  }
  0x10   :  { %824 = vmatpush3.bf16.msra.mxu0 %v919_v14  ;;  %597 = vmatprep.mubr.bf16.mxu0 %v745_v35  ;;  %v948_v45 = vld [vmem:[%s1207_s1 + $0x1b0] sm:$0xff]   ;;  %v951_v48 = vld [vmem:[%s1207_s1 + $0x128] sm:$0xff]   ;;  %v955_v52 = vld [vmem:[%s1207_s1 + $0x120] sm:$0xff]  }
  0x11   :  { %846 = vmatpush3.bf16.msra.mxu1 %v920_v15  ;;  %825 = vmatprep.subr.bf16.mxu0 %v921_v16  ;;  %v952_v49 = vld [vmem:[%s1207_s1 + $0x1a8] sm:$0xff]   ;;  %v956_v53 = vld [vmem:[%s1207_s1 + $0x1a0] sm:$0xff]   ;;  %v957_v54 = vld [vmem:[%s1207_s1 + $0x158] sm:$0xff]  }
  0x12   :  { %847 = vmatprep.subr.bf16.mxu1 %v922_v17  ;;  %637 = vmatprep.mubr.bf16.mxu1 %v747_v37  ;;  %v958_v55 = vld [vmem:[%s1207_s1 + $0x1d8] sm:$0xff]   ;;  %v961_v58 = vld [vmem:[%s1207_s1 + $0x150] sm:$0xff]   ;;  %v965_v62 = vld [vmem:[%s1207_s1 + $0x148] sm:$0xff]  }
  0x13   :  { %v959_v56 = vld [vmem:[%s1207_s1 + $0x118] sm:$0xff]   ;;  %v962_v59 = vld [vmem:[%s1207_s1 + $0x1d0] sm:$0xff]   ;;  %v966_v63 = vld [vmem:[%s1207_s1 + $0x1c8] sm:$0xff]  }
  0x14   :  { %826 = vmatpush3.bf16.msra.mxu0 %v923_v18  ;;  %v960_v57 = vld [vmem:[%s1207_s1 + $0x198] sm:$0xff]   ;;  %v963_v60 = vld [vmem:[%s1207_s1 + $0x110] sm:$0xff]   ;;  %v967_v0 = vld [vmem:[%s1207_s1 + $0x108] sm:$0xff]  }
  0x15   :  { %848 = vmatpush3.bf16.msra.mxu1 %v924_v19  ;;  %827 = vmatprep.subr.bf16.mxu0 %v925_v20  ;;  %v964_v61 = vld [vmem:[%s1207_s1 + $0x190] sm:$0xff]   ;;  %v968_v1 = vld [vmem:[%s1207_s1 + $0x188] sm:$0xff]   ;;  %v969_v2 = vld [vmem:[%s1207_s1 + $0x140] sm:$0xff]  }
  0x16   :  { %849 = vmatprep.subr.bf16.mxu1 %v926_v21  ;;  %v970_v3 = vld [vmem:[%s1207_s1 + $0x1c0] sm:$0xff]   ;;  %v23_v6 = vld [vmem:[%s1208_s0 + $0x10] sm:$0xff]  ;;  %v24_v9 = vld [vmem:[%s1208_s0 + $0x18] sm:$0xff] }
  0x17   :  { %v971_v4 = vld [vmem:[%s1207_s1 + $0x100] sm:$0xff]   ;;  %v748_v7 = vcombine.low %v23_v6, %v23_v6  ;;  %v749_v8 = vcombine.high %v23_v6, %v23_v6  ;;  %v750_v10 = vcombine.low %v24_v9, %v24_v9  ;;  %v751_v11 = vcombine.high %v24_v9, %v24_v9 }
  0x18   :  { %828 = vmatpush3.bf16.msra.mxu0 %v927_v22  ;;  %v972_v5 = vld [vmem:[%s1207_s1 + $0x180] sm:$0xff]  }
  0x19   :  { %850 = vmatpush3.bf16.msra.mxu1 %v928_v23  ;;  %829 = vmatprep.subr.bf16.mxu0 %v929_v24  ;;  %v816_v32 = vld [vmem:[%s1209_s2] ss:$0 sm:$0xff] }
  0x1a   :  { %851 = vmatprep.subr.bf16.mxu1 %v930_v25 }
  0x1c   :  { %830 = vmatpush3.bf16.msra.mxu0 %v931_v26 }
  0x1d   :  { %852 = vmatpush3.bf16.msra.mxu1 %v932_v27  ;;  %831 = vmatprep.subr.bf16.mxu0 %v933_v28 }
  0x1e   :  { %853 = vmatprep.subr.bf16.mxu1 %v934_v29 }
  0x20   :  { %832 = vmatpush3.bf16.msra.mxu0 %v935_v30 }
  0x21   :  { %854 = vmatpush3.bf16.msra.mxu1 %v936_v31  ;;  %861 = vmatprep.subr.bf16.mxu0 %v941_v38 }
  0x22   :  { %883 = vmatprep.subr.bf16.mxu1 %v942_v39 }
  0x23   :  { %598 = vmatmul.mubr.bf16.vlgmr.msra.gmra.mxu0 %v744_v34 }
  0x24   :  { %638 = vmatmul.mubr.bf16.vlgmr.msra.gmra.mxu1 %v746_v36  ;;  %862 = vmatpush3.bf16.msra.mxu0 %v943_v40 }
  0x25   :  { %884 = vmatpush3.bf16.msra.mxu1 %v944_v41  ;;  %863 = vmatprep.subr.bf16.mxu0 %v945_v42 }
  0x26   :  { %885 = vmatprep.subr.bf16.mxu1 %v946_v43  ;;  %677 = vmatprep.mubr.bf16.mxu0 %v749_v8 }
  0x27   :  { %717 = vmatprep.mubr.bf16.mxu1 %v751_v11 }
  0x28   :  { %864 = vmatpush3.bf16.msra.mxu0 %v947_v44 }
  0x29   :  { %886 = vmatpush3.bf16.msra.mxu1 %v948_v45  ;;  %865 = vmatprep.subr.bf16.mxu0 %v949_v46 }
  0x2a   :  { %887 = vmatprep.subr.bf16.mxu1 %v950_v47 }
  0x2c   :  { %866 = vmatpush3.bf16.msra.mxu0 %v951_v48 }
  0x2d   :  { %888 = vmatpush3.bf16.msra.mxu1 %v952_v49  ;;  %867 = vmatprep.subr.bf16.mxu0 %v953_v50 }
  0x2e   :  { %889 = vmatprep.subr.bf16.mxu1 %v954_v51 }
  0x30   :  { %868 = vmatpush3.bf16.msra.mxu0 %v955_v52 }
  0x31   :  { %890 = vmatpush3.bf16.msra.mxu1 %v956_v53  ;;  %869 = vmatprep.subr.bf16.mxu0 %v957_v54 }
  0x32   :  { %891 = vmatprep.subr.bf16.mxu1 %v958_v55 }
  0x34   :  { %870 = vmatpush3.bf16.msra.mxu0 %v959_v56 }
  0x35   :  { %892 = vmatpush3.bf16.msra.mxu1 %v960_v57  ;;  %871 = vmatprep.subr.bf16.mxu0 %v961_v58 }
  0x36   :  { %893 = vmatprep.subr.bf16.mxu1 %v962_v59 }
  0x38   :  { %872 = vmatpush3.bf16.msra.mxu0 %v963_v60 }
  0x39   :  { %894 = vmatpush3.bf16.msra.mxu1 %v964_v61  ;;  %873 = vmatprep.subr.bf16.mxu0 %v965_v62 }
  0x3a   :  { %895 = vmatprep.subr.bf16.mxu1 %v966_v63 }
  0x3c   :  { %874 = vmatpush3.bf16.msra.mxu0 %v967_v0 }
  0x3d   :  { %896 = vmatpush3.bf16.msra.mxu1 %v968_v1  ;;  %875 = vmatprep.subr.bf16.mxu0 %v969_v2 }
  0x3e   :  { %897 = vmatprep.subr.bf16.mxu1 %v970_v3 }
  0x40   :  { %876 = vmatpush3.bf16.msra.mxu0 %v971_v4 }
  0x41   :  { %898 = vmatpush3.bf16.msra.mxu1 %v972_v5 }
  0x43   :  { %678 = vmatmul.mubr.bf16.vlgmr.msra.gmra.mxu0 %v748_v7 }
  0x44   :  { %718 = vmatmul.mubr.bf16.vlgmr.msra.gmra.mxu1 %v750_v10 }
  0xe3   :  { %v833_v12 = vpop.f32.mrf.mxu0 }
  0xe4   :  { %v855_v13 = vpop.f32.mrf.mxu1 }
  0xe5   :  { %v834_v14 = vpop.f32.mrf.mxu0 }
  0xe6   :  { %v856_v15 = vpop.f32.mrf.mxu1  ;;  %v835_v20 = vadd.f32 %v834_v14, %v833_v12 }
  0xe7   :  { %v836_v16 = vpop.f32.mrf.mxu0  ;;  %v857_v21 = vadd.f32 %v856_v15, %v855_v13 }
  0xe8   :  { %v858_v17 = vpop.f32.mrf.mxu1 }
  0xe9   :  { %v837_v18 = vpop.f32.mrf.mxu0  ;;  %v640_v26 = vadd.f32 %v857_v21, %v835_v20 }
  0xea   :  { %v859_v19 = vpop.f32.mrf.mxu1 }
 0x103   :  { %v877_v22 = vpop.f32.mrf.mxu0 }
 0x104   :  { %v899_v23 = vpop.f32.mrf.mxu1 }
 0x105   :  { %v878_v24 = vpop.f32.mrf.mxu0 }
 0x106   :  { %v900_v25 = vpop.f32.mrf.mxu1  ;;  %v879_v27 = vadd.f32 %v878_v24, %v877_v22 }
 0x107   :  { %v880_v28 = vpop.f32.mrf.mxu0  ;;  %v901_v31 = vadd.f32 %v900_v25, %v899_v23 }
 0x108   :  { %v902_v29 = vpop.f32.mrf.mxu1  ;;  %v680_v30 = vadd.f32 %v879_v27, %v640_v26 }
 0x109   :  { %v881_v33 = vpop.f32.mrf.mxu0 }
 0x10a   :  { %v903_v34 = vpop.f32.mrf.mxu1  ;;  %v720_v35 = vadd.f32 %v901_v31, %v680_v30 }
 0x10c   :  { %v738_v36 = vadd.f32 %v816_v32, %v720_v35 }
 0x10e   :  { %739 = vst [vmem:[%s1210_s3] sm:$0xff] %v738_v36 }

</bundles_post_ra>
